<compile_context>
chip_gen: v7x
topology: tpu7x:2x2x1
jax: 0.10.0
libtpu: 0.0.40
codegen_flags: <defaults>
</compile_context>

<pallas_src>
import functools
import math

import jax
import jax.numpy as jnp
from jax import lax
from jax.experimental import pallas as pl
from jax.experimental.pallas import tpu as pltpu

BN_EPS = 1e-5


def _round_up(v, m):
    return ((v + m - 1) // m) * m


def _tpu_flavor():
    """Perf-only switch (never affects correctness): 'v5' has no bf16 VPU."""
    kind = ""
    try:
        kind = jax.devices()[0].device_kind.lower()
    except Exception:
        pass
    if any(s in kind for s in ("v2", "v3", "v4", "v5")):
        return "v5"
    if "7" in kind:
        return "v7x"
    return "v6e"


def _vmem_estimate(stride, tr, hp, wp, cin, hidden, wout, cout_p, ew_b):
    """Rough per-grid-step VMEM working set (bytes)."""
    rn = tr + 2 if stride == 1 else 2 * tr + 2
    x_blk = 2 * hp * wp * cin * 2                 # bf16 x block, double-buffered
    h_f32 = rn * wp * hidden * 4                  # expand matmul result (f32)
    hid = 2 * rn * wp * hidden * ew_b             # cast + masked copy
    taps = 3 * rn * wp * hidden * ew_b            # width-sliced tap copies
    acc = 2 * tr * wout * hidden * ew_b           # depthwise accumulator temps
    outb = 3 * tr * wout * cout_p * 4             # proj result + double-buffered out
    wts = (cin + cout_p) * hidden * 2 + hidden * 16
    return x_blk + h_f32 + hid + taps + acc + outb + wts


def _pick_tr(ho, stride, hp, wp, cin, hidden, wout, cout_p, ew_b, budget):
    """Largest divisor of Ho whose working set fits the per-generation budget."""
    for t in sorted((d for d in range(1, ho + 1) if ho % d == 0), reverse=True):
        if _vmem_estimate(stride, t, hp, wp, cin, hidden, wout, cout_p, ew_b) <= budget:
            return t
    return 1


# ----------------------------------------------------------------------------
# Fused InvertedResidual kernels
# ----------------------------------------------------------------------------
def _ir_kernel_s1(*refs, H, W, Wp, TR, hidden, has_expand, identity, ew,
                  cout, cout_p):
    """stride == 1.  x block: (1, H+2, Wp, Cin) zero-padded NHWC bf16, resident per n."""
    it = iter(refs)
    x_ref = next(it)
    if has_expand:
        wexp_ref, bexp_ref = next(it), next(it)
    wdw_ref, bdw_ref = next(it), next(it)
    wproj_ref, bproj_ref = next(it), next(it)
    o_ref = next(it)

    r = pl.program_id(1)
    base = pl.multiple_of(r * TR, TR)        # first padded row of this tile's halo window
    rn = TR + 2                              # TR output rows need TR + 2 input rows

    xin = x_ref[0, pl.ds(base, rn), :, :]    # (rn, Wp, Cin), bf16
    cin = xin.shape[-1]

    if has_expand:
        # expand 1x1 (BN folded) + bias + ReLU6: bf16 MXU, f32 accumulation.
        h = jnp.dot(xin.reshape(rn * Wp, cin), wexp_ref[...],
                    preferred_element_type=jnp.float32)
        h = jnp.clip(h + bexp_ref[...], 0.0, 6.0)
        hid3 = h.astype(ew).reshape(rn, Wp, hidden)
        # Padded positions must be exactly 0 for the depthwise (ReLU6(bexp) != 0).
        # Cheap mask: (rn, Wp, 1) iotas only, broadcast into the select.
        prow = base + lax.broadcasted_iota(jnp.int32, (rn, Wp, 1), 0)
        pcol = lax.broadcasted_iota(jnp.int32, (rn, Wp, 1), 1)
        valid = (prow >= 1) & (prow <= H) & (pcol >= 1) & (pcol <= W)
        hid3 = jnp.where(valid, hid3, 0.0)
    else:
        hid3 = xin.astype(ew)                # expand_ratio == 1: padding already zero in x

    # depthwise 3x3 stride 1 (VPU, per-generation dtype): 3 width slices (one per kw),
    # row selection on the cheap leading axis.
    wdw = wdw_ref[...]                       # (9, 1, hidden), BN folded, ew dtype
    cols = [hid3[:, kw:kw + W, :] for kw in range(3)]
    acc = None
    for kh in range(3):
        for kw in range(3):
            term = cols[kw][kh:kh + TR] * wdw[kh * 3 + kw]
            acc = term if acc is None else acc + term
    acc = jnp.clip(acc + bdw_ref[...], 0.0, 6.0)

    # proj 1x1 (BN folded, lane-padded to cout_p) + bias (+ residual in f32).
    proj_in = acc.reshape(TR * W, hidden)
    if ew != jnp.bfloat16:
        proj_in = proj_in.astype(jnp.bfloat16)
    out = jnp.dot(proj_in, wproj_ref[...], preferred_element_type=jnp.float32)
    out = out + bproj_ref[...]
    if identity:
        res = xin[1:1 + TR, 1:1 + W, :].astype(jnp.float32).reshape(TR * W, cout)
        if cout_p > cout:
            # Padded output lanes are sliced off in the wrapper, so zero-pad is fine.
            res = jnp.concatenate(
                [res, jnp.zeros((TR * W, cout_p - cout), jnp.float32)], axis=-1)
        out = out + res
    o_ref[0] = out.astype(o_ref.dtype)


def _ir_kernel_s2(*refs, H, Wo, Wpk, TR, hidden, has_expand, ew):
    """stride == 2.  x block: (1, H+2, Wpk, Cin) bf16 with phase-packed columns
    [even padded cols 0..2Wo | odd padded cols 1..2Wo-1 | zero pad]."""
    it = iter(refs)
    x_ref = next(it)
    if has_expand:
        wexp_ref, bexp_ref = next(it), next(it)
    wdw_ref, bdw_ref = next(it), next(it)
    wproj_ref, bproj_ref = next(it), next(it)
    o_ref = next(it)

    r = pl.program_id(1)
    base = pl.multiple_of(r * 2 * TR, 2 * TR)   # first padded input row of the window
    rn = 2 * TR + 2

    xin = x_ref[0, pl.ds(base, rn), :, :]       # (rn, Wpk, Cin), bf16
    cin = xin.shape[-1]

    if has_expand:
        # Single fused expand matmul over both column phases (one MXU call).
        h = jnp.dot(xin.reshape(rn * Wpk, cin), wexp_ref[...],
                    preferred_element_type=jnp.float32)
        h = jnp.clip(h + bexp_ref[...], 0.0, 6.0)
        hid3 = h.astype(ew).reshape(rn, Wpk, hidden)
        prow = base + lax.broadcasted_iota(jnp.int32, (rn, Wpk, 1), 0)
        pcol = lax.broadcasted_iota(jnp.int32, (rn, Wpk, 1), 1)
        # packed col 0 is the left zero pad; packed cols > 2*Wo are width round-up pad.
        valid = (prow >= 1) & (prow <= H) & (pcol >= 1) & (pcol <= 2 * Wo)
        hid3 = jnp.where(valid, hid3, 0.0)
    else:
        hid3 = xin.astype(ew)                   # padding already zero in x

    wdw = wdw_ref[...]
    # Phase-packed taps: kw=0 -> even idx j, kw=1 -> odd idx j, kw=2 -> even idx j+1.
    taps_w = (hid3[:, 0:Wo, :], hid3[:, Wo + 1:2 * Wo + 1, :], hid3[:, 1:Wo + 1, :])
    acc = None
    for kh in range(3):
        for kw in range(3):
            rows = taps_w[kw][kh:kh + 2 * TR]              # (2TR, Wo, hidden)
            sub = rows.reshape(TR, 2, Wo, hidden)[:, 0]    # every other input row
            term = sub * wdw[kh * 3 + kw]
            acc = term if acc is None else acc + term
    acc = jnp.clip(acc + bdw_ref[...], 0.0, 6.0)

    proj_in = acc.reshape(TR * Wo, hidden)
    if ew != jnp.bfloat16:
        proj_in = proj_in.astype(jnp.bfloat16)
    out = jnp.dot(proj_in, wproj_ref[...], preferred_element_type=jnp.float32)
    out = out + bproj_ref[...]
    o_ref[0] = out.astype(o_ref.dtype)


# ----------------------------------------------------------------------------
# Wrapper
# ----------------------------------------------------------------------------
def inverted_residual_forward(x_nchw, p):
    """Forward of the PyTorch InvertedResidual module (inference-mode BN)."""
    stride, identity = p["stride"], p["identity"]
    has_expand, hidden, cout = p["has_expand"], p["hidden"], p["cout"]

    flavor = _tpu_flavor()
    ew = jnp.float32 if flavor == "v5" else jnp.bfloat16   # bf16 VPU only on v6e/v7x
    ew_b = jnp.dtype(ew).itemsize
    vmem_budget = (36 << 20) if flavor == "v7x" else (72 << 20)
    vmem_limit = (48 << 20) if flavor == "v7x" else (96 << 20)

    # NCHW -> NHWC, bf16 once in HBM.
    # TODO(synk): in a full backbone keep activations NHWC/bf16 between blocks so this
    #             transpose/pad does not round-trip HBM per block.
    x = jnp.transpose(x_nchw, (0, 2, 3, 1)).astype(jnp.bfloat16)
    n, hgt, wdt, cin = x.shape
    ho = (hgt - 1) // stride + 1
    wo = (wdt - 1) // stride + 1
    hp = hgt + 2
    cout_p = _round_up(cout, 128)              # lane-dense output (unmasked vst, full MXU N)

    if stride == 1:
        wp = _round_up(wdt + 2, 8)
        tr = _pick_tr(ho, 1, hp, wp, cin, hidden, wdt, cout_p, ew_b, vmem_budget)
        xk = jnp.pad(x, ((0, 0), (1, 1), (1, wp - wdt - 1), (0, 0)))
        kern = functools.partial(_ir_kernel_s1, H=hgt, W=wdt, Wp=wp, TR=tr,
                                 hidden=hidden, has_expand=has_expand,
                                 identity=identity, ew=ew, cout=cout, cout_p=cout_p)
        x_spec = pl.BlockSpec((1, hp, wp, cin), lambda nn, rr: (nn, 0, 0, 0))
    else:
        assert hgt % 2 == 0 and wdt % 2 == 0, "stride-2 path needs even H/W"
        # TODO(synk): ragged/odd spatial sizes need masked edge tiles.
        wpk = _round_up(2 * wo + 1, 8)
        tr = _pick_tr(ho, 2, hp, wpk, cin, hidden, wo, cout_p, ew_b, vmem_budget)
        xpad = jnp.pad(x, ((0, 0), (1, 1), (1, 1), (0, 0)))
        # Phase-packed columns: only the Wo+1 even / Wo odd padded columns the
        # depthwise actually consumes -> one fused expand matmul, contiguous taps.
        xk = jnp.concatenate([xpad[:, :, 0:2 * wo + 1:2, :],
                              xpad[:, :, 1:2 * wo:2, :]], axis=2)
        xk = jnp.pad(xk, ((0, 0), (0, 0), (0, wpk - (2 * wo + 1)), (0, 0)))
        kern = functools.partial(_ir_kernel_s2, H=hgt, Wo=wo, Wpk=wpk, TR=tr,
                                 hidden=hidden, has_expand=has_expand, ew=ew)
        x_spec = pl.BlockSpec((1, hp, wpk, cin), lambda nn, rr: (nn, 0, 0, 0))
    assert ho % tr == 0

    # Weight prep: lane-pad the projection, cast depthwise to the elementwise dtype.
    wproj, bproj = p["wproj"], p["bproj"]
    if cout_p > cout:
        wproj = jnp.pad(wproj, ((0, 0), (0, cout_p - cout)))
        bproj = jnp.pad(bproj, ((0, 0), (0, cout_p - cout)))
    wdw = p["wdw"].astype(ew)
    bdw = p["bdw"].astype(ew)

    w_in, w_specs = [], []
    if has_expand:
        w_in += [p["wexp"], p["bexp"]]
        w_specs += [pl.BlockSpec(p["wexp"].shape, lambda nn, rr: (0, 0)),
                    pl.BlockSpec(p["bexp"].shape, lambda nn, rr: (0, 0))]
    w_in += [wdw, bdw, wproj, bproj]
    w_specs += [pl.BlockSpec(wdw.shape, lambda nn, rr: (0, 0, 0)),
                pl.BlockSpec(bdw.shape, lambda nn, rr: (0, 0)),
                pl.BlockSpec(wproj.shape, lambda nn, rr: (0, 0)),
                pl.BlockSpec(bproj.shape, lambda nn, rr: (0, 0))]

    y = pl.pallas_call(
        kern,
        out_shape=jax.ShapeDtypeStruct((n, ho * wo, cout_p), jnp.float32),
        grid=(n, ho // tr),
        in_specs=[x_spec] + w_specs,
        out_specs=pl.BlockSpec((1, tr * wo, cout_p), lambda nn, rr: (nn, rr, 0)),
        compiler_params=pltpu.CompilerParams(
            dimension_semantics=("parallel", "parallel"),
            vmem_limit_bytes=vmem_limit),
    )(xk, *w_in)

    y = y[:, :, :cout].reshape(n, ho, wo, cout)
    return jnp.transpose(y, (0, 3, 1, 2)).astype(jnp.float32)   # NHWC -> NCHW


# ----------------------------------------------------------------------------
# Parameters (mirrors the PyTorch __init__ / _initialize_weights, BN folded)
# ----------------------------------------------------------------------------
def make_inverted_residual_params(key, inp, oup, stride, expand_ratio):
    assert stride in (1, 2)
    hidden = int(round(inp * expand_ratio))
    has_expand = expand_ratio != 1
    k_exp, k_dw, k_proj = jax.random.split(key, 3)

    def conv_w(k, shape, fan_n):                # normal(0, sqrt(2 / (kh*kw*cout)))
        return math.sqrt(2.0 / fan_n) * jax.random.normal(k, shape, jnp.float32)

    def bn_fold(c):                             # inference BN: gamma=1, beta=0, mean=0, var=1
        gamma = jnp.ones((c,), jnp.float32)
        beta = jnp.zeros((c,), jnp.float32)
        mean = jnp.zeros((c,), jnp.float32)
        var = jnp.ones((c,), jnp.float32)
        scale = gamma * lax.rsqrt(var + BN_EPS)
        return scale, beta - mean * scale
    # TODO(synk): training-mode BatchNorm (batch statistics) is not implemented.

    p = dict(stride=stride, identity=(stride == 1 and inp == oup),
             has_expand=has_expand, hidden=hidden, cout=oup, cin=inp)
    if has_expand:
        s, b = bn_fold(hidden)
        p["wexp"] = (conv_w(k_exp, (inp, hidden), hidden) * s[None, :]).astype(jnp.bfloat16)
        p["bexp"] = b.reshape(1, hidden)
    s, b = bn_fold(hidden)
    p["wdw"] = conv_w(k_dw, (9, 1, hidden), 9 * hidden) * s[None, None, :]
    p["bdw"] = b.reshape(1, hidden)
    s, b = bn_fold(oup)
    p["wproj"] = (conv_w(k_proj, (hidden, oup), oup) * s[None, :]).astype(jnp.bfloat16)
    p["bproj"] = b.reshape(1, oup)
    return p


# ----------------------------------------------------------------------------
# Pure-JAX reference (same folded weights, bf16 MXU casts, f32 elsewhere)
# ----------------------------------------------------------------------------
def ref_inverted_residual(x_nchw, p):
    x = jnp.transpose(x_nchw, (0, 2, 3, 1)).astype(jnp.float32)
    y = x
    if p["has_expand"]:
        y = jnp.einsum("nhwc,cd->nhwd", y.astype(jnp.bfloat16), p["wexp"],
                       preferred_element_type=jnp.float32)
        y = jnp.clip(y + p["bexp"][0], 0.0, 6.0)
    wdw = p["wdw"].reshape(3, 3, 1, p["hidden"])
    y = lax.conv_general_dilated(
        y, wdw, window_strides=(p["stride"], p["stride"]),
        padding=((1, 1), (1, 1)),
        dimension_numbers=("NHWC", "HWIO", "NHWC"),
        feature_group_count=p["hidden"])
    y = jnp.clip(y + p["bdw"][0], 0.0, 6.0)
    y = jnp.einsum("nhwc,cd->nhwd", y.astype(jnp.bfloat16), p["wproj"],
                   preferred_element_type=jnp.float32)
    y = y + p["bproj"][0]
    if p["identity"]:
        y = y + x
    return jnp.transpose(y, (0, 3, 1, 2))


# ----------------------------------------------------------------------------
if __name__ == "__main__":
    root = jax.random.PRNGKey(0)
    kx, k1, k2, k3 = jax.random.split(root, 4)
    x = jax.random.normal(kx, (2, 32, 16, 16), jnp.float32)     # NCHW

    configs = [
        dict(inp=32, oup=32, stride=1, expand_ratio=6),   # identity / residual path
        dict(inp=32, oup=64, stride=2, expand_ratio=6),   # downsampling path
        dict(inp=32, oup=16, stride=1, expand_ratio=1),   # expand_ratio == 1 path
    ]
    for cfg, k in zip(configs, (k1, k2, k3)):
        p = make_inverted_residual_params(k, **cfg)
        run = jax.jit(lambda inp, p=p: inverted_residual_forward(inp, p))
        out = jax.block_until_ready(run(x))
        ho = (x.shape[2] - 1) // cfg["stride"] + 1
        assert out.shape == (x.shape[0], cfg["oup"], ho, ho), out.shape
        assert out.dtype == jnp.float32
        ref = jax.block_until_ready(
            jax.jit(lambda inp, p=p: ref_inverted_residual(inp, p))(x))
        err = float(jnp.max(jnp.abs(out - ref)))
        assert err < 5e-2, f"{cfg} max abs err {err}"
    print("KERNEL_OK")
</pallas_src>

<mosaic_0001>
module attributes {stable_mosaic.version = 11 : i64} {
  func.func @_ir_kernel_s1(%arg0: i32, %arg1: i32, %arg2: memref<1x18x24x32xbf16, #tpu.memory_space<vmem>>, %arg3: memref<32x192xbf16, #tpu.memory_space<vmem>>, %arg4: memref<1x192xf32, #tpu.memory_space<vmem>>, %arg5: memref<9x1x192xbf16, #tpu.memory_space<vmem>>, %arg6: memref<1x192xbf16, #tpu.memory_space<vmem>>, %arg7: memref<192x128xbf16, #tpu.memory_space<vmem>>, %arg8: memref<1x128xf32, #tpu.memory_space<vmem>>, %arg9: memref<1x256x128xf32, #tpu.memory_space<vmem>>) attributes {dimension_semantics = [#tpu.dimension_semantics<parallel>, #tpu.dimension_semantics<parallel>], iteration_bounds = array<i64: 2, 1>, scalar_prefetch = 0 : i64, scratch_operands = 0 : i64, tpu.core_type = #tpu.core_type<tc>, window_params = [{transform_indices = @transform_0, window_bounds = array<i64: 1, 18, 24, 32>}, {pipeline_mode = #tpu.pipeline_mode<synchronous>, transform_indices = @transform_1, window_bounds = array<i64: 32, 192>}, {pipeline_mode = #tpu.pipeline_mode<synchronous>, transform_indices = @transform_2, window_bounds = array<i64: 1, 192>}, {pipeline_mode = #tpu.pipeline_mode<synchronous>, transform_indices = @transform_3, window_bounds = array<i64: 9, 1, 192>}, {pipeline_mode = #tpu.pipeline_mode<synchronous>, transform_indices = @transform_4, window_bounds = array<i64: 1, 192>}, {pipeline_mode = #tpu.pipeline_mode<synchronous>, transform_indices = @transform_5, window_bounds = array<i64: 192, 128>}, {pipeline_mode = #tpu.pipeline_mode<synchronous>, transform_indices = @transform_6, window_bounds = array<i64: 1, 128>}, {transform_indices = @transform_7, window_bounds = array<i64: 1, 256, 128>}]} {
    %c16_i32 = arith.constant 16 : i32
    %0 = arith.muli %arg1, %c16_i32 : i32
    %1 = tpu.assume_multiple %0, 16 : i32
    %c0 = arith.constant 0 : index
    %2 = arith.index_cast %1 : i32 to index
    %c0_0 = arith.constant 0 : index
    %c0_1 = arith.constant 0 : index
    %3 = vector.load %arg2[%c0, %2, %c0_0, %c0_1] : memref<1x18x24x32xbf16, #tpu.memory_space<vmem>>, vector<1x18x24x32xbf16>
    %4 = vector.shape_cast %3 : vector<1x18x24x32xbf16> to vector<18x24x32xbf16>
    %5 = vector.shape_cast %4 : vector<18x24x32xbf16> to vector<432x32xbf16>
    %c0_2 = arith.constant 0 : index
    %c0_3 = arith.constant 0 : index
    %6 = vector.load %arg3[%c0_2, %c0_3] : memref<32x192xbf16, #tpu.memory_space<vmem>>, vector<32x192xbf16>
    %cst = arith.constant dense<0.000000e+00> : vector<432x192xf32>
    %7 = tpu.matmul %5, %6, %cst {dimension_numbers = #tpu.dot_dimension_numbers<[1], [0], [0], [1], [0, 0, 1, 1], [], []>} : vector<432x32xbf16>, vector<32x192xbf16>, vector<432x192xf32> -> vector<432x192xf32>
    %c0_4 = arith.constant 0 : index
    %c0_5 = arith.constant 0 : index
    %8 = vector.load %arg4[%c0_4, %c0_5] : memref<1x192xf32, #tpu.memory_space<vmem>>, vector<1x192xf32>
    %9 = vector.broadcast %8 : vector<1x192xf32> to vector<432x192xf32>
    %10 = arith.addf %7, %9 : vector<432x192xf32>
    %cst_6 = arith.constant 0.000000e+00 : f32
    %cst_7 = arith.constant 6.000000e+00 : f32
    %11 = vector.broadcast %cst_6 : f32 to vector<432x192xf32>
    %12 = arith.maximumf %11, %10 : vector<432x192xf32>
    %13 = vector.broadcast %cst_7 : f32 to vector<432x192xf32>
    %14 = arith.minimumf %13, %12 : vector<432x192xf32>
    %15 = arith.truncf %14 : vector<432x192xf32> to vector<432x192xbf16>
    %16 = vector.shape_cast %15 : vector<432x192xbf16> to vector<18x24x192xbf16>
    %17 = tpu.iota {dimensions = array<i32: 0>} : vector<18x24x1xi32>
    %18 = vector.broadcast %1 : i32 to vector<18x24x1xi32>
    %19 = arith.addi %18, %17 : vector<18x24x1xi32>
    %20 = tpu.iota {dimensions = array<i32: 1>} : vector<18x24x1xi32>
    %c1_i32 = arith.constant 1 : i32
    %21 = vector.broadcast %c1_i32 : i32 to vector<18x24x1xi32>
    %22 = arith.cmpi sge, %19, %21 : vector<18x24x1xi32>
    %c16_i32_8 = arith.constant 16 : i32
    %23 = vector.broadcast %c16_i32_8 : i32 to vector<18x24x1xi32>
    %24 = arith.cmpi sle, %19, %23 : vector<18x24x1xi32>
    %25 = arith.andi %22, %24 : vector<18x24x1xi1>
    %c1_i32_9 = arith.constant 1 : i32
    %26 = vector.broadcast %c1_i32_9 : i32 to vector<18x24x1xi32>
    %27 = arith.cmpi sge, %20, %26 : vector<18x24x1xi32>
    %28 = arith.andi %25, %27 : vector<18x24x1xi1>
    %c16_i32_10 = arith.constant 16 : i32
    %29 = vector.broadcast %c16_i32_10 : i32 to vector<18x24x1xi32>
    %30 = arith.cmpi sle, %20, %29 : vector<18x24x1xi32>
    %31 = arith.andi %28, %30 : vector<18x24x1xi1>
    %cst_11 = arith.constant 0.000000e+00 : f32
    %32 = arith.truncf %cst_11 : f32 to bf16
    %33 = vector.shape_cast %31 : vector<18x24x1xi1> to vector<18x24x1xi1>
    %34 = vector.broadcast %33 : vector<18x24x1xi1> to vector<18x24x192xi1>
    %35 = vector.broadcast %32 : bf16 to vector<18x24x192xbf16>
    %36 = arith.select %34, %16, %35 : vector<18x24x192xi1>, vector<18x24x192xbf16>
    %c0_12 = arith.constant 0 : index
    %c0_13 = arith.constant 0 : index
    %c0_14 = arith.constant 0 : index
    %37 = vector.load %arg5[%c0_12, %c0_13, %c0_14] : memref<9x1x192xbf16, #tpu.memory_space<vmem>>, vector<9x1x192xbf16>
    %38 = vector.extract_strided_slice %36 {offsets = [0, 0, 0], sizes = [18, 16, 192], strides = [1, 1, 1]} : vector<18x24x192xbf16> to vector<18x16x192xbf16>
    %39 = vector.extract_strided_slice %36 {offsets = [0, 1, 0], sizes = [18, 16, 192], strides = [1, 1, 1]} : vector<18x24x192xbf16> to vector<18x16x192xbf16>
    %40 = vector.extract_strided_slice %36 {offsets = [0, 2, 0], sizes = [18, 16, 192], strides = [1, 1, 1]} : vector<18x24x192xbf16> to vector<18x16x192xbf16>
    %41 = vector.extract_strided_slice %38 {offsets = [0, 0, 0], sizes = [16, 16, 192], strides = [1, 1, 1]} : vector<18x16x192xbf16> to vector<16x16x192xbf16>
    %42 = vector.extract_strided_slice %37 {offsets = [0, 0, 0], sizes = [1, 1, 192], strides = [1, 1, 1]} : vector<9x1x192xbf16> to vector<1x1x192xbf16>
    %43 = vector.shape_cast %42 : vector<1x1x192xbf16> to vector<1x192xbf16>
    %44 = vector.shape_cast %43 : vector<1x192xbf16> to vector<1x1x192xbf16>
    %45 = vector.broadcast %44 : vector<1x1x192xbf16> to vector<16x16x192xbf16>
    %46 = arith.mulf %41, %45 : vector<16x16x192xbf16>
    %47 = vector.extract_strided_slice %39 {offsets = [0, 0, 0], sizes = [16, 16, 192], strides = [1, 1, 1]} : vector<18x16x192xbf16> to vector<16x16x192xbf16>
    %48 = vector.extract_strided_slice %37 {offsets = [1, 0, 0], sizes = [1, 1, 192], strides = [1, 1, 1]} : vector<9x1x192xbf16> to vector<1x1x192xbf16>
    %49 = vector.shape_cast %48 : vector<1x1x192xbf16> to vector<1x192xbf16>
    %50 = vector.shape_cast %49 : vector<1x192xbf16> to vector<1x1x192xbf16>
    %51 = vector.broadcast %50 : vector<1x1x192xbf16> to vector<16x16x192xbf16>
    %52 = arith.mulf %47, %51 : vector<16x16x192xbf16>
    %53 = arith.addf %46, %52 : vector<16x16x192xbf16>
    %54 = vector.extract_strided_slice %40 {offsets = [0, 0, 0], sizes = [16, 16, 192], strides = [1, 1, 1]} : vector<18x16x192xbf16> to vector<16x16x192xbf16>
    %55 = vector.extract_strided_slice %37 {offsets = [2, 0, 0], sizes = [1, 1, 192], strides = [1, 1, 1]} : vector<9x1x192xbf16> to vector<1x1x192xbf16>
    %56 = vector.shape_cast %55 : vector<1x1x192xbf16> to vector<1x192xbf16>
    %57 = vector.shape_cast %56 : vector<1x192xbf16> to vector<1x1x192xbf16>
    %58 = vector.broadcast %57 : vector<1x1x192xbf16> to vector<16x16x192xbf16>
    %59 = arith.mulf %54, %58 : vector<16x16x192xbf16>
    %60 = arith.addf %53, %59 : vector<16x16x192xbf16>
    %61 = vector.extract_strided_slice %38 {offsets = [1, 0, 0], sizes = [16, 16, 192], strides = [1, 1, 1]} : vector<18x16x192xbf16> to vector<16x16x192xbf16>
    %62 = vector.extract_strided_slice %37 {offsets = [3, 0, 0], sizes = [1, 1, 192], strides = [1, 1, 1]} : vector<9x1x192xbf16> to vector<1x1x192xbf16>
    %63 = vector.shape_cast %62 : vector<1x1x192xbf16> to vector<1x192xbf16>
    %64 = vector.shape_cast %63 : vector<1x192xbf16> to vector<1x1x192xbf16>
    %65 = vector.broadcast %64 : vector<1x1x192xbf16> to vector<16x16x192xbf16>
    %66 = arith.mulf %61, %65 : vector<16x16x192xbf16>
    %67 = arith.addf %60, %66 : vector<16x16x192xbf16>
    %68 = vector.extract_strided_slice %39 {offsets = [1, 0, 0], sizes = [16, 16, 192], strides = [1, 1, 1]} : vector<18x16x192xbf16> to vector<16x16x192xbf16>
    %69 = vector.extract_strided_slice %37 {offsets = [4, 0, 0], sizes = [1, 1, 192], strides = [1, 1, 1]} : vector<9x1x192xbf16> to vector<1x1x192xbf16>
    %70 = vector.shape_cast %69 : vector<1x1x192xbf16> to vector<1x192xbf16>
    %71 = vector.shape_cast %70 : vector<1x192xbf16> to vector<1x1x192xbf16>
    %72 = vector.broadcast %71 : vector<1x1x192xbf16> to vector<16x16x192xbf16>
    %73 = arith.mulf %68, %72 : vector<16x16x192xbf16>
    %74 = arith.addf %67, %73 : vector<16x16x192xbf16>
    %75 = vector.extract_strided_slice %40 {offsets = [1, 0, 0], sizes = [16, 16, 192], strides = [1, 1, 1]} : vector<18x16x192xbf16> to vector<16x16x192xbf16>
    %76 = vector.extract_strided_slice %37 {offsets = [5, 0, 0], sizes = [1, 1, 192], strides = [1, 1, 1]} : vector<9x1x192xbf16> to vector<1x1x192xbf16>
    %77 = vector.shape_cast %76 : vector<1x1x192xbf16> to vector<1x192xbf16>
    %78 = vector.shape_cast %77 : vector<1x192xbf16> to vector<1x1x192xbf16>
    %79 = vector.broadcast %78 : vector<1x1x192xbf16> to vector<16x16x192xbf16>
    %80 = arith.mulf %75, %79 : vector<16x16x192xbf16>
    %81 = arith.addf %74, %80 : vector<16x16x192xbf16>
    %82 = vector.extract_strided_slice %38 {offsets = [2, 0, 0], sizes = [16, 16, 192], strides = [1, 1, 1]} : vector<18x16x192xbf16> to vector<16x16x192xbf16>
    %83 = vector.extract_strided_slice %37 {offsets = [6, 0, 0], sizes = [1, 1, 192], strides = [1, 1, 1]} : vector<9x1x192xbf16> to vector<1x1x192xbf16>
    %84 = vector.shape_cast %83 : vector<1x1x192xbf16> to vector<1x192xbf16>
    %85 = vector.shape_cast %84 : vector<1x192xbf16> to vector<1x1x192xbf16>
    %86 = vector.broadcast %85 : vector<1x1x192xbf16> to vector<16x16x192xbf16>
    %87 = arith.mulf %82, %86 : vector<16x16x192xbf16>
    %88 = arith.addf %81, %87 : vector<16x16x192xbf16>
    %89 = vector.extract_strided_slice %39 {offsets = [2, 0, 0], sizes = [16, 16, 192], strides = [1, 1, 1]} : vector<18x16x192xbf16> to vector<16x16x192xbf16>
    %90 = vector.extract_strided_slice %37 {offsets = [7, 0, 0], sizes = [1, 1, 192], strides = [1, 1, 1]} : vector<9x1x192xbf16> to vector<1x1x192xbf16>
    %91 = vector.shape_cast %90 : vector<1x1x192xbf16> to vector<1x192xbf16>
    %92 = vector.shape_cast %91 : vector<1x192xbf16> to vector<1x1x192xbf16>
    %93 = vector.broadcast %92 : vector<1x1x192xbf16> to vector<16x16x192xbf16>
    %94 = arith.mulf %89, %93 : vector<16x16x192xbf16>
    %95 = arith.addf %88, %94 : vector<16x16x192xbf16>
    %96 = vector.extract_strided_slice %40 {offsets = [2, 0, 0], sizes = [16, 16, 192], strides = [1, 1, 1]} : vector<18x16x192xbf16> to vector<16x16x192xbf16>
    %97 = vector.extract_strided_slice %37 {offsets = [8, 0, 0], sizes = [1, 1, 192], strides = [1, 1, 1]} : vector<9x1x192xbf16> to vector<1x1x192xbf16>
    %98 = vector.shape_cast %97 : vector<1x1x192xbf16> to vector<1x192xbf16>
    %99 = vector.shape_cast %98 : vector<1x192xbf16> to vector<1x1x192xbf16>
    %100 = vector.broadcast %99 : vector<1x1x192xbf16> to vector<16x16x192xbf16>
    %101 = arith.mulf %96, %100 : vector<16x16x192xbf16>
    %102 = arith.addf %95, %101 : vector<16x16x192xbf16>
    %c0_15 = arith.constant 0 : index
    %c0_16 = arith.constant 0 : index
    %103 = vector.load %arg6[%c0_15, %c0_16] : memref<1x192xbf16, #tpu.memory_space<vmem>>, vector<1x192xbf16>
    %104 = vector.shape_cast %103 : vector<1x192xbf16> to vector<1x1x192xbf16>
    %105 = vector.broadcast %104 : vector<1x1x192xbf16> to vector<16x16x192xbf16>
    %106 = arith.addf %102, %105 : vector<16x16x192xbf16>
    %cst_17 = arith.constant 0.000000e+00 : f32
    %cst_18 = arith.constant 6.000000e+00 : f32
    %107 = arith.truncf %cst_17 : f32 to bf16
    %108 = vector.broadcast %107 : bf16 to vector<16x16x192xbf16>
    %109 = arith.maximumf %108, %106 : vector<16x16x192xbf16>
    %110 = arith.truncf %cst_18 : f32 to bf16
    %111 = vector.broadcast %110 : bf16 to vector<16x16x192xbf16>
    %112 = arith.minimumf %111, %109 : vector<16x16x192xbf16>
    %113 = vector.shape_cast %112 : vector<16x16x192xbf16> to vector<256x192xbf16>
    %c0_19 = arith.constant 0 : index
    %c0_20 = arith.constant 0 : index
    %114 = vector.load %arg7[%c0_19, %c0_20] : memref<192x128xbf16, #tpu.memory_space<vmem>>, vector<192x128xbf16>
    %cst_21 = arith.constant dense<0.000000e+00> : vector<256x128xf32>
    %115 = tpu.matmul %113, %114, %cst_21 {dimension_numbers = #tpu.dot_dimension_numbers<[1], [0], [0], [1], [0, 0, 1, 1], [], []>} : vector<256x192xbf16>, vector<192x128xbf16>, vector<256x128xf32> -> vector<256x128xf32>
    %c0_22 = arith.constant 0 : index
    %c0_23 = arith.constant 0 : index
    %116 = vector.load %arg8[%c0_22, %c0_23] : memref<1x128xf32, #tpu.memory_space<vmem>>, vector<1x128xf32>
    %117 = vector.broadcast %116 : vector<1x128xf32> to vector<256x128xf32>
    %118 = arith.addf %115, %117 : vector<256x128xf32>
    %119 = vector.extract_strided_slice %4 {offsets = [1, 1, 0], sizes = [16, 16, 32], strides = [1, 1, 1]} : vector<18x24x32xbf16> to vector<16x16x32xbf16>
    %120 = arith.extf %119 : vector<16x16x32xbf16> to vector<16x16x32xf32>
    %121 = vector.shape_cast %120 : vector<16x16x32xf32> to vector<256x32xf32>
    %cst_24 = arith.constant 0.000000e+00 : f32
    %122 = vector.broadcast %cst_24 : f32 to vector<256x96xf32>
    %123 = tpu.concatenate %121, %122 in 1 : vector<256x32xf32>, vector<256x96xf32> -> vector<256x128xf32>
    %124 = arith.addf %118, %123 : vector<256x128xf32>
    %c0_25 = arith.constant 0 : index
    %c0_26 = arith.constant 0 : index
    %c0_27 = arith.constant 0 : index
    %125 = vector.load %arg9[%c0_25, %c0_26, %c0_27] : memref<1x256x128xf32, #tpu.memory_space<vmem>>, vector<1x256x128xf32>
    %126 = vector.shape_cast %125 : vector<1x256x128xf32> to vector<256x128xf32>
    %127 = vector.shape_cast %124 : vector<256x128xf32> to vector<1x256x128xf32>
    tpu.vector_store %arg9[%c0_25, %c0_26, %c0_27], %127 {strides = array<i32>} : memref<1x256x128xf32, #tpu.memory_space<vmem>>, vector<1x256x128xf32>,
    return
  }
  func.func @transform_0(%arg0: i32, %arg1: i32) -> (i32, i32, i32, i32) {
    %c0_i32 = arith.constant 0 : i32
    %c0_i32_0 = arith.constant 0 : i32
    %c0_i32_1 = arith.constant 0 : i32
    %c0_i32_2 = arith.constant 0 : i32
    return %arg0, %c0_i32, %c0_i32_0, %c0_i32_1 : i32, i32, i32, i32
  }
  func.func @transform_1(%arg0: i32, %arg1: i32) -> (i32, i32) {
    %c0_i32 = arith.constant 0 : i32
    %c0_i32_0 = arith.constant 0 : i32
    %c0_i32_1 = arith.constant 0 : i32
    return %c0_i32, %c0_i32_0 : i32, i32
  }
  func.func @transform_2(%arg0: i32, %arg1: i32) -> (i32, i32) {
    %c0_i32 = arith.constant 0 : i32
    %c0_i32_0 = arith.constant 0 : i32
    %c0_i32_1 = arith.constant 0 : i32
    return %c0_i32, %c0_i32_0 : i32, i32
  }
  func.func @transform_3(%arg0: i32, %arg1: i32) -> (i32, i32, i32) {
    %c0_i32 = arith.constant 0 : i32
    %c0_i32_0 = arith.constant 0 : i32
    %c0_i32_1 = arith.constant 0 : i32
    %c0_i32_2 = arith.constant 0 : i32
    return %c0_i32, %c0_i32_0, %c0_i32_1 : i32, i32, i32
  }
  func.func @transform_4(%arg0: i32, %arg1: i32) -> (i32, i32) {
    %c0_i32 = arith.constant 0 : i32
    %c0_i32_0 = arith.constant 0 : i32
    %c0_i32_1 = arith.constant 0 : i32
    return %c0_i32, %c0_i32_0 : i32, i32
  }
  func.func @transform_5(%arg0: i32, %arg1: i32) -> (i32, i32) {
    %c0_i32 = arith.constant 0 : i32
    %c0_i32_0 = arith.constant 0 : i32
    %c0_i32_1 = arith.constant 0 : i32
    return %c0_i32, %c0_i32_0 : i32, i32
  }
  func.func @transform_6(%arg0: i32, %arg1: i32) -> (i32, i32) {
    %c0_i32 = arith.constant 0 : i32
    %c0_i32_0 = arith.constant 0 : i32
    %c0_i32_1 = arith.constant 0 : i32
    return %c0_i32, %c0_i32_0 : i32, i32
  }
  func.func @transform_7(%arg0: i32, %arg1: i32) -> (i32, i32, i32) {
    %c0_i32 = arith.constant 0 : i32
    %c0_i32_0 = arith.constant 0 : i32
    return %arg0, %arg1, %c0_i32 : i32, i32, i32
  }
}

</mosaic_0001>

<bundles_post_ra>
// kernel: _lambda_.1
= control target key start
LH: loop header
LB: loop body
LE: loop exit
PB: predicated region body
PF: predicated region fallthrough
CT: control target
= control target key end

     0   :  { %s10339_s0 = inlined_call_operand.hbm [shape: bf16[2,18,24,32], index: 0, kind: input, shape index: {}]   ;;  %s10340_s1 = inlined_call_operand.hbm [shape: bf16[32,192], index: 1, kind: input, shape index: {}]   ;;  %s10341_s2 = inlined_call_operand.hbm [shape: f32[1,192], index: 2, kind: input, shape index: {}]   ;;  %s10342_s3 = inlined_call_operand.hbm [shape: bf16[9,1,192], index: 3, kind: input, shape index: {}]   ;;  %s10343_s4 = inlined_call_operand.hbm [shape: bf16[1,192], index: 4, kind: input, shape index: {}]   ;;  %s10344_s5 = inlined_call_operand.hbm [shape: bf16[192,128], index: 5, kind: input, shape index: {}]   ;;  %s10345_s6 = inlined_call_operand.hbm [shape: f32[1,128], index: 6, kind: input, shape index: {}]   ;;  %s10346_s7 = inlined_call_operand.hbm [shape: f32[2,256,128], index: 7, kind: output, shape index: {}]  }
   0x1   :  { %10439 = sst [smem:[#allocation85_spill]] %s10340_s1 }
   0x2   :  { %10440 = sst [smem:[#allocation86_spill]] %s10342_s3 }
   0x3   :  { %10441 = sst [smem:[#allocation87_spill]] %s10346_s7 }
   0x4   :  { %12 = vsyncpa [#allocation3], 0 }
   0x5   :  { %14 = vsyncpa [#allocation3 + $0x1], 0 }
   0x6   :  { %15 = vsyncpa [#allocation6], 0 }
   0x7   :  { %16 = vsyncpa [#allocation9], 0 }
   0x8   :  { %17 = vsyncpa [#allocation12], 0 }
   0x9   :  { %18 = vsyncpa [#allocation4], 0 }
   0xa   :  { %20 = vsyncpa [#allocation4 + $0x1], 0  ;;  %s6791_s24 = smov 0   ;;  %s6793_s25 = smov 0  }
   0xb   :  { %s6795_s26 = smov 0   ;;  %s6797_s27 = smov 0  }
   0xc   :  { %s6799_s28 = smov 0   ;;  %s6801_s29 = smov 0  }
   0xd LB: > { %s10347_s30 = sadd.s32 4294967295, %s6728_s29   ;;  %p5884_p0 = scmp.ge.s32.totalorder %s6728_s29, 1  ;;  %s6728_s29 = sphi %s6801_s29, %s26_s29   ;;  %s6724_s28 = sphi %s6799_s28, %s11002_s28   ;;  %s6720_s27 = sphi %s6797_s27, %s11001_s27   ;;  %s6716_s26 = sphi %s6795_s26, %s11000_s26   ;;  %s6712_s25 = sphi %s6793_s25, %s10999_s25   ;;  %s6708_s24 = sphi %s6791_s24, %s10998_s24  }
   0xe   : > { %p6825_p1 = scmp.eq.s32.totalorder %s10347_s30, 0  ;;  %p223_p2 = scmp.lt.s32.totalorder %s6728_s29, 3 }
   0xf   : > { %s6730_s10 = smov [#allocation5]   ;;  %s6731_s13 = smov [#allocation8]  }
  0x10   : > { %s10442_s8 = scalar_select %p6825_p1, 1, 0 }
  0x11   : > { %p6830_p3 = pnand %p5884_p0, %p223_p2  ;;  %s235_s11 = sshll.u32 %s6730_s10, 4  ;;  %s6834_s11 = int_to_ptr.vmem [resolvable:$true] %s235_s11 }
  0x12   : > { %s259_s14 = sshll.u32 %s6731_s13, 4  ;;  %s10445_s1 = sld [smem:[#allocation85_spill]]  ;;  %s6845_s14 = int_to_ptr.vmem [resolvable:$true] %s259_s14 }
  0x13   : > { %s10443_s9 = scalar_select %p6830_p3, 1, 0 }
  0x14   : > { %p6233_p4 = pneg %p6830_p3 }
  0x16   : > { %p6841_p6 = pnand %p6233_p4, %p6825_p1 }
  0x18   : > { %s6436_s17 = scalar_lea.hbm %s10445_s1, 512  ;;  %p6855_p8 = pneg %p6841_p6 }
  0x19   : > { %p6437_p7 = scmp.ne.s32.totalorder %s10445_s1, %s6436_s17  ;;  %p6443_p11 = scmp.lt.u32.totalorder %s6436_s17, %s10445_s1 }
  0x1b   : > { %p6439_p9 = pnand %p6855_p8, %p6437_p7 }
  0x1d   : > { %p6440_p10 = pneg %p6439_p9 }
  0x1f   : > { %p6445_p12 = pnand %p6443_p11, %p6440_p10 }
  0x21   : > { %6448 = shalt.err (!%p6445_p12)
}
  0x22   : > { %s6449_s23 = scalar_lea.vmem %s6834_s11, 512  ;;  %p6457_p4 = scmp.lt.s32.totalorder %s6834_s11, %s6834_s11 }
  0x23   : > { %p6450_p13 = scmp.ne.s32.totalorder %s6834_s11, %s6449_s23  ;;  %p6458_p5 = scmp.lt.s32.totalorder %s6449_s23, %s6449_s23 }
  0x25   : > { %p6452_p0 = pnand %p6450_p13, %p6855_p8  ;;  %p6459_p7 = por %p6458_p5, %p6457_p4 }
  0x27   : > { %p6453_p2 = pneg %p6452_p0 }
  0x29   : > { %p6460_p9 = pnand %p6459_p7, %p6453_p2 }
  0x2b   : > { %6463 = shalt.err (!%p6460_p9)
}
  0x2c   : > { %s6732_s10 = smov 128   ;;  %s6733_s13 = smov 8  }
  0x2d   : > { %6236 = dma.hbm_to_vmem [thread:$0]  (!%p6841_p6), %s10445_s1, 512, %s6834_s11, [#allocation6], %s6732_s10, %s6732_s10, %s6733_s13  }
  0x2e   : > { %s10447_s3 = sld [smem:[#allocation86_spill]] }
  0x34   : > { %s6464_s19 = scalar_lea.hbm %s10447_s3, 288 }
  0x35   : > { %p6465_p5 = scmp.ne.s32.totalorder %s10447_s3, %s6464_s19  ;;  %p6471_p12 = scmp.lt.u32.totalorder %s6464_s19, %s10447_s3 }
  0x37   : > { %p6467_p10 = pnand %p6465_p5, %p6855_p8 }
  0x39   : > { %p6468_p11 = pneg %p6467_p10 }
  0x3b   : > { %p6473_p13 = pnand %p6471_p12, %p6468_p11 }
  0x3d   : > { %6476 = shalt.err (!%p6473_p13)
}
  0x3e   : > { %s6477_s11 = scalar_lea.vmem %s6845_s14, 288  ;;  %p6485_p7 = scmp.lt.s32.totalorder %s6845_s14, %s6845_s14 }
  0x3f   : > { %p6478_p0 = scmp.ne.s32.totalorder %s6845_s14, %s6477_s11  ;;  %p6486_p9 = scmp.lt.s32.totalorder %s6477_s11, %s6477_s11 }
  0x41   : > { %p6480_p2 = pnand %p6478_p0, %p6855_p8  ;;  %p6487_p5 = por %p6486_p9, %p6485_p7 }
  0x43   : > { %p6481_p4 = pneg %p6480_p2 }
  0x45   : > { %p6488_p10 = pnand %p6487_p5, %p6481_p4 }
  0x47   : > { %6491 = shalt.err (!%p6488_p10)
}
  0x48   : > { %s6734_s10 = smov 32   ;;  %s6735_s30 = smov 2  }
  0x49   : > { %6242 = dma.hbm_to_vmem [thread:$0]  (!%p6841_p6), %s10447_s3, 288, %s6845_s14, [#allocation9], %s6734_s10, %s6734_s10, %s6735_s30  }
  0x4a   : > { %s6736_s16 = smov [#allocation11]   ;;  %s6492_s21 = scalar_lea.hbm %s10344_s5, 1536 }
  0x4b   : > { %s283_s17 = sshll.u32 %s6736_s16, 4  ;;  %p6493_p11 = scmp.ne.s32.totalorder %s10344_s5, %s6492_s21  ;;  %s284_s17 = int_to_ptr.vmem [resolvable:$true] %s283_s17 }
  0x4c   : > { %p6499_p0 = scmp.lt.u32.totalorder %s6492_s21, %s10344_s5 }
  0x4d   : > { %p6495_p12 = pnand %p6493_p11, %p6855_p8 }
  0x4f   : > { %p6496_p13 = pneg %p6495_p12 }
  0x51   : > { %p6501_p2 = pnand %p6499_p0, %p6496_p13 }
  0x53   : > { %6504 = shalt.err (!%p6501_p2)
}
  0x54   : > { %s6505_s14 = scalar_lea.vmem %s284_s17, 1536  ;;  %p6513_p5 = scmp.lt.s32.totalorder %s284_s17, %s284_s17 }
  0x55   : > { %p6506_p4 = scmp.ne.s32.totalorder %s284_s17, %s6505_s14  ;;  %p6514_p10 = scmp.lt.s32.totalorder %s6505_s14, %s6505_s14 }
  0x57   : > { %p6508_p7 = pnand %p6506_p4, %p6855_p8  ;;  %p6515_p3 = por %p6514_p10, %p6513_p5 }
  0x59   : > { %p6509_p9 = pneg %p6508_p7 }
  0x5b   : > { %p6516_p1 = pnand %p6515_p3, %p6509_p9 }
  0x5d   : > { %6519 = shalt.err (!%p6516_p1)
}
  0x5e   : > { %s10352_s10 = smov 64   ;;  %s10353_s30 = smov 4  }
  0x5f   : > { %6248 = dma.hbm_to_vmem [thread:$0]  (!%p6841_p6), %s10344_s5, 1536, %s284_s17, [#allocation12], %s10352_s10, %s10352_s10, %s10353_s30  }
  0x60   : > { %s6739_s15 = smov [#allocation7]   ;;  %s6740_s18 = smov [#allocation10]  }
  0x61   : > { %s249_s16 = sshll.u32 %s6739_s15, 4  ;;  %s273_s19 = sshll.u32 %s6740_s18, 4  ;;  %s250_s16 = int_to_ptr.vmem [resolvable:$true] %s249_s16  ;;  %s274_s19 = int_to_ptr.vmem [resolvable:$true] %s273_s19 }
  0x62   : > { %s6520_s23 = scalar_lea.hbm %s10341_s2, 32 }
  0x63   : > { %p6521_p1 = scmp.ne.s32.totalorder %s10341_s2, %s6520_s23  ;;  %p6527_p12 = scmp.lt.u32.totalorder %s6520_s23, %s10341_s2 }
  0x65   : > { %p6523_p3 = pnand %p6521_p1, %p6855_p8 }
  0x67   : > { %p6524_p11 = pneg %p6523_p3 }
  0x69   : > { %p6529_p13 = pnand %p6527_p12, %p6524_p11 }
  0x6b   : > { %6532 = shalt.err (!%p6529_p13)
}
  0x6c   : > { %s6533_s17 = scalar_lea.vmem %s250_s16, 32  ;;  %p6541_p7 = scmp.lt.s32.totalorder %s250_s16, %s250_s16 }
  0x6d   : > { %p6534_p0 = scmp.ne.s32.totalorder %s250_s16, %s6533_s17  ;;  %p6542_p9 = scmp.lt.s32.totalorder %s6533_s17, %s6533_s17 }
  0x6f   : > { %p6536_p2 = pnand %p6534_p0, %p6855_p8  ;;  %p6543_p5 = por %p6542_p9, %p6541_p7 }
  0x71   : > { %p6537_p4 = pneg %p6536_p2 }
  0x73   : > { %p6544_p10 = pnand %p6543_p5, %p6537_p4 }
  0x75   : > { %6547 = shalt.err (!%p6544_p10)
}
  0x76   : > { %6239 = dma.hbm_to_vmem [thread:$0]  (!%p6841_p6), %s10341_s2, 32, %s250_s16, [#allocation6]  }
  0x77   : > { %s6548_s15 = scalar_lea.hbm %s10343_s4, 32 }
  0x78   : > { %p6549_p1 = scmp.ne.s32.totalorder %s10343_s4, %s6548_s15  ;;  %p6555_p12 = scmp.lt.u32.totalorder %s6548_s15, %s10343_s4 }
  0x7a   : > { %p6551_p3 = pnand %p6549_p1, %p6855_p8 }
  0x7c   : > { %p6552_p11 = pneg %p6551_p3 }
  0x7e   : > { %p6557_p13 = pnand %p6555_p12, %p6552_p11 }
  0x80   : > { %6560 = shalt.err (!%p6557_p13)
}
  0x81   : > { %s6561_s11 = scalar_lea.vmem %s274_s19, 32  ;;  %p6569_p7 = scmp.lt.s32.totalorder %s274_s19, %s274_s19 }
  0x82   : > { %p6562_p0 = scmp.ne.s32.totalorder %s274_s19, %s6561_s11  ;;  %p6570_p9 = scmp.lt.s32.totalorder %s6561_s11, %s6561_s11 }
  0x84   : > { %p6564_p2 = pnand %p6562_p0, %p6855_p8  ;;  %p6571_p5 = por %p6570_p9, %p6569_p7 }
  0x86   : > { %p6565_p4 = pneg %p6564_p2 }
  0x88   : > { %p6572_p10 = pnand %p6571_p5, %p6565_p4 }
  0x8a   : > { %6575 = shalt.err (!%p6572_p10)
}
  0x8b   : > { %6245 = dma.hbm_to_vmem [thread:$0]  (!%p6841_p6), %s10343_s4, 32, %s274_s19, [#allocation9]  }
  0x8c   : > { %s6741_s17 = smov [#allocation13]   ;;  %s6576_s7 = scalar_lea.hbm %s10345_s6, 16 }
  0x8d   : > { %s297_s1 = sshll.u32 %s6741_s17, 4  ;;  %p6577_p1 = scmp.ne.s32.totalorder %s10345_s6, %s6576_s7  ;;  %s298_s1 = int_to_ptr.vmem [resolvable:$true] %s297_s1 }
  0x8e   : > { %p6583_p12 = scmp.lt.u32.totalorder %s6576_s7, %s10345_s6 }
  0x8f   : > { %p6579_p3 = pnand %p6577_p1, %p6855_p8 }
  0x91   : > { %p6580_p11 = pneg %p6579_p3 }
  0x93   : > { %p6585_p13 = pnand %p6583_p12, %p6580_p11 }
  0x95   : > { %6588 = shalt.err (!%p6585_p13)
}
  0x96   : > { %s6589_s19 = scalar_lea.vmem %s298_s1, 16  ;;  %s6596_s23 = scalar_lea.vmem %s298_s1, 32 }
  0x97   : > { %p6590_p0 = scmp.ne.s32.totalorder %s298_s1, %s6589_s19  ;;  %p6597_p7 = scmp.lt.s32.totalorder %s298_s1, %s298_s1 }
  0x98   : > { %p6598_p9 = scmp.lt.s32.totalorder %s6596_s23, %s6589_s19 }
  0x99   : > { %p6592_p2 = pnand %p6590_p0, %p6855_p8 }
  0x9a   : > { %p6599_p5 = por %p6598_p9, %p6597_p7 }
  0x9b   : > { %p6593_p4 = pneg %p6592_p2 }
  0x9d   : > { %p6600_p10 = pnand %p6599_p5, %p6593_p4 }
  0x9f   : > { %6603 = shalt.err (!%p6600_p10)
}
  0xa0   : > { %6251 = dma.hbm_to_vmem [thread:$0]  (!%p6841_p6), %s10345_s6, 16, %s298_s1, [#allocation12]  }
  0xa1   : > { %s5883_s20 = sadd.s32 4294967294, %s6728_s29   ;;  %s38_s14 = sadd.s32 1, %s6724_s28 }
  0xa2   : > { %p40_p8 = scmp.ge.s32.totalorder %s38_s14, 2  ;;  %s45_s12 = sadd.s32 1, %s6716_s26 }
  0xa3   : > { %p52_p1 = scmp.ne.s32.totalorder %s6716_s26, %s6712_s25  ;;  %p53_p3 = scmp.eq.s32.totalorder %s6728_s29, 0 }
  0xa4   : > { %s11004_s14 = smov (%p40_p8, %s38_s14), 0  ;;  %p58_p12 = scmp.ne.s32.totalorder %s6712_s25, %s6708_s24 }
  0xa5   : > { %p6982_p11 = por %p53_p3, %p52_p1  ;;  %s42_s1 = ssub.s32 %s6724_s28, %s11004_s14 }
  0xa6   : > { %s10449_s13 = sadd.s32 4294967295, %s6728_s29   ;;  %p43_p13 = scmp.eq.s32.totalorder %s42_s1, 0 }
  0xa7   : > { %p210_p6 = scmp.eq.s32.totalorder %s10449_s13, 1  ;;  %p10450_p0 = scmp.ne.s32.totalorder %s10442_s8, 0 }
  0xa8   : > { %p216_p7 = scmp.eq.s32.totalorder %s5883_s20, 1  ;;  %p6266_p5 = scmp.lt.s32.totalorder %s6728_s29, 2 }
  0xa9   : > { %p6994_p2 = por %p10450_p0, %p58_p12  ;;  %p6998_p4 = por %p210_p6, %p52_p1 }
  0xaa   : > { %s7003_s15 = scalar_select %p43_p13, %s6716_s26, %s45_s12  }
  0xab   : > { %s10452_s7 = scalar_select %p6998_p4, 1, 0 }
  0xac   : > { %p7005_p9 = por %p216_p7, %p58_p12  ;;  %s308_s21 = sand.u32 1, %s6716_s26  }
  0xad   : > { %s6203_s22 = smul.u32 3456, %s6724_s28  ;;  %p7014_p10 = pnand %p6266_p5, %p6982_p11 }
  0xae   : > { %s10453_s18 = scalar_select %p7005_p9, 1, 0 }
  0xaf   : > { %s6202_s19 = smul.u32 216, %s308_s21  ;;  %s7021_s20 = scalar_lea.hbm %s10339_s0, %s6203_s22 }
  0xb0   : > { %s7025_s17 = scalar_lea.sflag [#allocation3], %s308_s21  ;;  %s6604_s13 = scalar_lea.hbm %s7021_s20, 3456 }
  0xb1   : > { %s312_s12 = scalar_lea.vmem [#allocation2], %s6202_s19  ;;  %p6605_p8 = scmp.ne.s32.totalorder %s7021_s20, %s6604_s13 }
  0xb2   : > { %s319_s1 = sshll.u32 %s312_s12, 4  ;;  %p6606_p1 = pneg %p7014_p10  ;;  %s7023_s1 = int_to_ptr.vmem [resolvable:$true] %s319_s1 }
  0xb3   : > { %s6609_s16 = scalar_lea.hbm %s10339_s0, 6912  ;;  %p6610_p12 = scmp.lt.u32.totalorder %s7021_s20, %s10339_s0 }
  0xb4   : > { %p6607_p3 = pnand %p6606_p1, %p6605_p8  ;;  %p6611_p6 = scmp.lt.u32.totalorder %s6609_s16, %s6604_s13 }
  0xb5   : > { %p6613_p0 = scmp.lt.u32.totalorder %s6604_s13, %s7021_s20 }
  0xb6   : > { %p6608_p11 = pneg %p6607_p3  ;;  %p6612_p13 = por %p6611_p6, %p6610_p12 }
  0xb8   : > { %p6614_p7 = por %p6613_p0, %p6612_p13 }
  0xba   : > { %p6615_p5 = pnand %p6614_p7, %p6608_p11 }
  0xbc   : > { %6618 = shalt.err (!%p6615_p5)
}
  0xbd   : > { %s6619_s21 = scalar_lea.vmem %s7023_s1, 3456  ;;  %s6742_s19 = smov [#allocation2]  }
  0xbe   : > { %p6620_p8 = scmp.ne.s32.totalorder %s7023_s1, %s6619_s21  ;;  %s6624_s12 = sshll.u32 %s6742_s19, 4  ;;  %s6625_s12 = int_to_ptr.vmem [resolvable:$false] %s6624_s12 }
  0xbf   : > { %s6626_s10 = scalar_lea.vmem %s6625_s12, 6912  ;;  %p6627_p4 = scmp.lt.s32.totalorder %s7023_s1, %s6625_s12 }
  0xc0   : > { %p6622_p3 = pnand %p6620_p8, %p6606_p1  ;;  %p6628_p12 = scmp.lt.s32.totalorder %s6626_s10, %s6619_s21 }
  0xc2   : > { %p6623_p9 = pneg %p6622_p3  ;;  %p6629_p6 = por %p6628_p12, %p6627_p4 }
  0xc4   : > { %p6630_p13 = pnand %p6629_p6, %p6623_p9 }
  0xc6   : > { %6633 = shalt.err (!%p6630_p13)
}
  0xc7   : > { %s10455_s30 = smov 4   ;;  %s10456_s13 = smov 64  }
  0xc8   : > { %6255 = dma.hbm_to_vmem [thread:$0]  (!%p7014_p10), %s7021_s20, 3456, %s7023_s1, %s7025_s17, %s10456_s13, %s10456_s13, %s10455_s30  }
  0xc9   : > { %p10457_p1 = scmp.ne.s32.totalorder %s10443_s9, 0 }
  0xcb   : > { %331 = sbr.rel (%p10457_p1) target bundleno = 1279 (0x4ff), region = 48 }
  0xd2   : > { %s7059_s22 = sand.u32 1, %s6712_s25  }
  0xd3   : > { %s6204_s11 = smul.u32 216, %s7059_s22  ;;  %s334_s16 = scalar_lea.sflag [#allocation3], %s7059_s22 }
  0xd5   : > { %s7063_s21 = scalar_lea.vmem [#allocation2], %s6204_s11 }
  0xd6   : > { %6687 = dma.done.wait (%p6994_p2), %s334_s16, 3456  }
  0xd7   : > { %6689 = vsyncadd (%p6994_p2), %s334_s16, 4294963840  ;;  %p10458_p4 = scmp.ne.s32.totalorder %s10442_s8, 0 }
  0xd9   : > { %6691 = dma.done.wait (%p10458_p4), [#allocation6], 544  }
  0xda   : > { %6693 = vsyncadd (%p10458_p4), [#allocation6], 4294966752 }
  0xdb   : > { %6695 = dma.done.wait (%p10458_p4), [#allocation9], 320  }
  0xdc   : > { %6697 = vsyncadd (%p10458_p4), [#allocation9], 4294966976 }
  0xdd   : > { %6699 = dma.done.wait (%p10458_p4), [#allocation12], 1552  }
  0xde   : > { %6701 = vsyncadd (%p10458_p4), [#allocation12], 4294965744  ;;  %v10355_v0 = vmov 0   ;;  %v6341_v1 = vld [vmem:[#allocation5 + $0x4] ss:$8 sps:$4 sm:$0xff]   ;;  %vm624_vm0 = vcmask 261120   ;;  %v459_v42 = vlaneseq }
  0xdf   : > { %738 = vmatprep.mubr.bf16.mxu0 %v10355_v0  ;;  %5257 = vmatprep.subr.bf16.mxu1 %v10355_v0  ;;  %v6343_v2 = vld [vmem:[#allocation5] ss:$8 sps:$4 sm:$0xff]   ;;  %v6344_v3 = vld [vmem:[#allocation5 + $0x14] ss:$8 sps:$4 sm:$0xff]   ;;  %v6346_v4 = vld [vmem:[#allocation5 + $0x10] ss:$8 sps:$4 sm:$0xff]  }
  0xe0   : > { %706 = vmatprep.subr.bf16.mxu0 %v6341_v1  ;;  %v6347_v5 = vld [vmem:[%s7063_s21] sm:$0xff]   ;;  %v401_v6 = vld [vmem:[%s7063_s21 + $0x8] sm:$0xff]   ;;  %v403_v7 = vld [vmem:[%s7063_s21 + $0x10] sm:$0xff]   ;;  %v6744_v40 = vmov 1966171168   ;;  %v7167_v46 = vshrl.u32 %v459_v42, 7 }
  0xe1   : > { %707 = vmatpush1.bf16.msra.mxu0 %v6343_v2  ;;  %v405_v8 = vld [vmem:[%s7063_s21 + $0x18] sm:$0xff]   ;;  %v407_v9 = vld [vmem:[%s7063_s21 + $0x20] sm:$0xff]   ;;  %v409_v10 = vld [vmem:[%s7063_s21 + $0x28] sm:$0xff]   ;;  %v1974_v41 = vunpack.c.l.s4 %v6744_v40  ;;  %vm2720_vm1 = vcmask 1042432   ;;  %vm2721_vm2 = vcmask 1046532   ;;  %vm6745_vm5 = vmmov 0  }
  0xe2   : > { %708 = vmatprep.subr.bf16.mxu0 %v6344_v3  ;;  %v411_v11 = vld [vmem:[%s7063_s21 + $0x30] sm:$0xff]   ;;  %v413_v12 = vld [vmem:[%s7063_s21 + $0x38] sm:$0xff]   ;;  %v415_v13 = vld [vmem:[%s7063_s21 + $0x40] sm:$0xff]   ;;  %v7179_v59 = vsub.s32 0, %v7167_v46  ;;  %vm2130_vm3 = vsmask.f32 3328 }
  0xe3   : > { %v417_v14 = vld [vmem:[%s7063_s21 + $0x48] sm:$0xff]   ;;  %v419_v15 = vld [vmem:[%s7063_s21 + $0x50] sm:$0xff]   ;;  %v421_v16 = vld [vmem:[%s7063_s21 + $0x58] sm:$0xff]   ;;  %v1975_v44 = vunpack.c.0.s8 %v1974_v41  ;;  %vm2131_vm4 = vsmask.f32 7440  ;;  %vm1625_vm7 = vcmp.ge.s32.totalorder %v7167_v46, 1 }
  0xe4   : > { %v423_v17 = vld [vmem:[%s7063_s21 + $0x60] sm:$0xff]   ;;  %v425_v18 = vld [vmem:[%s7063_s21 + $0x68] sm:$0xff]   ;;  %v427_v20 = vld [vmem:[%s7063_s21 + $0x70] sm:$0xff]   ;;  %vm6746_vm12 = vmmov 1   ;;  %vm5208_vm15 = vcmask 523264   ;;  %s5900_s8 = sshll.u32 %s7059_s22, 8 }
  0xe5   : > { %709 = vmatpush1.bf16.msra.mxu0 %v6346_v4  ;;  %v6374_v19 = vld [vmem:[#allocation11] sm:$0xff]   ;;  %v429_v21 = vld [vmem:[%s7063_s21 + $0x78] sm:$0xff]   ;;  %v7170_v50 = vsub.s32 %v1975_v44, %v7167_v46  ;;  %v465_v4 = vsub.s32 1, %v7167_v46  ;;  %vm7238_vm6 = vmpackc.low %vm6745_vm5, %vm6745_vm5  ;;  %s10119_s9 = scalar_lea.vmem [#allocation14], %s5900_s8  ;;  %s6201_s3 = sshll.u32 %s6720_s27, 12 }
  0xe6   : > { %5258 = vmatpush1.bf16.msra.mxu1 %v6374_v19  ;;  %v6375_v22 = vld [vmem:[#allocation11 + $0x8] sm:$0xff]   ;;  %v6376_v23 = vld [vmem:[#allocation11 + $0x10] sm:$0xff]   ;;  %v6377_v25 = vld [vmem:[#allocation11 + $0x18] sm:$0xff]   ;;  %s5739_s23 = sshll.u32 %s10119_s9, 4  ;;  %s10994_s17 = sld [smem:[#allocation87_spill]]  ;;  %s10288_s23 = int_to_ptr.vmem [resolvable:$true] %s5739_s23 }
  0xe7   : > { %5259 = vmatprep.subr.bf16.mxu1 %v10355_v0  ;;  %v431_v24 = vld [vmem:[%s7063_s21 + $0x80] sm:$0xff]   ;;  %v433_v26 = vld [vmem:[%s7063_s21 + $0x88] sm:$0xff]   ;;  %v435_v28 = vld [vmem:[%s7063_s21 + $0x90] sm:$0xff]   ;;  %s5724_s27 = scalar_lea.sflag [#allocation4], %s7059_s22  ;;  %s6634_s12 = scalar_lea.vmem %s10288_s23, 4096 }
  0xe8   : > { %5932 = vmatmul.mubr.msk.bf16.vlgmr.msra.gmra.mrb[0].mxu0 %vm624_vm0, %v6347_v5  ;;  %v6378_v27 = vld [vmem:[#allocation11 + $0x20] sm:$0xff]   ;;  %v6379_v29 = vld [vmem:[#allocation11 + $0x28] sm:$0xff]   ;;  %v6380_v31 = vld [vmem:[#allocation11 + $0x30] sm:$0xff]   ;;  %p6635_p2 = scmp.ne.s32.totalorder %s10288_s23, %s6634_s12  ;;  %p10995_p9 = scmp.ne.s32.totalorder %s10452_s7, 0 }
  0xe9   : > { %748 = vmatprep.mubr.bf16.mxu0 %v10355_v0  ;;  %v437_v30 = vld [vmem:[%s7063_s21 + $0x98] sm:$0xff]   ;;  %v439_v32 = vld [vmem:[%s7063_s21 + $0xa0] sm:$0xff]   ;;  %v441_v35 = vld [vmem:[%s7063_s21 + $0xa8] sm:$0xff]   ;;  %s6748_s10 = smov [#allocation14]  }
  0xea   : > { %5260 = vmatpush1.bf16.msra.mxu1 %v6375_v22  ;;  %v6381_v33 = vld [vmem:[#allocation11 + $0x38] sm:$0xff]   ;;  %v6382_v34 = vld [vmem:[#allocation11 + $0x40] sm:$0xff]   ;;  %v6383_v37 = vld [vmem:[#allocation11 + $0x48] sm:$0xff]   ;;  %p6636_p10 = pnand %p6635_p2, %p10995_p9  ;;  %s6638_s30 = sshll.u32 %s6748_s10, 4  ;;  %s6639_s30 = int_to_ptr.vmem [resolvable:$false] %s6638_s30 }
  0xeb   : > { %5261 = vmatprep.subr.bf16.mxu1 %v10355_v0  ;;  %v443_v36 = vld [vmem:[%s7063_s21 + $0xb0] sm:$0xff]   ;;  %v445_v39 = vld [vmem:[%s7063_s21 + $0xb8] sm:$0xff]   ;;  %v447_v43 = vld [vmem:[%s7063_s21 + $0xc0] sm:$0xff]   ;;  %s6640_s13 = scalar_lea.vmem %s6639_s30, 8192  ;;  %p6641_p0 = scmp.lt.s32.totalorder %s10288_s23, %s6639_s30 }
  0xec   : > { %v6384_v38 = vld [vmem:[#allocation11 + $0x50] sm:$0xff]   ;;  %v6013_v45 = vld.sshfl [vmem:[#allocation8] sm:$0x11 pattern:$0x75316420]  ;;  %v6385_v47 = vld [vmem:[#allocation11 + $0x58] sm:$0xff]   ;;  %s10286_s19 = scalar_lea.hbm %s10994_s17, %s6201_s3  ;;  %p6637_p11 = pneg %p6636_p10 }
  0xed   : > { %v6015_v48 = vld.sshfl [vmem:[#allocation8 + $0x2] sm:$0x11 pattern:$0x75316420]  ;;  %v1972_v49 = vcombine.high %v6013_v45, %v6013_v45  ;;  %v449_v53 = vld [vmem:[%s7063_s21 + $0xc8] sm:$0xff]   ;;  %v1979_v54 = vrot.slane %v6013_v45, %v7170_v50  ;;  %vm7279_vm8 = vmor %vm2720_vm1, %vm2721_vm2  ;;  %vm5514_vm1 = vcmask 1046528   ;;  %p6642_p7 = scmp.lt.s32.totalorder %s6640_s13, %s6634_s12 }
  0xee   : > { %5262 = vmatpush1.bf16.msra.mxu1 %v6376_v23  ;;  %v6017_v51 = vld.sshfl [vmem:[#allocation8 + $0x4] sm:$0x11 pattern:$0x75316420]  ;;  %v2047_v52 = vcombine.high %v6015_v48, %v6015_v48  ;;  %v2054_v57 = vrot.slane %v6015_v48, %v7170_v50  ;;  %v457_v63 = vld [vmem:[#allocation7] sm:$0x3]  ;;  %vm7285_vm9 = vmor %vm2130_vm3, %vm2131_vm4 }
  0xef   : > { %5263 = vmatprep.subr.bf16.mxu1 %v10355_v0  ;;  %v1986_v55 = vrot.slane %v1972_v49, %v7170_v50  ;;  %v2589_v56 = vcombine.high %v6017_v51, %v6017_v51  ;;  %v6035_v58 = vld.sshfl [vmem:[#allocation8 + $0x6] sm:$0x11 pattern:$0x75316420]  ;;  %v2596_v61 = vrot.slane %v6017_v51, %v7170_v50  ;;  %v1988_v1 = vpack.i.b16 %v1979_v54, %v1979_v54  ;;  %vm7297_vm10 = vmpackc.low %vm1625_vm7, %vm1625_vm7  ;;  %p6643_p5 = por %p6642_p7, %p6641_p0 }
  0xf0   : > { %5933 = vmatmul.mubr.msk.bf16.gmra.mrb[4].mxu0 %vm624_vm0, %v401_v6  ;;  %v2061_v60 = vrot.slane %v2047_v52, %v7170_v50  ;;  %v6037_v62 = vld.sshfl [vmem:[#allocation8 + $0x8] sm:$0x11 pattern:$0x75316420]  ;;  %v2907_v6 = vcombine.high %v6035_v58, %v6035_v58  ;;  %v7192_v19 = vrot.slane %v457_v63, %v465_v4  ;;  %vm7342_vm13 = vmpackc.low %vm6746_vm12, %vm6746_vm12 }
  0xf1   : > { %758 = vmatprep.mubr.bf16.mxu0 %v10355_v0  ;;  %v1995_v2 = vpack.i.b16 %v1986_v55, %v1986_v55  ;;  %v2603_v3 = vrot.slane %v2589_v56, %v7170_v50  ;;  %v6039_v5 = vld.sshfl [vmem:[#allocation8 + $0xa] sm:$0x11 pattern:$0x75316420]  ;;  %p6644_p8 = pnand %p6643_p5, %p6637_p11 }
  0xf2   : > { %5264 = vmatpush1.bf16.msra.mxu1 %v6377_v25  ;;  %v6079_v23 = vld.sshfl [vmem:[#allocation10] sm:$0x11 pattern:$0x75316420]  ;;  %v3021_v25 = vrot.slane %v6037_v62, %v7170_v50 }
  0xf3   : > { %5265 = vmatprep.subr.bf16.mxu1 %v10355_v0 }
  0xf4   : > { %v3030_v41 = vpack.i.b16 %v3021_v25, %v3021_v25 }
  0xf6   : > { %5266 = vmatpush1.bf16.msra.mxu1 %v6378_v27 }
  0xf7   : > { %5267 = vmatprep.subr.bf16.mxu1 %v10355_v0 }
  0xf8   : > { %5934 = vmatmul.mubr.msk.bf16.gmra.mrb[8].mxu0 %vm624_vm0, %v403_v7  ;;  %v2063_v7 = vpack.i.b16 %v2054_v57, %v2054_v57 }
  0xf9   : > { %768 = vmatprep.mubr.bf16.mxu0 %v10355_v0 }
  0xfa   : > { %5268 = vmatpush1.bf16.msra.mxu1 %v6379_v29 }
  0xfb   : > { %5269 = vmatprep.subr.bf16.mxu1 %v10355_v0 }
  0xfe   : > { %5270 = vmatpush1.bf16.msra.mxu1 %v6380_v31  ;;  %v3560_v31 = vrot.slane %v6039_v5, %v7170_v50 }
  0xff   : > { %5271 = vmatprep.subr.bf16.mxu1 %v10355_v0 }
 0x100   : > { %5935 = vmatmul.mubr.msk.bf16.gmra.mrb[12].mxu0 %vm624_vm0, %v405_v8  ;;  %v6057_v8 = vld.sshfl [vmem:[#allocation8 + $0xc] sm:$0x11 pattern:$0x75316420] }
 0x101   : > { %778 = vmatprep.mubr.bf16.mxu0 %v10355_v0  ;;  %v3868_v22 = vcombine.high %v6057_v8, %v6057_v8 }
 0x102   : > { %5272 = vmatpush1.bf16.msra.mxu1 %v6381_v33 }
 0x103   : > { %5273 = vmatprep.subr.bf16.mxu1 %v10355_v0  ;;  %v3882_v40 = vrot.slane %v3868_v22, %v7170_v50 }
 0x106   : > { %5274 = vmatpush1.bf16.msra.mxu1 %v6382_v34 }
 0x107   : > { %5275 = vmatprep.subr.bf16.mxu1 %v10355_v0 }
 0x108   : > { %5936 = vmatmul.mubr.msk.bf16.gmra.mrb[16].mxu0 %vm624_vm0, %v407_v9  ;;  %v3014_v9 = vcombine.high %v6037_v62, %v6037_v62 }
 0x109   : > { %788 = vmatprep.mubr.bf16.mxu0 %v10355_v0 }
 0x10a   : > { %5276 = vmatpush1.bf16.msra.mxu1 %v6383_v37 }
 0x10b   : > { %5277 = vmatprep.subr.bf16.mxu1 %v10355_v0 }
 0x10e   : > { %5278 = vmatpush1.bf16.msra.mxu1 %v6384_v38 }
 0x10f   : > { %5279 = vmatprep.subr.bf16.mxu1 %v10355_v0 }
 0x110   : > { %5937 = vmatmul.mubr.msk.bf16.gmra.mrb[20].mxu0 %vm624_vm0, %v409_v10  ;;  %v7187_v10 = vrot.slane %v457_v63, %v7179_v59 }
 0x111   : > { %798 = vmatprep.mubr.bf16.mxu0 %v10355_v0 }
 0x112   : > { %5280 = vmatpush1.bf16.msra.mxu1 %v6385_v47  ;;  %v3569_v47 = vpack.i.b16 %v3560_v31, %v3560_v31 }
 0x114   : > { %v3574_v4 = vrot.slane %v3569_v47, %v7179_v59 }
 0x118   : > { %5938 = vmatmul.mubr.msk.bf16.gmra.mrb[24].mxu0 %vm624_vm0, %v411_v11  ;;  %v2070_v11 = vpack.i.b16 %v2061_v60, %v2061_v60 }
 0x119   : > { %808 = vmatprep.mubr.bf16.mxu0 %v10355_v0 }
 0x11a   : > { %v2075_v29 = vrot.slane %v2070_v11, %v7179_v59 }
 0x120   : > { %5939 = vmatmul.mubr.msk.bf16.gmra.mrb[28].mxu0 %vm624_vm0, %v413_v12  ;;  %v2605_v12 = vpack.i.b16 %v2596_v61, %v2596_v61  ;;  %v3035_v61 = vrot.slane %v3030_v41, %v7179_v59 }
 0x121   : > { %818 = vmatprep.mubr.bf16.mxu0 %v10355_v0 }
 0x128   : > { %5940 = vmatmul.mubr.msk.bf16.gmra.mrb[32].mxu0 %vm624_vm0, %v415_v13  ;;  %v6059_v13 = vld.sshfl [vmem:[#allocation8 + $0xe] sm:$0x11 pattern:$0x75316420] }
 0x129   : > { %828 = vmatprep.mubr.bf16.mxu0 %v10355_v0  ;;  %v3975_v27 = vcombine.high %v6059_v13, %v6059_v13 }
 0x12b   : > { %v3989_v44 = vrot.slane %v3975_v27, %v7170_v50 }
 0x130   : > { %5941 = vmatmul.mubr.msk.bf16.gmra.mrb[36].mxu0 %vm624_vm0, %v417_v14  ;;  %v1993_v14 = vrot.slane %v1988_v1, %v7179_v59  ;;  %v3998_v1 = vpack.i.b16 %v3989_v44, %v3989_v44 }
 0x131   : > { %838 = vmatprep.mubr.bf16.mxu0 %v10355_v0 }
 0x138   : > { %5942 = vmatmul.mubr.msk.bf16.gmra.mrb[40].mxu0 %vm624_vm0, %v419_v15  ;;  %v2000_v15 = vrot.slane %v1995_v2, %v7179_v59 }
 0x139   : > { %848 = vmatprep.mubr.bf16.mxu0 %v10355_v0 }
 0x13a   : > { %v7203_v33 = vcombine.low %v1993_v14, %v2000_v15 }
 0x140   : > { %5943 = vmatmul.mubr.msk.bf16.gmra.mrb[44].mxu0 %vm624_vm0, %v421_v16  ;;  %v2612_v16 = vpack.i.b16 %v2603_v3, %v2603_v3 }
 0x141   : > { %858 = vmatprep.mubr.bf16.mxu0 %v10355_v0 }
 0x142   : > { %v2617_v34 = vrot.slane %v2612_v16, %v7179_v59 }
 0x148   : > { %5944 = vmatmul.mubr.msk.bf16.gmra.mrb[48].mxu0 %vm624_vm0, %v423_v17  ;;  %v6061_v17 = vld.sshfl [vmem:[#allocation8 + $0x10] sm:$0x11 pattern:$0x75316420] }
 0x149   : > { %868 = vmatprep.mubr.bf16.mxu0 %v10355_v0  ;;  %v4521_v48 = vrot.slane %v6061_v17, %v7170_v50 }
 0x150   : > { %5945 = vmatmul.mubr.msk.bf16.gmra.mrb[52].mxu0 %vm624_vm0, %v425_v18  ;;  %v3553_v18 = vcombine.high %v6039_v5, %v6039_v5  ;;  %v4530_v5 = vpack.i.b16 %v4521_v48, %v4521_v48 }
 0x151   : > { %878 = vmatprep.mubr.bf16.mxu0 %v10355_v0 }
 0x158   : > { %5946 = vmatmul.mubr.msk.bf16.gmra.mrb[56].mxu0 %vm624_vm0, %v427_v20  ;;  %v2914_v20 = vrot.slane %v6035_v58, %v7170_v50  ;;  %v3891_v58 = vpack.i.b16 %v3882_v40, %v3882_v40 }
 0x159   : > { %888 = vmatprep.mubr.bf16.mxu0 %v10355_v0 }
 0x15a   : > { %v2923_v37 = vpack.i.b16 %v2914_v20, %v2914_v20  ;;  %v3896_v16 = vrot.slane %v3891_v58, %v7179_v59 }
 0x15c   : > { %v2928_v55 = vrot.slane %v2923_v37, %v7179_v59 }
 0x160   : > { %5947 = vmatmul.mubr.msk.bf16.gmra.mrb[60].mxu0 %vm624_vm0, %v429_v21  ;;  %v2921_v21 = vrot.slane %v2907_v6, %v7170_v50 }
 0x161   : > { %898 = vmatprep.mubr.bf16.mxu0 %v10355_v0 }
 0x162   : > { %v2930_v38 = vpack.i.b16 %v2921_v21, %v2921_v21  ;;  %v4003_v21 = vrot.slane %v3998_v1, %v7179_v59 }
 0x164   : > { %v2935_v56 = vrot.slane %v2930_v38, %v7179_v59 }
 0x168   : > { %5948 = vmatmul.mubr.msk.bf16.gmra.mrb[64].mxu0 %vm624_vm0, %v431_v24  ;;  %v2068_v24 = vrot.slane %v2063_v7, %v7179_v59 }
 0x169   : > { %908 = vmatprep.mubr.bf16.mxu0 %v10355_v0 }
 0x16a   : > { %v7212_v45 = vcombine.low %v2068_v24, %v2075_v29  ;;  %v4535_v24 = vrot.slane %v4530_v5, %v7179_v59 }
 0x170   : > { %5949 = vmatmul.mubr.msk.bf16.gmra.mrb[68].mxu0 %vm624_vm0, %v433_v26  ;;  %v3028_v26 = vrot.slane %v3014_v9, %v7170_v50 }
 0x171   : > { %918 = vmatprep.mubr.bf16.mxu0 %v10355_v0 }
 0x172   : > { %v3037_v42 = vpack.i.b16 %v3028_v26, %v3028_v26 }
 0x174   : > { %v3042_v62 = vrot.slane %v3037_v42, %v7179_v59 }
 0x178   : > { %5950 = vmatmul.mubr.msk.bf16.gmra.mrb[72].mxu0 %vm624_vm0, %v435_v28  ;;  %v6373_v28 = vld [vmem:[%s7063_s21 + $0xd0] sm:$0xff]  }
 0x179   : > { %928 = vmatprep.mubr.bf16.mxu0 %v10355_v0 }
 0x180   : > { %5951 = vmatmul.mubr.msk.bf16.gmra.mrb[76].mxu0 %vm624_vm0, %v437_v30  ;;  %v2610_v30 = vrot.slane %v2605_v12, %v7179_v59 }
 0x181   : > { %938 = vmatprep.mubr.bf16.mxu0 %v10355_v0 }
 0x182   : > { %v7216_v51 = vcombine.low %v2610_v30, %v2617_v34  ;;  %v10459_v30 = vmov 0  ;;  %v7245_v34 = vcombine.low %v3035_v61, %v3042_v62 }
 0x183   : > { %v10460_v30 = vsel %vm7238_vm6, 4294967295, %v10459_v30 }
 0x184   : > { %10461 = vst [vmem:[#allocation20_spill] sm:$0xff] %v10460_v30 }
 0x188   : > { %5952 = vmatmul.mubr.msk.bf16.gmra.mrb[80].mxu0 %vm624_vm0, %v439_v32  ;;  %v4514_v32 = vcombine.high %v6061_v17, %v6061_v17 }
 0x189   : > { %948 = vmatprep.mubr.bf16.mxu0 %v10355_v0 }
 0x18a   : > { %v4528_v49 = vrot.slane %v4514_v32, %v7170_v50  ;;  %v7243_v32 = vcombine.low %v2928_v55, %v2935_v56 }
 0x190   : > { %5953 = vmatmul.mubr.msk.bf16.gmra.mrb[84].mxu0 %vm624_vm0, %v441_v35  ;;  %v3567_v35 = vrot.slane %v3553_v18, %v7170_v50 }
 0x191   : > { %958 = vmatprep.mubr.bf16.mxu0 %v10355_v0 }
 0x192   : > { %v3576_v52 = vpack.i.b16 %v3567_v35, %v3567_v35 }
 0x198   : > { %5954 = vmatmul.mubr.msk.bf16.gmra.mrb[88].mxu0 %vm624_vm0, %v443_v36  ;;  %v4830_v36 = vcombine.high %v6079_v23, %v6079_v23 }
 0x199   : > { %968 = vmatprep.mubr.bf16.mxu0 %v10355_v0 }
 0x19a   : > { %v4844_v54 = vrot.slane %v4830_v36, %v7170_v50 }
 0x19c   : > { %v4853_v11 = vpack.i.b16 %v4844_v54, %v4844_v54 }
 0x19e   : > { %v4858_v29 = vrot.slane %v4853_v11, %v7179_v59 }
 0x1a0   : > { %5955 = vmatmul.mubr.msk.bf16.gmra.mrb[92].mxu0 %vm624_vm0, %v445_v39  ;;  %v3875_v39 = vrot.slane %v6057_v8, %v7170_v50  ;;  %v3581_v8 = vrot.slane %v3576_v52, %v7179_v59 }
 0x1a1   : > { %978 = vmatprep.mubr.bf16.mxu0 %v10355_v0 }
 0x1a2   : > { %v3884_v57 = vpack.i.b16 %v3875_v39, %v3875_v39  ;;  %v7247_v38 = vcombine.low %v3574_v4, %v3581_v8 }
 0x1a4   : > { %v3889_v15 = vrot.slane %v3884_v57, %v7179_v59 }
 0x1a6   : > { %v7249_v39 = vcombine.low %v3889_v15, %v3896_v16 }
 0x1a8   : > { %5956 = vmatmul.mubr.msk.bf16.gmra.mrb[96].mxu0 %vm624_vm0, %v447_v43  ;;  %v3982_v43 = vrot.slane %v6059_v13, %v7170_v50 }
 0x1a9   : > { %988 = vmatprep.mubr.bf16.mxu0 %v10355_v0 }
 0x1aa   : > { %v3991_v63 = vpack.i.b16 %v3982_v43, %v3982_v43  ;;  %v7257_v43 = vadd.s32 16, %v7167_v46 }
 0x1ac   : > { %v3996_v20 = vrot.slane %v3991_v63, %v7179_v59  ;;  %vm1684_vm11 = vcmp.le.s32.totalorder %v7257_v43, 16 }
 0x1ad   : > { %vm7369_vm14 = vmpackc.low %vm1684_vm11, %vm1684_vm11 }
 0x1ae   : > { %v7252_v41 = vcombine.low %v3996_v20, %v4003_v21 }
 0x1b0   : > { %5957 = vmatmul.mubr.msk.bf16.gmra.mrb[100].mxu0 %vm624_vm0, %v449_v53  ;;  %v4837_v53 = vrot.slane %v6079_v23, %v7170_v50  ;;  %v4537_v50 = vpack.i.b16 %v4528_v49, %v4528_v49 }
 0x1b1   : > { %998 = vmatprep.mubr.bf16.mxu0 %v10355_v0 }
 0x1b2   : > { %v4846_v9 = vpack.i.b16 %v4837_v53, %v4837_v53  ;;  %v4542_v25 = vrot.slane %v4537_v50, %v7179_v59 }
 0x1b4   : > { %v7254_v42 = vcombine.low %v4535_v24, %v4542_v25 }
 0x1b8   : > { %5958 = vmatmul.mubr.msk.bf16.gmra.mrb[104].mxu0 %vm624_vm0, %v6373_v28  ;;  %v4851_v28 = vrot.slane %v4846_v9, %v7179_v59 }
 0x1ba   : > { %v7262_v52 = vcombine.low %v4851_v28, %v4858_v29 }
 0x1bb   : > { %v740_v60 = vpop.f32.mrb[0].mxu0 }
 0x1bc   : > { %v741_v2 = vadd.f32 %v740_v60, %v7187_v10  ;;  %v742_v3 = vpop.f32.mrb[1].mxu0  ;;  %10462 = vst [vmem:[#allocation21_spill] sm:$0xff] %v7262_v52 }
 0x1bd   : > { %v743_v6 = vadd.f32 %v742_v3, %v7192_v19  ;;  %v744_v7 = vpop.f32.mrb[2].mxu0 }
 0x1be   : > { %v1009_v12 = vmax.f32 %v741_v2, 0.0  ;;  %v745_v13 = vadd.f32 %v744_v7, %v7187_v10  ;;  %v746_v14 = vpop.f32.mrb[3].mxu0 }
 0x1bf   : > { %v1010_v17 = vmax.f32 %v743_v6, 0.0  ;;  %v747_v18 = vadd.f32 %v746_v14, %v7192_v19 }
 0x1c0   : > { %v1117_v22 = vmin.f32 %v1009_v12, 6.0  ;;  %v1011_v23 = vmax.f32 %v745_v13, 0.0 }
 0x1c1   : > { %v1118_v26 = vmin.f32 %v1010_v17, 6.0  ;;  %v1012_v27 = vmax.f32 %v747_v18, 0.0 }
 0x1c2   : > { %v1119_v31 = vmin.f32 %v1011_v23, 6.0 }
 0x1c3   : > { %v6147_v35 = vpack.c.bf16 %v1118_v26, %v1117_v22  ;;  %v1120_v36 = vmin.f32 %v1012_v27, 6.0  ;;  %v750_v37 = vpop.f32.mrb[4].mxu0 }
 0x1c4   : > { %v751_v59 = vadd.f32 %v750_v37, %v7187_v10  ;;  %v752_v40 = vpop.f32.mrb[5].mxu0 }
 0x1c5   : > { %v1901_v44 = vsel %vm7238_vm6, %v6147_v35, 0  ;;  %v6148_v47 = vpack.c.bf16 %v1120_v36, %v1119_v31  ;;  %v753_v48 = vadd.f32 %v752_v40, %v7192_v19  ;;  %v754_v49 = vpop.f32.mrb[6].mxu0 }
 0x1c6   : > { %v2082_v53 = vmul.bf16 %v7212_v45, %v1901_v44  ;;  %v2624_v54 = vmul.bf16 %v7216_v51, %v1901_v44  ;;  %v1013_v55 = vmax.f32 %v751_v59, 0.0  ;;  %v756_v56 = vpop.f32.mrb[7].mxu0  ;;  %v755_v60 = vadd.f32 %v754_v49, %v7187_v10 }
 0x1c7   : > { %v7268_v57 = vsel %vm7238_vm6, %v6148_v47, 0  ;;  %v1014_v58 = vmax.f32 %v753_v48, 0.0  ;;  %v757_v61 = vadd.f32 %v756_v56, %v7192_v19  ;;  %v2007_v62 = vmul.bf16 %v7203_v33, %v1901_v44 }
 0x1c8   : > { %v2134_v63 = vshrl.u32 %v2082_v53, 16  ;;  %v2137_v1 = vshll.u32 %v2082_v53, 16  ;;  %v6019_v2 = vrot.slane %v2624_v54, 9  ;;  %v2083_v3 = vmul.bf16 %v7212_v45, %v7268_v57 }
 0x1c9   : > { %v2625_v4 = vmul.bf16 %v7216_v51, %v7268_v57  ;;  %v1121_v5 = vmin.f32 %v1013_v55, 6.0  ;;  %v1122_v50 = vmin.f32 %v1014_v58, 6.0  ;;  %v1015_v9 = vmax.f32 %v755_v60, 0.0 }
 0x1ca   : > { %v2136_v6 = vrot.slane %v2134_v63, 4  ;;  %v2139_v7 = vrot.slane %v2137_v1, 5  ;;  %v1016_v11 = vmax.f32 %v757_v61, 0.0  ;;  %v2143_v12 = vshll.u32 %v2083_v3, 16 }
 0x1cb   : > { %v2147_v13 = vshrl.u32 %v2083_v3, 16  ;;  %v2725_v14 = vrot.slane %v2625_v4, 5  ;;  %v6149_v15 = vpack.c.bf16 %v1122_v50, %v1121_v5  ;;  %v760_v16 = vpop.f32.mrb[8].mxu0  ;;  %v1123_v20 = vmin.f32 %v1015_v9, 6.0 }
 0x1cc   : > { %v2140_v17 = vor.u32 %v2139_v7, %v2136_v6  ;;  %v1124_v21 = vmin.f32 %v1016_v11, 6.0  ;;  %v761_v22 = vadd.f32 %v760_v16, %v7187_v10  ;;  %v762_v23 = vpop.f32.mrb[9].mxu0  ;;  %v2008_v24 = vmul.bf16 %v7203_v33, %v7268_v57 }
 0x1cd   : > { %v2145_v25 = vrot.slane %v2143_v12, 5  ;;  %v2149_v26 = vrot.slane %v2147_v13, 4  ;;  %v2726_v27 = vsel %vm7279_vm8, %v6019_v2, %v2725_v14  ;;  %v764_v29 = vpop.f32.mrb[10].mxu0  ;;  %v1903_v35 = vsel %vm7238_vm6, %v6149_v15, 0 }
 0x1ce   : > { %v2141_v31 = vrot.slane %v2140_v17, 4  ;;  %v6150_v36 = vpack.c.bf16 %v1124_v21, %v1123_v20  ;;  %v1017_v37 = vmax.f32 %v761_v22, 0.0  ;;  %v766_v59 = vpop.f32.mrb[11].mxu0  ;;  %v2727_v44 = vrot.slane %v2725_v14, 4 }
 0x1cf   : > { %v2150_v40 = vor.u32 %v2149_v26, %v2145_v25  ;;  %v2084_v47 = vmul.bf16 %v7212_v45, %v1903_v35  ;;  %v2626_v48 = vmul.bf16 %v7216_v51, %v1903_v35  ;;  %v763_v54 = vadd.f32 %v762_v23, %v7192_v19 }
 0x1d0   : > { %v2146_v46 = vsel %vm7285_vm9, %v2141_v31, %v2145_v25  ;;  %v7309_v49 = vsel %vm7297_vm10, %v6150_v36, 0  ;;  %v1125_v53 = vmin.f32 %v1017_v37, 6.0  ;;  %v765_v58 = vadd.f32 %v764_v29, %v7187_v10 }
 0x1d1   : > { %v2549_v55 = vadd.bf16 %v2146_v46, %v2007_v62  ;;  %v2153_v56 = vshll.u32 %v2084_v47, 16  ;;  %v2728_v57 = vrot.slane %v2626_v48, 5  ;;  %v2151_v60 = vrot.slane %v2150_v40, 4 }
 0x1d2   : > { %v2085_v61 = vmul.bf16 %v7212_v45, %v7309_v49  ;;  %v2627_v63 = vmul.bf16 %v7216_v51, %v7309_v49  ;;  %v2942_v1 = vmul.bf16 %v7243_v32, %v7309_v49  ;;  %v3049_v62 = vmul.bf16 %v7245_v34, %v7309_v49 }
 0x1d3   : > { %v2867_v2 = vadd.bf16 %v2726_v27, %v2549_v55  ;;  %v2155_v3 = vrot.slane %v2153_v56, 5  ;;  %v7321_v4 = vsel %vm7279_vm8, %v2727_v44, %v2728_v57  ;;  %v770_v5 = vpop.f32.mrb[12].mxu0  ;;  %v2009_v50 = vmul.bf16 %v7203_v33, %v7309_v49 }
 0x1d4   : > { %v2158_v6 = vshrl.u32 %v2085_v61, 16  ;;  %v2161_v7 = vshll.u32 %v2085_v61, 16  ;;  %v3588_v9 = vmul.bf16 %v7247_v38, %v7309_v49  ;;  %v772_v11 = vpop.f32.mrb[13].mxu0  ;;  %v3098_v14 = vshrl.u32 %v3049_v62, 16 }
 0x1d5   : > { %v2156_v12 = vsel %vm7285_vm9, %v2151_v60, %v2155_v3  ;;  %v7332_v13 = vadd.bf16 %v2942_v1, %v2867_v2  ;;  %v3101_v15 = vshll.u32 %v3049_v62, 16  ;;  %v774_v16 = vpop.f32.mrb[14].mxu0  ;;  %v7334_v22 = vrot.slane %v2627_v63, 9 }
 0x1d6   : > { %v2550_v17 = vadd.bf16 %v2156_v12, %v2008_v24  ;;  %v2160_v20 = vrot.slane %v2158_v6, 4  ;;  %v2163_v21 = vrot.slane %v2161_v7, 5  ;;  %v776_v23 = vpop.f32.mrb[15].mxu0  ;;  %v3100_v25 = vrot.slane %v3098_v14, 4 }
 0x1d7   : > { %v3103_v26 = vrot.slane %v3101_v15, 5  ;;  %v1018_v27 = vmax.f32 %v763_v54, 0.0  ;;  %v1019_v29 = vmax.f32 %v765_v58, 0.0  ;;  %v767_v36 = vadd.f32 %v766_v59, %v7192_v19 }
 0x1d8   : > { %v2868_v31 = vadd.bf16 %v7321_v4, %v2550_v17  ;;  %v2164_v35 = vor.u32 %v2163_v21, %v2160_v20  ;;  %v771_v37 = vadd.f32 %v770_v5, %v7187_v10  ;;  %v7339_v44 = vrot.slane %v3588_v9, 9 }
 0x1d9   : > { %v3104_v40 = vor.u32 %v3103_v26, %v3100_v25  ;;  %v1126_v24 = vmin.f32 %v1018_v27, 6.0  ;;  %v773_v47 = vadd.f32 %v772_v11, %v7192_v19  ;;  %v1127_v46 = vmin.f32 %v1019_v29, 6.0 }
 0x1da   : > { %v1020_v54 = vmax.f32 %v767_v36, 0.0  ;;  %v1021_v55 = vmax.f32 %v771_v37, 0.0  ;;  %v7347_v56 = vadd.f32 %v774_v16, %v7187_v10  ;;  %v2165_v59 = vrot.slane %v2164_v35, 4 }
 0x1db   : > { %v6151_v57 = vpack.c.bf16 %v1126_v24, %v1125_v53  ;;  %v1022_v58 = vmax.f32 %v773_v47, 0.0  ;;  %v7350_v60 = vadd.f32 %v776_v23, %v7192_v19  ;;  %v780_v61 = vpop.f32.mrb[16].mxu0  ;;  %v7352_v63 = vrot.slane %v3104_v40, 4 }
 0x1dc   : > { %v1128_v1 = vmin.f32 %v1020_v54, 6.0  ;;  %v1129_v2 = vmin.f32 %v1021_v55, 6.0  ;;  %v1023_v3 = vmax.f32 %v7347_v56, 0.0  ;;  %v782_v4 = vpop.f32.mrb[17].mxu0  ;;  %v7359_v53 = vadd.f32 %v780_v61, %v7187_v10 }
 0x1dd   : > { %v1905_v62 = vsel %vm7342_vm13, %v6151_v57, 0  ;;  %v1130_v5 = vmin.f32 %v1022_v58, 6.0  ;;  %v1024_v6 = vmax.f32 %v7350_v60, 0.0  ;;  %v7361_v7 = vpop.f32.mrb[18].mxu0  ;;  %v7374_v15 = vadd.f32 %v782_v4, %v7192_v19 }
 0x1de   : > { %v2086_v9 = vmul.bf16 %v7212_v45, %v1905_v62  ;;  %v2628_v11 = vmul.bf16 %v7216_v51, %v1905_v62  ;;  %v2943_v12 = vmul.bf16 %v7243_v32, %v1905_v62  ;;  %v7376_v16 = vpop.f32.mrb[19].mxu0  ;;  %v3050_v17 = vmul.bf16 %v7245_v34, %v1905_v62 }
 0x1df   : > { %v3589_v20 = vmul.bf16 %v7247_v38, %v1905_v62  ;;  %v6152_v21 = vpack.c.bf16 %v1128_v1, %v1127_v46  ;;  %v6153_v23 = vpack.c.bf16 %v1130_v5, %v1129_v2  ;;  %v785_v56 = vadd.f32 %v7361_v7, %v7187_v10 }
 0x1e0   : > { %v2167_v25 = vshll.u32 %v2086_v9, 16  ;;  %v2171_v26 = vshrl.u32 %v2086_v9, 16  ;;  %v2732_v27 = vrot.slane %v2628_v11, 5  ;;  %v7380_v43 = vadd.bf16 %v2943_v12, %v2868_v31 }
 0x1e1   : > { %v3107_v29 = vshll.u32 %v3050_v17, 16  ;;  %v3111_v35 = vshrl.u32 %v3050_v17, 16  ;;  %v7382_v36 = vrot.slane %v3589_v20, 5  ;;  %v1906_v37 = vsel %vm7369_vm14, %v6152_v21, 0 }
 0x1e2   : > { %v2169_v40 = vrot.slane %v2167_v25, 5  ;;  %v2173_v24 = vrot.slane %v2171_v26, 4  ;;  %v2733_v47 = vsel %vm7279_vm8, %v7334_v22, %v2732_v27  ;;  %v2734_v46 = vrot.slane %v2732_v27, 4 }
 0x1e3   : > { %v7389_v54 = vrot.slane %v3107_v29, 5  ;;  %v3113_v55 = vrot.slane %v3111_v35, 4  ;;  %v3688_v31 = vrot.slane %v7382_v36, 4  ;;  %v2087_v57 = vmul.bf16 %v7212_v45, %v1906_v37  ;;  %v7393_v58 = vpop.f32.mrb[20].mxu0 }
 0x1e4   : > { %v2170_v61 = vsel %vm7285_vm9, %v2165_v59, %v2169_v40  ;;  %v2174_v1 = vor.u32 %v2173_v24, %v2169_v40  ;;  %v2629_v2 = vmul.bf16 %v7216_v51, %v1906_v37  ;;  %v3051_v4 = vmul.bf16 %v7245_v34, %v1906_v37  ;;  %v7399_v5 = vpop.f32.mrb[21].mxu0 }
 0x1e5   : > { %v2551_v22 = vadd.bf16 %v2170_v61, %v2009_v50  ;;  %v3114_v9 = vor.u32 %v3113_v55, %v7389_v54  ;;  %v2177_v11 = vshll.u32 %v2087_v57, 16  ;;  %v3590_v12 = vmul.bf16 %v7247_v38, %v1906_v37  ;;  %v7406_v17 = vpop.f32.mrb[22].mxu0 }
 0x1e6   : > { %v2175_v20 = vrot.slane %v2174_v1, 4  ;;  %v2735_v59 = vrot.slane %v2629_v2, 5  ;;  %v3117_v21 = vshll.u32 %v3051_v4, 16  ;;  %v7410_v25 = vsel %vm7297_vm10, %v6153_v23, 0  ;;  %v7412_v26 = vpop.f32.mrb[23].mxu0 }
 0x1e7   : > { %v7414_v27 = vadd.bf16 %v2733_v47, %v2551_v22  ;;  %v2179_v49 = vrot.slane %v2177_v11, 5  ;;  %v3115_v50 = vrot.slane %v3114_v9, 4  ;;  %v3689_v29 = vrot.slane %v3590_v12, 5 }
 0x1e8   : > { %v2010_v35 = vmul.bf16 %v7203_v33, %v1905_v62  ;;  %v2736_v37 = vsel %vm7279_vm8, %v2734_v46, %v2735_v59  ;;  %v3119_v40 = vrot.slane %v3117_v21, 5  ;;  %v2088_v24 = vmul.bf16 %v7212_v45, %v7410_v25 }
 0x1e9   : > { %10473 = vst [vmem:[#allocation22_spill] sm:$0xff] %v7414_v27  ;;  %v2180_v23 = vsel %vm7285_vm9, %v2175_v20, %v2179_v49  ;;  %v7425_v55 = vsel %vm7279_vm8, %v3688_v31, %v3689_v29  ;;  %v2630_v62 = vmul.bf16 %v7216_v51, %v7410_v25  ;;  %v3052_v4 = vmul.bf16 %v7245_v34, %v7410_v25 }
 0x1ea   : > { %v2552_v57 = vadd.bf16 %v2180_v23, %v2010_v35  ;;  %v7433_v46 = vsel %vm7285_vm9, %v3115_v50, %v3119_v40  ;;  %v2182_v61 = vshrl.u32 %v2088_v24, 16  ;;  %v2185_v1 = vshll.u32 %v2088_v24, 16 }
 0x1eb   : > { %v3591_v22 = vmul.bf16 %v7247_v38, %v7410_v25  ;;  %v7443_v9 = vpop.f32.mrb[24].mxu0  ;;  %v1131_v59 = vmin.f32 %v1023_v3, 6.0  ;;  %v7449_v49 = vrot.slane %v2630_v62, 9  ;;  %v3122_v50 = vshrl.u32 %v3052_v4, 16 }
 0x1ec   : > { %v2870_v11 = vadd.bf16 %v2736_v37, %v2552_v57  ;;  %v2184_v12 = vrot.slane %v2182_v61, 4  ;;  %v2187_v20 = vrot.slane %v2185_v1, 5  ;;  %v7447_v21 = vpop.f32.mrb[25].mxu0  ;;  %v3125_v29 = vshll.u32 %v3052_v4, 16 }
 0x1ed   : > { %10474 = vst [vmem:[#allocation23_spill] sm:$0xff] %v7449_v49  ;;  %v1132_v35 = vmin.f32 %v1024_v6, 6.0  ;;  %v7453_v40 = vpop.f32.mrb[26].mxu0  ;;  %v1025_v23 = vmax.f32 %v7359_v53, 0.0  ;;  %v1026_v37 = vmax.f32 %v7374_v15, 0.0  ;;  %v7461_v57 = vrot.slane %v3122_v50, 4 }
 0x1ee   : > { %v2188_v24 = vor.u32 %v2187_v20, %v2184_v12  ;;  %v7459_v3 = vpop.f32.mrb[27].mxu0  ;;  %v7463_v62 = vrot.slane %v3591_v22, 9  ;;  %v787_v60 = vadd.f32 %v7376_v16, %v7192_v19  ;;  %v7467_v6 = vrot.slane %v3125_v29, 5 }
 0x1ef   : > { %10475 = vst [vmem:[#allocation24_spill] sm:$0xff] %v7461_v57  ;;  %v6154_v61 = vpack.c.bf16 %v1132_v35, %v1131_v59  ;;  %v1133_v1 = vmin.f32 %v1025_v23, 6.0  ;;  %v1134_v4 = vmin.f32 %v1026_v37, 6.0  ;;  %v1027_v53 = vmax.f32 %v785_v56, 0.0 }
 0x1f0   : > { %10476 = vst [vmem:[#allocation25_spill] sm:$0xff] %v7463_v62  ;;  %10477 = vst [vmem:[#allocation26_spill] sm:$0xff] %v7467_v6  ;;  %v7469_v12 = vrot.slane %v2188_v24, 4  ;;  %v1028_v15 = vmax.f32 %v787_v60, 0.0  ;;  %v791_v22 = vadd.f32 %v7393_v58, %v7187_v10  ;;  %v793_v58 = vadd.f32 %v7399_v5, %v7192_v19 }
 0x1f1   : > { %v7473_v7 = vsel %vm7342_vm13, %v6154_v61, 0  ;;  %v6155_v29 = vpack.c.bf16 %v1134_v4, %v1133_v1  ;;  %v1135_v24 = vmin.f32 %v1027_v53, 6.0 }
 0x1f2   : > { %10478 = vst [vmem:[#allocation27_spill] sm:$0xff] %v7469_v12  ;;  %v2089_v20 = vmul.bf16 %v7212_v45, %v7473_v7  ;;  %v2631_v16 = vmul.bf16 %v7216_v51, %v7473_v7  ;;  %v3053_v59 = vmul.bf16 %v7245_v34, %v7473_v7  ;;  %v3592_v50 = vmul.bf16 %v7247_v38, %v7473_v7 }
 0x1f3   : > { %v2945_v35 = vmul.bf16 %v7243_v32, %v7473_v7  ;;  %v7489_v23 = vpop.f32.mrb[28].mxu0  ;;  %v7497_v0 = vsel %vm7369_vm14, %v6155_v29, 0 }
 0x1f4   : > { %v2191_v37 = vshll.u32 %v2089_v20, 16  ;;  %v2195_v56 = vshrl.u32 %v2089_v20, 16  ;;  %v7491_v61 = vrot.slane %v2631_v16, 5  ;;  %v3131_v60 = vshll.u32 %v3053_v59, 16  ;;  %v7493_v47 = vpop.f32.mrb[29].mxu0 }
 0x1f5   : > { %v2977_v1 = vadd.bf16 %v2945_v35, %v2870_v11  ;;  %v3135_v4 = vshrl.u32 %v3053_v59, 16  ;;  %v7499_v31 = vrot.slane %v3592_v50, 5  ;;  %v7501_v53 = vpop.f32.mrb[30].mxu0  ;;  %v2090_v5 = vmul.bf16 %v7212_v45, %v7497_v0 }
 0x1f6   : > { %10479 = vst [vmem:[#allocation28_spill] sm:$0xff] %v7491_v61  ;;  %v7505_v2 = vrot.slane %v2191_v37, 5  ;;  %v2197_v20 = vrot.slane %v2195_v56, 4  ;;  %v2632_v16 = vmul.bf16 %v7216_v51, %v7497_v0  ;;  %v7509_v30 = vpop.f32.mrb[31].mxu0  ;;  %v2741_v29 = vrot.slane %v7491_v61, 4 }
 0x1f7   : > { %10480 = vst [vmem:[#allocation29_spill] sm:$0xff] %v7499_v31  ;;  %v3054_v11 = vmul.bf16 %v7245_v34, %v7497_v0  ;;  %v7514_v59 = vrot.slane %v3131_v60, 5  ;;  %v3137_v50 = vrot.slane %v3135_v4, 4  ;;  %v2201_v49 = vshll.u32 %v2090_v5, 16 }
 0x1f8   : > { %10481 = vst [vmem:[#allocation30_spill] sm:$0xff] %v7505_v2  ;;  %v2198_v35 = vor.u32 %v2197_v20, %v7505_v2  ;;  %v2742_v12 = vrot.slane %v2632_v16, 5  ;;  %v3593_v37 = vmul.bf16 %v7247_v38, %v7497_v0  ;;  %v3695_v52 = vrot.slane %v7499_v31, 4 }
 0x1f9   : > { %10482 = vst [vmem:[#allocation31_spill] sm:$0xff] %v7514_v59  ;;  %v3138_v56 = vor.u32 %v3137_v50, %v7514_v59  ;;  %v3141_v62 = vshll.u32 %v3054_v11, 16  ;;  %v4012_v61 = vmul.bf16 %v7252_v41, %v7497_v0  ;;  %v2203_v57 = vrot.slane %v2201_v49, 5 }
 0x1fa   : > { %v2199_v6 = vrot.slane %v2198_v35, 4  ;;  %v7525_v60 = vsel %vm7279_vm8, %v2741_v29, %v2742_v12  ;;  %v3696_v4 = vrot.slane %v3593_v37, 5  ;;  %v2012_v5 = vmul.bf16 %v7203_v33, %v7473_v7 }
 0x1fb   : > { %v3139_v20 = vrot.slane %v3138_v56, 4  ;;  %v3143_v16 = vrot.slane %v3141_v62, 5  ;;  %v7529_v2 = vshll.u32 %v4012_v61, 16  ;;  %v7531_v11 = vpop.f32.mrb[32].mxu0  ;;  %v1136_v35 = vmin.f32 %v1028_v15, 6.0 }
 0x1fc   : > { %v2204_v50 = vsel %vm7285_vm9, %v2199_v6, %v2203_v57  ;;  %v3697_v49 = vsel %vm7279_vm8, %v3695_v52, %v3696_v4  ;;  %v1029_v31 = vmax.f32 %v791_v22, 0.0  ;;  %v7537_v12 = vpop.f32.mrb[33].mxu0  ;;  %v1030_v61 = vmax.f32 %v793_v58, 0.0 }
 0x1fd   : > { %10483 = vst [vmem:[#allocation32_spill] sm:$0xff] %v7529_v2  ;;  %10484 = vst [vmem:[#allocation33_spill] sm:$0xff] %v7537_v12  ;;  %v7539_v29 = vadd.bf16 %v2204_v50, %v2012_v5  ;;  %v3144_v37 = vsel %vm7285_vm9, %v3139_v20, %v3143_v16  ;;  %v7545_v56 = vpop.f32.mrb[34].mxu0  ;;  %v6156_v57 = vpack.c.bf16 %v1136_v35, %v1135_v24 }
 0x1fe   : > { %10485 = vst [vmem:[#allocation34_spill] sm:$0xff] %v7545_v56  ;;  %v3516_v59 = vadd.bf16 %v3144_v37, %v2977_v1  ;;  %v1137_v6 = vmin.f32 %v1029_v31, 6.0  ;;  %v795_v52 = vadd.f32 %v7406_v17, %v7187_v10  ;;  %v7549_v15 = vpop.f32.mrb[35].mxu0  ;;  %v1138_v5 = vmin.f32 %v1030_v61, 6.0 }
 0x1ff   : > { %10486 = vst [vmem:[#allocation35_spill] sm:$0xff] %v7549_v15  ;;  %v797_v20 = vadd.f32 %v7412_v26, %v7192_v19  ;;  %v7560_v24 = vsel %vm7297_vm10, %v6156_v57, 0  ;;  %v801_v17 = vadd.f32 %v7443_v9, %v7187_v10  ;;  %v7572_v26 = vadd.f32 %v7447_v21, %v7192_v19 }
 0x200   : > { %v7556_v58 = vadd.bf16 %v3697_v49, %v3516_v59  ;;  %10488 = vst [vmem:[#allocation37_spill] sm:$0xff] %v7560_v24  ;;  %v1031_v31 = vmax.f32 %v795_v52, 0.0  ;;  %v2091_v16 = vmul.bf16 %v7212_v45, %v7560_v24  ;;  %v2633_v50 = vmul.bf16 %v7216_v51, %v7560_v24 }
 0x201   : > { %v3055_v49 = vmul.bf16 %v7245_v34, %v7560_v24  ;;  %v3594_v9 = vmul.bf16 %v7247_v38, %v7560_v24  ;;  %v6157_v35 = vpack.c.bf16 %v1138_v5, %v1137_v6  ;;  %v7584_v52 = vmul.bf16 %v7252_v41, %v7560_v24 }
 0x202   : > { %10487 = vst [vmem:[#allocation36_spill] sm:$0xff] %v7556_v58  ;;  %v2206_v37 = vshrl.u32 %v2091_v16, 16  ;;  %v2209_v61 = vshll.u32 %v2091_v16, 16  ;;  %v7580_v57 = vrot.slane %v2633_v50, 9  ;;  %v1139_v62 = vmin.f32 %v1031_v31, 6.0 }
 0x203   : > { %10490 = vst [vmem:[#allocation39_spill] sm:$0xff] %v7584_v52  ;;  %v7586_v21 = vpop.f32.mrb[36].mxu0  ;;  %v3146_v1 = vshrl.u32 %v3055_v49, 16  ;;  %v3149_v4 = vshll.u32 %v3055_v49, 16  ;;  %v7590_v59 = vsel %vm7342_vm13, %v6157_v35, 0  ;;  %v7604_v52 = vrot.slane %v3594_v9, 9 }
 0x204   : > { %10489 = vst [vmem:[#allocation38_spill] sm:$0xff] %v7580_v57  ;;  %10491 = vst [vmem:[#allocation40_spill] sm:$0xff] %v7586_v21  ;;  %v7592_v22 = vpop.f32.mrb[37].mxu0  ;;  %v2208_v6 = vrot.slane %v2206_v37, 4  ;;  %v2211_v5 = vrot.slane %v2209_v61, 5  ;;  %v2092_v16 = vmul.bf16 %v7212_v45, %v7590_v59  ;;  %v2634_v50 = vmul.bf16 %v7216_v51, %v7590_v59 }
 0x205   : > { %10492 = vst [vmem:[#allocation41_spill] sm:$0xff] %v7590_v59  ;;  %10493 = vst [vmem:[#allocation42_spill] sm:$0xff] %v7592_v22  ;;  %v7598_v57 = vpop.f32.mrb[38].mxu0  ;;  %v7600_v58 = vrot.slane %v3146_v1, 4  ;;  %v7602_v49 = vrot.slane %v3149_v4, 5  ;;  %v3056_v31 = vmul.bf16 %v7245_v34, %v7590_v59  ;;  %v3595_v61 = vmul.bf16 %v7247_v38, %v7590_v59 }
 0x206   : > { %10494 = vst [vmem:[#allocation43_spill] sm:$0xff] %v7598_v57  ;;  %10497 = vst [vmem:[#allocation46_spill] sm:$0xff] %v7604_v52  ;;  %v7608_v35 = vpop.f32.mrb[39].mxu0  ;;  %v2212_v37 = vor.u32 %v2211_v5, %v2208_v6  ;;  %v1032_v24 = vmax.f32 %v797_v20, 0.0  ;;  %v2215_v27 = vshll.u32 %v2092_v16, 16  ;;  %v2014_v57 = vmul.bf16 %v7203_v33, %v7590_v59 }
 0x207   : > { %10495 = vst [vmem:[#allocation44_spill] sm:$0xff] %v7600_v58  ;;  %10496 = vst [vmem:[#allocation45_spill] sm:$0xff] %v7602_v49  ;;  %v2219_v1 = vshrl.u32 %v2092_v16, 16  ;;  %v7614_v58 = vrot.slane %v2634_v50, 5  ;;  %v3155_v4 = vshll.u32 %v3056_v31, 16  ;;  %v2947_v49 = vmul.bf16 %v7243_v32, %v7590_v59 }
 0x208   : > { %10498 = vst [vmem:[#allocation47_spill] sm:$0xff] %v7608_v35  ;;  %v1140_v9 = vmin.f32 %v1032_v24, 6.0  ;;  %v7616_v52 = vrot.slane %v2215_v27, 5  ;;  %v3159_v35 = vshrl.u32 %v3056_v31, 16  ;;  %v7620_v6 = vrot.slane %v2212_v37, 4 }
 0x209   : > { %10499 = vst [vmem:[#allocation48_spill] sm:$0xff] %v7614_v58  ;;  %v2221_v5 = vrot.slane %v2219_v1, 4  ;;  %v2748_v20 = vrot.slane %v7614_v58, 4  ;;  %v7623_v2 = vrot.slane %v3155_v4, 5  ;;  %v7625_v16 = vrot.slane %v3595_v61, 5 }
 0x20a   : > { %10500 = vst [vmem:[#allocation49_spill] sm:$0xff] %v7616_v52  ;;  %10501 = vst [vmem:[#allocation50_spill] sm:$0xff] %v7620_v6  ;;  %v6158_v22 = vpack.c.bf16 %v1140_v9, %v1139_v62  ;;  %v3161_v21 = vrot.slane %v3159_v35, 4  ;;  %v1033_v50 = vmax.f32 %v801_v17, 0.0  ;;  %v1034_v24 = vmax.f32 %v7572_v26, 0.0 }
 0x20b   : > { %10502 = vst [vmem:[#allocation51_spill] sm:$0xff] %v7623_v2  ;;  %10503 = vst [vmem:[#allocation52_spill] sm:$0xff] %v7625_v16  ;;  %v7627_v15 = vpop.f32.mrb[40].mxu0  ;;  %v2222_v27 = vor.u32 %v2221_v5, %v7616_v52  ;;  %v805_v31 = vadd.f32 %v7453_v40, %v7187_v10  ;;  %v807_v37 = vadd.f32 %v7459_v3, %v7192_v19  ;;  %v3702_v17 = vrot.slane %v7625_v16, 4 }
 0x20c   : > { %10504 = vst [vmem:[#allocation53_spill] sm:$0xff] %v7627_v15  ;;  %v7635_v1 = vpop.f32.mrb[41].mxu0  ;;  %v1912_v62 = vsel %vm7369_vm14, %v6158_v22, 0  ;;  %v3162_v35 = vor.u32 %v3161_v21, %v7623_v2  ;;  %v1141_v61 = vmin.f32 %v1033_v50, 6.0  ;;  %v1142_v16 = vmin.f32 %v1034_v24, 6.0 }
 0x20d   : > { %10505 = vst [vmem:[#allocation54_spill] sm:$0xff] %v7635_v1  ;;  %v7641_v4 = vpop.f32.mrb[42].mxu0  ;;  %v2093_v26 = vmul.bf16 %v7212_v45, %v1912_v62  ;;  %v2223_v9 = vrot.slane %v2222_v27, 4  ;;  %v2635_v40 = vmul.bf16 %v7216_v51, %v1912_v62  ;;  %v3057_v5 = vmul.bf16 %v7245_v34, %v1912_v62 }
 0x20e   : > { %10506 = vst [vmem:[#allocation55_spill] sm:$0xff] %v7641_v4  ;;  %v7646_v3 = vpop.f32.mrb[43].mxu0  ;;  %v3163_v58 = vrot.slane %v3162_v35, 4  ;;  %v3596_v6 = vmul.bf16 %v7247_v38, %v1912_v62  ;;  %v4015_v22 = vmul.bf16 %v7252_v41, %v1912_v62  ;;  %v4554_v21 = vmul.bf16 %v7254_v42, %v1912_v62 }
 0x20f   : > { %10507 = vst [vmem:[#allocation56_spill] sm:$0xff] %v7646_v3  ;;  %v2225_v52 = vshll.u32 %v2093_v26, 16  ;;  %v2749_v50 = vrot.slane %v2635_v40, 5  ;;  %v3165_v2 = vshll.u32 %v3057_v5, 16  ;;  %v10508_v27 = vadd.bf16 %v7525_v60, %v7539_v29 }
 0x210   : > { %v3703_v1 = vrot.slane %v3596_v6, 5  ;;  %v7654_v15 = vshll.u32 %v4015_v22, 16  ;;  %v1035_v59 = vmax.f32 %v805_v31, 0.0  ;;  %v7656_v56 = vrot.slane %v4554_v21, 5 }
 0x211   : > { %v2979_v4 = vadd.bf16 %v2947_v49, %v10508_v27  ;;  %v2227_v3 = vrot.slane %v2225_v52, 5  ;;  %v3167_v35 = vrot.slane %v3165_v2, 5  ;;  %v6159_v12 = vpack.c.bf16 %v1142_v16, %v1141_v61 }
 0x212   : > { %v7660_v62 = vsel %vm7279_vm8, %v2748_v20, %v2749_v50  ;;  %v3704_v24 = vsel %vm7279_vm8, %v3702_v17, %v3703_v1  ;;  %v1143_v60 = vmin.f32 %v1035_v59, 6.0  ;;  %v1036_v6 = vmax.f32 %v807_v37, 0.0 }
 0x213   : > { %v7665_v29 = vpop.f32.mrb[44].mxu0  ;;  %v2228_v49 = vsel %vm7285_vm9, %v2223_v9, %v2227_v3  ;;  %v3168_v2 = vsel %vm7285_vm9, %v3163_v58, %v3167_v35  ;;  %v7673_v52 = vsel %vm7297_vm10, %v6159_v12, 0  ;;  %v811_v1 = vadd.f32 %v7489_v23, %v7187_v10 }
 0x214   : > { %v7675_v20 = vpop.f32.mrb[45].mxu0  ;;  %v2556_v16 = vadd.bf16 %v2228_v49, %v2014_v57  ;;  %v3518_v31 = vadd.bf16 %v3168_v2, %v2979_v4  ;;  %v2094_v59 = vmul.bf16 %v7212_v45, %v7673_v52  ;;  %v2636_v12 = vmul.bf16 %v7216_v51, %v7673_v52 }
 0x215   : > { %v7681_v17 = vpop.f32.mrb[46].mxu0  ;;  %v3058_v37 = vmul.bf16 %v7245_v34, %v7673_v52  ;;  %v3597_v57 = vmul.bf16 %v7247_v38, %v7673_v52  ;;  %v1144_v49 = vmin.f32 %v1036_v6, 6.0 }
 0x216   : > { %v7691_v61 = vpop.f32.mrb[47].mxu0  ;;  %v7693_v4 = vadd.bf16 %v3704_v24, %v3518_v31  ;;  %v2230_v9 = vshrl.u32 %v2094_v59, 16  ;;  %v2233_v23 = vshll.u32 %v2094_v59, 16  ;;  %v2874_v5 = vadd.bf16 %v7660_v62, %v2556_v16 }
 0x217   : > { %10509 = vst [vmem:[#allocation57_spill] sm:$0xff] %v7691_v61  ;;  %v7698_v3 = vrot.slane %v2636_v12, 9  ;;  %v3170_v22 = vshrl.u32 %v3058_v37, 16  ;;  %v3173_v21 = vshll.u32 %v3058_v37, 16  ;;  %v7700_v35 = vrot.slane %v3597_v57, 9 }
 0x218   : > { %v2232_v50 = vrot.slane %v2230_v9, 4  ;;  %v2235_v27 = vrot.slane %v2233_v23, 5  ;;  %v7706_v24 = vmul.bf16 %v7252_v41, %v7673_v52  ;;  %v1037_v31 = vmax.f32 %v811_v1, 0.0 }
 0x219   : > { %10510 = vst [vmem:[#allocation58_spill] sm:$0xff] %v7698_v3  ;;  %10511 = vst [vmem:[#allocation59_spill] sm:$0xff] %v7700_v35  ;;  %v7702_v2 = vrot.slane %v3170_v22, 4  ;;  %v813_v59 = vadd.f32 %v7493_v47, %v7192_v19  ;;  %v6160_v16 = vpack.c.bf16 %v1144_v49, %v1143_v60  ;;  %v815_v12 = vadd.f32 %v7501_v53, %v7187_v10 }
 0x21a   : > { %v2236_v62 = vor.u32 %v2235_v27, %v2232_v50  ;;  %v817_v37 = vadd.f32 %v7509_v30, %v7192_v19  ;;  %v7716_v6 = vrot.slane %v3173_v21, 5  ;;  %v3110_v1 = vsel %vm7285_vm9, %v7352_v63, %v7389_v54 }
 0x21b   : > { %10512 = vst [vmem:[#allocation60_spill] sm:$0xff] %v7702_v2  ;;  %v7714_v57 = vpop.f32.mrb[48].mxu0  ;;  %v1038_v9 = vmax.f32 %v813_v59, 0.0  ;;  %v7732_v30 = vsel %vm7342_vm13, %v6160_v16, 0  ;;  %v1145_v23 = vmin.f32 %v1037_v31, 6.0  ;;  %v1039_v22 = vmax.f32 %v815_v12, 0.0 }
 0x21c   : > { %10513 = vst [vmem:[#allocation61_spill] sm:$0xff] %v7714_v57  ;;  %10514 = vst [vmem:[#allocation62_spill] sm:$0xff] %v7716_v6  ;;  %v7726_v60 = vpop.f32.mrb[49].mxu0  ;;  %v7728_v53 = vrot.slane %v2236_v62, 4  ;;  %v2095_v63 = vmul.bf16 %v7212_v45, %v7732_v30  ;;  %v2637_v54 = vmul.bf16 %v7216_v51, %v7732_v30  ;;  %v3059_v50 = vmul.bf16 %v7245_v34, %v7732_v30 }
 0x21d   : > { %10515 = vst [vmem:[#allocation63_spill] sm:$0xff] %v7726_v60  ;;  %v7734_v21 = vpop.f32.mrb[50].mxu0  ;;  %v3598_v27 = vmul.bf16 %v7247_v38, %v7732_v30  ;;  %v1146_v49 = vmin.f32 %v1038_v9, 6.0  ;;  %v2016_v59 = vmul.bf16 %v7203_v33, %v7732_v30  ;;  %v2949_v31 = vmul.bf16 %v7243_v32, %v7732_v30 }
 0x21e   : > { %10516 = vst [vmem:[#allocation64_spill] sm:$0xff] %v7728_v53  ;;  %10517 = vst [vmem:[#allocation65_spill] sm:$0xff] %v7734_v21  ;;  %v1040_v62 = vmax.f32 %v817_v37, 0.0  ;;  %v2239_v16 = vshll.u32 %v2095_v63, 16  ;;  %v2243_v12 = vshrl.u32 %v2095_v63, 16  ;;  %v7748_v58 = vrot.slane %v2637_v54, 5 }
 0x21f   : > { %v3179_v40 = vshll.u32 %v3059_v50, 16  ;;  %v6161_v26 = vpack.c.bf16 %v1146_v49, %v1145_v23  ;;  %v2981_v47 = vadd.bf16 %v2949_v31, %v2874_v5  ;;  %v3183_v3 = vshrl.u32 %v3059_v50, 16 }
 0x220   : > { %10518 = vst [vmem:[#allocation66_spill] sm:$0xff] %v7748_v58  ;;  %v1147_v53 = vmin.f32 %v1039_v22, 6.0  ;;  %v7750_v35 = vrot.slane %v2239_v16, 5  ;;  %v2245_v6 = vrot.slane %v2243_v12, 4  ;;  %v7754_v2 = vrot.slane %v3598_v27, 5 }
 0x221   : > { %v7752_v9 = vrot.slane %v3179_v40, 5  ;;  %v1915_v21 = vsel %vm7369_vm14, %v6161_v26, 0  ;;  %v2755_v37 = vrot.slane %v7748_v58, 4  ;;  %v3185_v63 = vrot.slane %v3183_v3, 4 }
 0x222   : > { %10519 = vst [vmem:[#allocation67_spill] sm:$0xff] %v7750_v35  ;;  %v1148_v54 = vmin.f32 %v1040_v62, 6.0  ;;  %v2096_v60 = vmul.bf16 %v7212_v45, %v1915_v21  ;;  %v2246_v5 = vor.u32 %v2245_v6, %v7750_v35  ;;  %v2638_v23 = vmul.bf16 %v7216_v51, %v1915_v21 }
 0x223   : > { %10520 = vst [vmem:[#allocation68_spill] sm:$0xff] %v7752_v9  ;;  %v3060_v22 = vmul.bf16 %v7245_v34, %v1915_v21  ;;  %v3186_v40 = vor.u32 %v3185_v63, %v7752_v9  ;;  %v3599_v50 = vmul.bf16 %v7247_v38, %v1915_v21  ;;  %v4018_v27 = vmul.bf16 %v7252_v41, %v1915_v21 }
 0x224   : > { %v4557_v26 = vmul.bf16 %v7254_v42, %v1915_v21  ;;  %v2249_v49 = vshll.u32 %v2096_v60, 16  ;;  %v2756_v31 = vrot.slane %v2638_v23, 5  ;;  %v3709_v62 = vrot.slane %v7754_v2, 4 }
 0x225   : > { %v3189_v3 = vshll.u32 %v3060_v22, 16  ;;  %v2247_v16 = vrot.slane %v2246_v5, 4  ;;  %v3187_v12 = vrot.slane %v3186_v40, 4  ;;  %v3710_v6 = vrot.slane %v3599_v50, 5 }
 0x226   : > { %v7768_v58 = vshll.u32 %v4018_v27, 16  ;;  %v2251_v35 = vrot.slane %v2249_v49, 5  ;;  %v7770_v61 = vrot.slane %v4557_v26, 5  ;;  %v6162_v63 = vpack.c.bf16 %v1148_v54, %v1147_v53 }
 0x227   : > { %v3191_v57 = vrot.slane %v3189_v3, 5  ;;  %v7774_v9 = vsel %vm7279_vm8, %v2755_v37, %v2756_v31  ;;  %v3711_v60 = vsel %vm7279_vm8, %v3709_v62, %v3710_v6  ;;  %v3513_v21 = vadd.bf16 %v3110_v1, %v7332_v13 }
 0x228   : > { %v10521_v5 = vadd.bf16 %v7433_v46, %v7380_v43  ;;  %v2252_v22 = vsel %vm7285_vm9, %v2247_v16, %v2251_v35  ;;  %v7790_v37 = vsel %vm7297_vm10, %v6162_v63, 0  ;;  %v10526_v6 = vsel %vm7279_vm8, %v7339_v44, %v7382_v36 }
 0x229   : > { %v3192_v53 = vsel %vm7285_vm9, %v3187_v12, %v3191_v57  ;;  %10522 = vst [vmem:[#allocation69_spill] sm:$0xff] %v7790_v37  ;;  %v7792_v40 = vadd.bf16 %v2252_v22, %v2016_v59  ;;  %v2097_v43 = vmul.bf16 %v7212_v45, %v7790_v37  ;;  %v2639_v35 = vmul.bf16 %v7216_v51, %v7790_v37 }
 0x22a   : > { %v3829_v23 = vadd.bf16 %v7425_v55, %v10521_v5  ;;  %v3520_v13 = vadd.bf16 %v3192_v53, %v2981_v47  ;;  %v3903_v55 = vmul.bf16 %v7249_v39, %v7410_v25  ;;  %v3061_v57 = vmul.bf16 %v7245_v34, %v7790_v37 }
 0x22b   : > { %v3600_v1 = vmul.bf16 %v7247_v38, %v7790_v37  ;;  %v2254_v47 = vshrl.u32 %v2097_v43, 16  ;;  %v2257_v50 = vshll.u32 %v2097_v43, 16  ;;  %v7812_v49 = vrot.slane %v2639_v35, 9 }
 0x22c   : > { %v7806_v59 = vadd.bf16 %v3711_v60, %v3520_v13  ;;  %v3194_v31 = vshrl.u32 %v3061_v57, 16  ;;  %v3197_v3 = vshll.u32 %v3061_v57, 16  ;;  %v3828_v63 = vadd.bf16 %v10526_v6, %v3513_v21  ;;  %v7821_v60 = vpop.f32.mrb[51].mxu0 }
 0x22d   : > { %10524 = vst [vmem:[#allocation71_spill] sm:$0xff] %v7812_v49  ;;  %v2256_v62 = vrot.slane %v2254_v47, 4  ;;  %v2259_v16 = vrot.slane %v2257_v50, 5  ;;  %v7814_v12 = vrot.slane %v3600_v1, 9  ;;  %10527 = vst [vmem:[#allocation73_spill] sm:$0xff] %v7821_v60  ;;  %v7827_v22 = vmul.bf16 %v7252_v41, %v7790_v37  ;;  %v7833_v43 = vpop.f32.mrb[52].mxu0 }
 0x22e   : > { %10523 = vst [vmem:[#allocation70_spill] sm:$0xff] %v7806_v59  ;;  %v7823_v5 = vrot.slane %v3194_v31, 4  ;;  %v3904_v53 = vmul.bf16 %v7249_v39, %v7473_v7  ;;  %v4010_v13 = vmul.bf16 %v7252_v41, %v7410_v25  ;;  %10530 = vst [vmem:[#allocation76_spill] sm:$0xff] %v7833_v43  ;;  %v7835_v57 = vrot.slane %v3197_v3, 5  ;;  %v7841_v21 = vpop.f32.mrb[53].mxu0 }
 0x22f   : > { %10525 = vst [vmem:[#allocation72_spill] sm:$0xff] %v7814_v12  ;;  %10529 = vst [vmem:[#allocation75_spill] sm:$0xff] %v7827_v22  ;;  %v2260_v35 = vor.u32 %v2259_v16, %v2256_v62  ;;  %v4011_v44 = vmul.bf16 %v7252_v41, %v7473_v7  ;;  %v4549_v36 = vmul.bf16 %v7254_v42, %v7410_v25 }
 0x230   : > { %10528 = vst [vmem:[#allocation74_spill] sm:$0xff] %v7823_v5  ;;  %10531 = vst [vmem:[#allocation77_spill] sm:$0xff] %v7835_v57  ;;  %v3936_v1 = vadd.bf16 %v3904_v53, %v3829_v23  ;;  %v4059_v47 = vshrl.u32 %v4010_v13, 16  ;;  %v4062_v50 = vshll.u32 %v4010_v13, 16  ;;  %v4550_v31 = vmul.bf16 %v7254_v42, %v7473_v7 }
 0x231   : > { %10532 = vst [vmem:[#allocation78_spill] sm:$0xff] %v7841_v21  ;;  %v3935_v6 = vadd.bf16 %v3903_v55, %v3828_v63  ;;  %v4068_v46 = vshll.u32 %v4011_v44, 16  ;;  %v4072_v27 = vshrl.u32 %v4011_v44, 16  ;;  %v6063_v62 = vrot.slane %v4549_v36, 9  ;;  %v10535_v63 = vld [vmem:[#allocation33_spill] sm:$0xff] }
 0x232   : > { %v4061_v3 = vrot.slane %v4059_v47, 4  ;;  %v4064_v16 = vrot.slane %v4062_v50, 5  ;;  %v4647_v54 = vrot.slane %v4550_v31, 5  ;;  %v10533_v26 = vmul.bf16 %v7254_v42, %v7497_v0  ;;  %v10536_v0 = vld [vmem:[#allocation34_spill] sm:$0xff] }
 0x233   : > { %v7848_v12 = vrot.slane %v2260_v35, 4  ;;  %v4070_v57 = vrot.slane %v4068_v46, 5  ;;  %v4074_v23 = vrot.slane %v4072_v27, 4  ;;  %v821_v53 = vadd.f32 %v7531_v11, %v7187_v10  ;;  %v10537_v35 = vld [vmem:[#allocation35_spill] sm:$0xff]  ;;  %v7860_v27 = vpop.f32.mrb[54].mxu0 }
 0x234   : > { %v4650_v49 = vrot.slane %v10533_v26, 5  ;;  %v4065_v13 = vor.u32 %v4064_v16, %v4061_v3  ;;  %v4648_v7 = vsel %vm7279_vm8, %v6063_v62, %v4647_v54  ;;  %v4649_v55 = vrot.slane %v4647_v54, 4  ;;  %10538 = vst [vmem:[#allocation33_spill] sm:$0xff] %v7860_v27  ;;  %v10539_v54 = vld [vmem:[#allocation40_spill] sm:$0xff]  ;;  %v7866_v3 = vpop.f32.mrb[55].mxu0 }
 0x235   : > { %10534 = vst [vmem:[#allocation79_spill] sm:$0xff] %v7848_v12  ;;  %v823_v44 = vadd.f32 %v10535_v63, %v7192_v19  ;;  %v4075_v36 = vor.u32 %v4074_v23, %v4070_v57  ;;  %v1041_v47 = vmax.f32 %v821_v53, 0.0  ;;  %v825_v26 = vadd.f32 %v10536_v0, %v7187_v10  ;;  %10540 = vst [vmem:[#allocation34_spill] sm:$0xff] %v7866_v3  ;;  %v10542_v27 = vld [vmem:[#allocation32_spill] sm:$0xff] }
 0x236   : > { %v827_v46 = vadd.f32 %v10537_v35, %v7192_v19  ;;  %v4066_v50 = vrot.slane %v4065_v13, 4  ;;  %v4651_v11 = vsel %vm7279_vm8, %v4649_v55, %v4650_v49  ;;  %v831_v62 = vadd.f32 %v10539_v54, %v7187_v10  ;;  %v10541_v13 = vld [vmem:[#allocation42_spill] sm:$0xff] }
 0x237   : > { %v1042_v31 = vmax.f32 %v823_v44, 0.0  ;;  %v4076_v16 = vrot.slane %v4075_v36, 4  ;;  %v1149_v23 = vmin.f32 %v1041_v47, 6.0  ;;  %v1043_v53 = vmax.f32 %v825_v26, 0.0 }
 0x238   : > { %v1044_v63 = vmax.f32 %v827_v46, 0.0  ;;  %v4071_v0 = vsel %vm7285_vm9, %v4066_v50, %v4070_v57  ;;  %v1045_v12 = vmax.f32 %v831_v62, 0.0  ;;  %v833_v5 = vadd.f32 %v10541_v13, %v7192_v19  ;;  %v10544_v50 = vld [vmem:[#allocation43_spill] sm:$0xff]  ;;  %v10545_v62 = vld [vmem:[#allocation22_spill] sm:$0xff] }
 0x239   : > { %v1150_v35 = vmin.f32 %v1042_v31, 6.0  ;;  %v10543_v49 = vrot.slane %v10542_v27, 5  ;;  %v4474_v44 = vadd.bf16 %v4071_v0, %v3935_v6  ;;  %v1151_v54 = vmin.f32 %v1043_v53, 6.0 }
 0x23a   : > { %v1152_v3 = vmin.f32 %v1044_v63, 6.0  ;;  %v7876_v26 = vmin.f32 %v1045_v12, 6.0  ;;  %v1046_v46 = vmax.f32 %v833_v5, 0.0  ;;  %v7880_v31 = vadd.f32 %v10544_v50, %v7187_v10  ;;  %v10548_v5 = vld [vmem:[#allocation24_spill] sm:$0xff] }
 0x23b   : > { %v4081_v55 = vsel %vm7285_vm9, %v4076_v16, %v10543_v49  ;;  %v6163_v47 = vpack.c.bf16 %v1150_v35, %v1149_v23  ;;  %v4789_v21 = vadd.bf16 %v4648_v7, %v4474_v44  ;;  %v10546_v27 = vmul.bf16 %v7243_v32, %v7410_v25  ;;  %v10549_v7 = vld [vmem:[#allocation26_spill] sm:$0xff] }
 0x23c   : > { %v4475_v36 = vadd.bf16 %v4081_v55, %v3936_v1  ;;  %v6164_v57 = vpack.c.bf16 %v1152_v3, %v1151_v54  ;;  %v1154_v12 = vmin.f32 %v1046_v46, 6.0  ;;  %v3128_v23 = vor.u32 %v10549_v7, %v10548_v5  ;;  %v10550_v3 = vld [vmem:[#allocation21_spill] sm:$0xff] }
 0x23d   : > { %v7886_v16 = vadd.bf16 %v10546_v27, %v10545_v62  ;;  %v7890_v1 = vsel %vm7342_vm13, %v6163_v47, 0  ;;  %v4865_v53 = vadd.bf16 %v10550_v3, %v4789_v21  ;;  %v10551_v55 = vmov 0  }
 0x23e   : > { %v4790_v6 = vadd.bf16 %v4651_v11, %v4475_v36  ;;  %10547 = vst [vmem:[#allocation35_spill] sm:$0xff] %v7890_v1  ;;  %v2098_v63 = vmul.bf16 %v7212_v45, %v7890_v1  ;;  %v2640_v0 = vmul.bf16 %v7216_v51, %v7890_v1  ;;  %v3062_v35 = vmul.bf16 %v7245_v34, %v7890_v1 }
 0x23f   : > { %v3601_v13 = vmul.bf16 %v7247_v38, %v7890_v1  ;;  %v1918_v49 = vsel %vm7369_vm14, %v6164_v57, 0  ;;  %v2018_v21 = vmul.bf16 %v7203_v33, %v7890_v1  ;;  %v4897_v44 = vmax.bf16 %v10551_v55, %v4865_v53 }
 0x240   : > { %v4866_v11 = vadd.bf16 %v10550_v3, %v4790_v6  ;;  %v2099_v54 = vmul.bf16 %v7212_v45, %v1918_v49  ;;  %v2263_v36 = vshll.u32 %v2098_v63, 16  ;;  %v2267_v47 = vshrl.u32 %v2098_v63, 16 }
 0x241   : > { %v2641_v50 = vmul.bf16 %v7216_v51, %v1918_v49  ;;  %v7912_v62 = vrot.slane %v2640_v0, 5  ;;  %v2951_v27 = vmul.bf16 %v7243_v32, %v7890_v1  ;;  %v10382_v6 = vmov 1086341312  }
 0x242   : > { %v4898_v46 = vmax.bf16 %v10551_v55, %v4866_v11  ;;  %v4929_v57 = vmin.bf16 %v10382_v6, %v4897_v44  ;;  %v7917_v5 = vrot.slane %v2263_v36, 5  ;;  %v2269_v7 = vrot.slane %v2267_v47, 4 }
 0x243   : > { %10552 = vst [vmem:[#allocation40_spill] sm:$0xff] %v7912_v62  ;;  %v2273_v53 = vshll.u32 %v2099_v54, 16  ;;  %v2762_v63 = vrot.slane %v7912_v62, 4  ;;  %v2763_v60 = vrot.slane %v2641_v50, 5  ;;  %v10554_v11 = vadd.bf16 %v7774_v9, %v7792_v40 }
 0x244   : > { %10553 = vst [vmem:[#allocation42_spill] sm:$0xff] %v7917_v5  ;;  %v4930_v43 = vmin.bf16 %v10382_v6, %v4898_v46  ;;  %v2270_v59 = vor.u32 %v2269_v7, %v7917_v5  ;;  %v3063_v1 = vmul.bf16 %v7245_v34, %v1918_v49  ;;  %v3203_v37 = vshll.u32 %v3062_v35, 16 }
 0x245   : > { %v2983_v0 = vadd.bf16 %v2951_v27, %v10554_v11  ;;  %v2275_v22 = vrot.slane %v2273_v53, 5  ;;  %v7928_v54 = vsel %vm7279_vm8, %v2762_v63, %v2763_v60  ;;  %v3207_v47 = vshrl.u32 %v3062_v35, 16 }
 0x246   : > { %v6083_v44 = vcombine.high %v4929_v57, %v4930_v43  ;;  %v6082_v36 = vcombine.low %v4929_v57, %v4930_v43  ;;  %v2271_v46 = vrot.slane %v2270_v59, 4  ;;  %v7930_v6 = vrot.slane %v3203_v37, 5 }
 0x247   : > { %v3213_v50 = vshll.u32 %v3063_v1, 16  ;;  %v3602_v9 = vmul.bf16 %v7247_v38, %v1918_v49  ;;  %v3209_v40 = vrot.slane %v3207_v47, 4  ;;  %v7934_v27 = vrot.slane %v3601_v13, 5 }
 0x248   : > { %10555 = vst [vmem:[#allocation32_spill] sm:$0xff] %v7930_v6  ;;  %6126 = vmatprep.mubr.msk.bf16.mxu1 %vm5208_vm15, %v6083_v44  ;;  %v4021_v7 = vmul.bf16 %v7252_v41, %v1918_v49  ;;  %v4560_v43 = vmul.bf16 %v7254_v42, %v1918_v49  ;;  %v2276_v60 = vsel %vm7285_vm9, %v2271_v46, %v2275_v22  ;;  %v1047_v22 = vmax.f32 %v7880_v31, 0.0  ;;  %v10560_v44 = vld [vmem:[#allocation31_spill] sm:$0xff] }
 0x249   : > { %5290 = vmatmul.mubr.bf16.vlgmr.msra.gmra.mrb[0].mxu1 %v6082_v36  ;;  %v3215_v35 = vrot.slane %v3213_v50, 5  ;;  %v3717_v59 = vrot.slane %v3602_v9, 5  ;;  %v6165_v37 = vpack.c.bf16 %v1154_v12, %v7876_v26  ;;  %v7941_v1 = vadd.bf16 %v2276_v60, %v2018_v21 }
 0x24a   : > { %v3210_v57 = vor.u32 %v3209_v40, %v7930_v6  ;;  %v3716_v53 = vrot.slane %v7934_v27, 4  ;;  %v7945_v13 = vshll.u32 %v4021_v7, 16  ;;  %v7947_v63 = vrot.slane %v4560_v43, 5 }
 0x24b   : > { %v7951_v49 = vsel %vm7297_vm10, %v6165_v37, 0  ;;  %v3129_v11 = vrot.slane %v3128_v23, 4  ;;  %v10581_v6 = vrot.slane %v7654_v15, 5 }
 0x24c   : > { %v3211_v12 = vrot.slane %v3210_v57, 4  ;;  %v3718_v21 = vsel %vm7279_vm8, %v3716_v53, %v3717_v59  ;;  %v2100_v47 = vmul.bf16 %v7212_v45, %v7951_v49  ;;  %v2642_v46 = vmul.bf16 %v7216_v51, %v7951_v49 }
 0x24d   : > { %v3064_v50 = vmul.bf16 %v7245_v34, %v7951_v49  ;;  %v3603_v9 = vmul.bf16 %v7247_v38, %v7951_v49  ;;  %v7975_v40 = vmul.bf16 %v7252_v41, %v7951_v49  ;;  %v3134_v26 = vsel %vm7285_vm9, %v3129_v11, %v10560_v44 }
 0x24e   : > { %v3216_v23 = vsel %vm7285_vm9, %v3211_v12, %v3215_v35  ;;  %v2278_v43 = vshrl.u32 %v2100_v47, 16  ;;  %v2281_v60 = vshll.u32 %v2100_v47, 16  ;;  %v7977_v59 = vrot.slane %v2642_v46, 9  ;;  %v10563_v46 = vld [vmem:[#allocation29_spill] sm:$0xff] }
 0x24f   : > { %10556 = vst [vmem:[#allocation43_spill] sm:$0xff] %v7975_v40  ;;  %v3522_v7 = vadd.bf16 %v3216_v23, %v2983_v0  ;;  %v3218_v37 = vshrl.u32 %v3064_v50, 16  ;;  %v3221_v57 = vshll.u32 %v3064_v50, 16  ;;  %v7979_v53 = vrot.slane %v3603_v9, 9  ;;  %v10564_v23 = vld [vmem:[#allocation25_spill] sm:$0xff]  ;;  %v7997_v50 = vpop.f32.mrb[56].mxu0 }
 0x250   : > { %10557 = vst [vmem:[#allocation22_spill] sm:$0xff] %v7977_v59  ;;  %v7981_v35 = vmin.f32 %v1047_v22, 6.0  ;;  %v2280_v36 = vrot.slane %v2278_v43, 4  ;;  %v2283_v31 = vrot.slane %v2281_v60, 5  ;;  %v3515_v47 = vadd.bf16 %v3134_v26, %v7886_v16  ;;  %10565 = vst [vmem:[#allocation29_spill] sm:$0xff] %v7997_v50  ;;  %v10566_v9 = vld [vmem:[#allocation37_spill] sm:$0xff] }
 0x251   : > { %10558 = vst [vmem:[#allocation24_spill] sm:$0xff] %v7979_v53  ;;  %v7983_v12 = vadd.bf16 %v3718_v21, %v3522_v7  ;;  %v7988_v62 = vrot.slane %v3218_v37, 4  ;;  %v7990_v0 = vrot.slane %v3221_v57, 5  ;;  %v3694_v22 = vsel %vm7279_vm8, %v10564_v23, %v10563_v46  ;;  %v10567_v43 = vld [vmem:[#allocation41_spill] sm:$0xff]  ;;  %v8005_v60 = vpop.f32.mrb[57].mxu0  ;;  %v10569_v26 = vld [vmem:[#allocation39_spill] sm:$0xff] }
 0x252   : > { %v2284_v21 = vor.u32 %v2283_v31, %v2280_v36  ;;  %v3905_v7 = vmul.bf16 %v7249_v39, %v10566_v9  ;;  %v3906_v11 = vmul.bf16 %v7249_v39, %v10567_v43  ;;  %v4014_v44 = vmul.bf16 %v7252_v41, %v10567_v43  ;;  %10568 = vst [vmem:[#allocation25_spill] sm:$0xff] %v8005_v60  ;;  %v8011_v36 = vpop.f32.mrb[58].mxu0  ;;  %v10572_v23 = vld [vmem:[#allocation36_spill] sm:$0xff] }
 0x253   : > { %10559 = vst [vmem:[#allocation26_spill] sm:$0xff] %v7983_v12  ;;  %10561 = vst [vmem:[#allocation21_spill] sm:$0xff] %v7988_v62  ;;  %v3830_v16 = vadd.bf16 %v3694_v22, %v3515_v47  ;;  %v4083_v37 = vshrl.u32 %v10569_v26, 16  ;;  %v4086_v57 = vshll.u32 %v10569_v26, 16  ;;  %v4552_v46 = vmul.bf16 %v7254_v42, %v10566_v9  ;;  %v8016_v62 = vpop.f32.mrb[59].mxu0  ;;  %v10574_v12 = vld [vmem:[#allocation47_spill] sm:$0xff] }
 0x254   : > { %10562 = vst [vmem:[#allocation31_spill] sm:$0xff] %v7990_v0  ;;  %10570 = vst [vmem:[#allocation37_spill] sm:$0xff] %v8011_v36  ;;  %v8013_v31 = vrot.slane %v2284_v21, 4  ;;  %v3938_v59 = vadd.bf16 %v3906_v11, %v10572_v23  ;;  %v4092_v53 = vshll.u32 %v4014_v44, 16  ;;  %v4096_v0 = vshrl.u32 %v4014_v44, 16  ;;  %v10575_v11 = vld [vmem:[#allocation53_spill] sm:$0xff] }
 0x255   : > { %10573 = vst [vmem:[#allocation39_spill] sm:$0xff] %v8016_v62  ;;  %v3937_v5 = vadd.bf16 %v3905_v7, %v3830_v16  ;;  %v4085_v60 = vrot.slane %v4083_v37, 4  ;;  %v4088_v47 = vrot.slane %v4086_v57, 5  ;;  %v4553_v22 = vmul.bf16 %v7254_v42, %v10567_v43  ;;  %v10576_v44 = vld [vmem:[#allocation54_spill] sm:$0xff]  ;;  %v10577_v37 = vld [vmem:[#allocation55_spill] sm:$0xff]  ;;  %v8030_v43 = vpop.f32.mrb[60].mxu0 }
 0x256   : > { %10571 = vst [vmem:[#allocation41_spill] sm:$0xff] %v8013_v31  ;;  %v4094_v26 = vrot.slane %v4092_v53, 5  ;;  %v4098_v50 = vrot.slane %v4096_v0, 4  ;;  %v6064_v40 = vrot.slane %v4552_v46, 9  ;;  %v837_v36 = vadd.f32 %v10574_v12, %v7192_v19  ;;  %v10578_v53 = vld [vmem:[#allocation56_spill] sm:$0xff]  ;;  %10579 = vst [vmem:[#allocation36_spill] sm:$0xff] %v8030_v43 }
 0x257   : > { %v4089_v21 = vor.u32 %v4088_v47, %v4085_v60  ;;  %v4654_v31 = vrot.slane %v4553_v22, 5  ;;  %v841_v23 = vadd.f32 %v10575_v11, %v7187_v10  ;;  %v843_v62 = vadd.f32 %v10576_v44, %v7192_v19  ;;  %v8034_v22 = vpop.f32.mrb[61].mxu0 }
 0x258   : > { %v4099_v7 = vor.u32 %v4098_v50, %v4094_v26  ;;  %v1048_v16 = vmax.f32 %v837_v36, 0.0  ;;  %v845_v57 = vadd.f32 %v10577_v37, %v7187_v10  ;;  %v847_v0 = vadd.f32 %v10578_v53, %v7192_v19  ;;  %10580 = vst [vmem:[#allocation47_spill] sm:$0xff] %v8034_v22 }
 0x259   : > { %v4090_v46 = vrot.slane %v4089_v21, 4  ;;  %v4655_v12 = vsel %vm7279_vm8, %v6064_v40, %v4654_v31  ;;  %v4656_v60 = vrot.slane %v4654_v31, 4  ;;  %v1049_v47 = vmax.f32 %v841_v23, 0.0 }
 0x25a   : > { %v4100_v11 = vrot.slane %v4099_v7, 4  ;;  %v1156_v44 = vmin.f32 %v1048_v16, 6.0  ;;  %v1050_v50 = vmax.f32 %v843_v62, 0.0  ;;  %v1051_v36 = vmax.f32 %v845_v57, 0.0 }
 0x25b   : > { %v4095_v37 = vsel %vm7285_vm9, %v4090_v46, %v4094_v26  ;;  %v4658_v53 = vsel %vm7279_vm8, %v4656_v60, %v7656_v56  ;;  %v1157_v43 = vmin.f32 %v1049_v47, 6.0  ;;  %v1052_v21 = vmax.f32 %v847_v0, 0.0  ;;  %v10582_v26 = vld [vmem:[#allocation30_spill] sm:$0xff]  ;;  %v10583_v46 = vld [vmem:[#allocation27_spill] sm:$0xff] }
 0x25c   : > { %v4105_v40 = vsel %vm7285_vm9, %v4100_v11, %v10581_v6  ;;  %v4476_v31 = vadd.bf16 %v4095_v37, %v3937_v5  ;;  %v6166_v23 = vpack.c.bf16 %v1156_v44, %v7981_v35  ;;  %v1158_v7 = vmin.f32 %v1050_v50, 6.0 }
 0x25d   : > { %v4477_v62 = vadd.bf16 %v4105_v40, %v3938_v59  ;;  %v8046_v16 = vmin.f32 %v1051_v36, 6.0  ;;  %v8048_v57 = vmin.f32 %v1052_v21, 6.0  ;;  %v2194_v56 = vsel %vm7285_vm9, %v10583_v46, %v10582_v26  ;;  %v8063_v59 = vpop.f32.mrb[62].mxu0 }
 0x25e   : > { %v4791_v0 = vadd.bf16 %v4655_v12, %v4476_v31  ;;  %v8056_v15 = vsel %vm7342_vm13, %v6166_v23, 0  ;;  %v6167_v6 = vpack.c.bf16 %v1158_v7, %v1157_v43  ;;  %v10585_v5 = vmul.bf16 %v7203_v33, %v7410_v25  ;;  %10586 = vst [vmem:[#allocation54_spill] sm:$0xff] %v8063_v59 }
 0x25f   : > { %10584 = vst [vmem:[#allocation53_spill] sm:$0xff] %v8056_v15  ;;  %v4792_v60 = vadd.bf16 %v4658_v53, %v4477_v62  ;;  %v2101_v47 = vmul.bf16 %v7212_v45, %v8056_v15  ;;  %v2643_v11 = vmul.bf16 %v7216_v51, %v8056_v15  ;;  %v3065_v12 = vmul.bf16 %v7245_v34, %v8056_v15 }
 0x260   : > { %v8061_v35 = vadd.bf16 %v2194_v56, %v10585_v5  ;;  %v4867_v44 = vadd.bf16 %v10550_v3, %v4791_v0  ;;  %v3604_v43 = vmul.bf16 %v7247_v38, %v8056_v15  ;;  %v1921_v25 = vsel %vm7369_vm14, %v6167_v6, 0 }
 0x261   : > { %v2020_v50 = vmul.bf16 %v7203_v33, %v8056_v15  ;;  %v4868_v36 = vadd.bf16 %v10550_v3, %v4792_v60  ;;  %v2102_v37 = vmul.bf16 %v7212_v45, %v1921_v25  ;;  %v2287_v53 = vshll.u32 %v2101_v47, 16 }
 0x262   : > { %v2291_v21 = vshrl.u32 %v2101_v47, 16  ;;  %v4899_v40 = vmax.bf16 %v10551_v55, %v4867_v44  ;;  %v2644_v31 = vmul.bf16 %v7216_v51, %v1921_v25  ;;  %v8082_v23 = vrot.slane %v2643_v11, 5 }
 0x263   : > { %v2953_v7 = vmul.bf16 %v7243_v32, %v8056_v15  ;;  %v4900_v62 = vmax.bf16 %v10551_v55, %v4868_v36  ;;  %v8087_v26 = vrot.slane %v2287_v53, 5  ;;  %v2297_v56 = vshll.u32 %v2102_v37, 16 }
 0x264   : > { %10587 = vst [vmem:[#allocation55_spill] sm:$0xff] %v8082_v23  ;;  %v2293_v46 = vrot.slane %v2291_v21, 4  ;;  %v10589_v0 = vmov 1086341312   ;;  %v2769_v5 = vrot.slane %v8082_v23, 4  ;;  %v2770_v60 = vrot.slane %v2644_v31, 5 }
 0x265   : > { %10588 = vst [vmem:[#allocation56_spill] sm:$0xff] %v8087_v26  ;;  %v4931_v6 = vmin.bf16 %v10589_v0, %v4899_v40  ;;  %v10590_v47 = vadd.bf16 %v7928_v54, %v7941_v1  ;;  %v4932_v11 = vmin.bf16 %v10589_v0, %v4900_v62  ;;  %v2299_v22 = vrot.slane %v2297_v56, 5 }
 0x266   : > { %v2294_v59 = vor.u32 %v2293_v46, %v8087_v26  ;;  %v3066_v36 = vmul.bf16 %v7245_v34, %v1921_v25  ;;  %v8099_v53 = vsel %vm7279_vm8, %v2769_v5, %v2770_v60  ;;  %v3227_v37 = vshll.u32 %v3065_v12, 16 }
 0x267   : > { %v2985_v44 = vadd.bf16 %v2953_v7, %v10590_v47  ;;  %v3231_v21 = vshrl.u32 %v3065_v12, 16  ;;  %v3605_v40 = vmul.bf16 %v7247_v38, %v1921_v25  ;;  %v6085_v31 = vcombine.high %v4931_v6, %v4932_v11 }
 0x268   : > { %v6084_v23 = vcombine.low %v4931_v6, %v4932_v11  ;;  %v2295_v15 = vrot.slane %v2294_v59, 4  ;;  %v3237_v54 = vshll.u32 %v3066_v36, 16  ;;  %v8102_v1 = vrot.slane %v3227_v37, 5 }
 0x269   : > { %v3233_v7 = vrot.slane %v3231_v21, 4  ;;  %v8104_v62 = vrot.slane %v3604_v43, 5  ;;  %v3724_v46 = vrot.slane %v3605_v40, 5  ;;  %6127 = vmatprep.mubr.msk.bf16.mxu1 %vm5208_vm15, %v6085_v31  ;;  %v4024_v12 = vmul.bf16 %v7252_v41, %v1921_v25 }
 0x26a   : > { %v2300_v56 = vsel %vm7285_vm9, %v2295_v15, %v2299_v22  ;;  %v3239_v5 = vrot.slane %v3237_v54, 5  ;;  %v4563_v60 = vmul.bf16 %v7254_v42, %v1921_v25  ;;  %5298 = vmatmul.mubr.bf16.gmra.mrb[4].mxu1 %v6084_v23  ;;  %v6168_v43 = vpack.c.bf16 %v8048_v57, %v8046_v16  ;;  %v10591_v22 = vld [vmem:[#allocation28_spill] sm:$0xff]  ;;  %v10592_v15 = vld [vmem:[#allocation23_spill] sm:$0xff]  ;;  %v10594_v23 = vld [vmem:[#allocation45_spill] sm:$0xff] }
 0x26b   : > { %v8111_v6 = vadd.bf16 %v2300_v56, %v2020_v50  ;;  %v3234_v59 = vor.u32 %v3233_v7, %v8102_v1  ;;  %v3723_v47 = vrot.slane %v8104_v62, 4  ;;  %v8117_v11 = vshll.u32 %v4024_v12, 16  ;;  %v10593_v25 = vld [vmem:[#allocation44_spill] sm:$0xff] }
 0x26c   : > { %v8119_v36 = vrot.slane %v4563_v60, 5  ;;  %v2740_v37 = vsel %vm7279_vm8, %v10592_v15, %v10591_v22  ;;  %v3152_v50 = vor.u32 %v10594_v23, %v10593_v25  ;;  %v8133_v16 = vsel %vm7297_vm10, %v6168_v43, 0 }
 0x26d   : > { %v3235_v40 = vrot.slane %v3234_v59, 4  ;;  %v3725_v31 = vsel %vm7279_vm8, %v3723_v47, %v3724_v46  ;;  %v2103_v7 = vmul.bf16 %v7212_v45, %v8133_v16  ;;  %v2645_v56 = vmul.bf16 %v7216_v51, %v8133_v16 }
 0x26e   : > { %v3067_v60 = vmul.bf16 %v7245_v34, %v8133_v16  ;;  %v3606_v59 = vmul.bf16 %v7247_v38, %v8133_v16  ;;  %v2871_v21 = vadd.bf16 %v2740_v37, %v8061_v35  ;;  %v3908_v35 = vmul.bf16 %v7249_v39, %v7732_v30  ;;  %v8176_v37 = vpop.f32.mrb[63].mxu0 }
 0x26f   : > { %v3240_v12 = vsel %vm7285_vm9, %v3235_v40, %v3239_v5  ;;  %v2302_v43 = vshrl.u32 %v2103_v7, 16  ;;  %v2305_v22 = vshll.u32 %v2103_v7, 16  ;;  %v8150_v15 = vrot.slane %v2645_v56, 9  ;;  %v10600_v56 = vld [vmem:[#allocation52_spill] sm:$0xff]  ;;  %10603 = vst [vmem:[#allocation45_spill] sm:$0xff] %v8176_v37 }
 0x270   : > { %v3524_v47 = vadd.bf16 %v3240_v12, %v2985_v44  ;;  %v3242_v25 = vshrl.u32 %v3067_v60, 16  ;;  %v3245_v23 = vshll.u32 %v3067_v60, 16  ;;  %v8152_v54 = vrot.slane %v3606_v59, 9  ;;  %v10601_v12 = vld [vmem:[#allocation46_spill] sm:$0xff] }
 0x271   : > { %10595 = vst [vmem:[#allocation30_spill] sm:$0xff] %v8150_v15  ;;  %v8156_v5 = vmul.bf16 %v7252_v41, %v8133_v16  ;;  %v2304_v46 = vrot.slane %v2302_v43, 4  ;;  %v2307_v57 = vrot.slane %v2305_v22, 5  ;;  %v3153_v7 = vrot.slane %v3152_v50, 4  ;;  %v10604_v43 = vld [vmem:[#allocation51_spill] sm:$0xff] }
 0x272   : > { %10596 = vst [vmem:[#allocation27_spill] sm:$0xff] %v8152_v54  ;;  %v8158_v40 = vadd.bf16 %v3725_v31, %v3524_v47  ;;  %v8161_v26 = vrot.slane %v3242_v25, 4  ;;  %v8163_v44 = vrot.slane %v3245_v23, 5  ;;  %v3701_v60 = vsel %vm7279_vm8, %v10601_v12, %v10600_v56 }
 0x273   : > { %v2308_v59 = vor.u32 %v2307_v57, %v2304_v46  ;;  %v10602_v15 = vmul.bf16 %v7243_v32, %v10566_v9  ;;  %v3907_v47 = vmul.bf16 %v7249_v39, %v7673_v52  ;;  %v3158_v50 = vsel %vm7285_vm9, %v3153_v7, %v10604_v43 }
 0x274   : > { %10597 = vst [vmem:[#allocation28_spill] sm:$0xff] %v8158_v40  ;;  %10598 = vst [vmem:[#allocation23_spill] sm:$0xff] %v8161_v26  ;;  %v4017_v22 = vmul.bf16 %v7252_v41, %v7732_v30  ;;  %v4107_v57 = vshrl.u32 %v7706_v24, 16  ;;  %v4110_v46 = vshll.u32 %v7706_v24, 16  ;;  %v3940_v23 = vadd.bf16 %v3908_v35, %v7693_v4 }
 0x275   : > { %10599 = vst [vmem:[#allocation44_spill] sm:$0xff] %v8163_v44  ;;  %v2978_v31 = vadd.bf16 %v10602_v15, %v2871_v21  ;;  %v8185_v21 = vpop.f32.mrb[64].mxu0  ;;  %v8187_v15 = vrot.slane %v2308_v59, 4  ;;  %v4555_v56 = vmul.bf16 %v7254_v42, %v7673_v52  ;;  %v4556_v24 = vmul.bf16 %v7254_v42, %v7732_v30  ;;  %v10608_v30 = vld [vmem:[#allocation57_spill] sm:$0xff] }
 0x276   : > { %10605 = vst [vmem:[#allocation52_spill] sm:$0xff] %v8185_v21  ;;  %v8192_v12 = vpop.f32.mrb[65].mxu0  ;;  %v4109_v7 = vrot.slane %v4107_v57, 4  ;;  %v4112_v43 = vrot.slane %v4110_v46, 5  ;;  %v4116_v54 = vshll.u32 %v4017_v22, 16  ;;  %v4120_v44 = vshrl.u32 %v4017_v22, 16 }
 0x277   : > { %10606 = vst [vmem:[#allocation46_spill] sm:$0xff] %v8187_v15  ;;  %v3517_v25 = vadd.bf16 %v3158_v50, %v2978_v31  ;;  %10607 = vst [vmem:[#allocation51_spill] sm:$0xff] %v8192_v12  ;;  %v6065_v37 = vrot.slane %v4555_v56, 9  ;;  %v851_v59 = vadd.f32 %v7665_v29, %v7187_v10  ;;  %v853_v35 = vadd.f32 %v7675_v20, %v7192_v19 }
 0x278   : > { %v4113_v31 = vor.u32 %v4112_v43, %v4109_v7  ;;  %v4118_v50 = vrot.slane %v4116_v54, 5  ;;  %v4122_v4 = vrot.slane %v4120_v44, 4  ;;  %v4661_v12 = vrot.slane %v4556_v24, 5  ;;  %v8206_v43 = vpop.f32.mrb[66].mxu0 }
 0x279   : > { %v3832_v26 = vadd.bf16 %v3701_v60, %v3517_v25  ;;  %v1053_v57 = vmax.f32 %v851_v59, 0.0  ;;  %v855_v22 = vadd.f32 %v7681_v17, %v7187_v10  ;;  %v1054_v25 = vmax.f32 %v853_v35, 0.0  ;;  %10609 = vst [vmem:[#allocation57_spill] sm:$0xff] %v8206_v43  ;;  %v8210_v24 = vpop.f32.mrb[67].mxu0 }
 0x27a   : > { %v4114_v60 = vrot.slane %v4113_v31, 4  ;;  %v4123_v46 = vor.u32 %v4122_v4, %v4118_v50  ;;  %v857_v56 = vadd.f32 %v10608_v30, %v7192_v19  ;;  %v4662_v29 = vsel %vm7279_vm8, %v6065_v37, %v4661_v12  ;;  %10610 = vst [vmem:[#allocation80_spill] sm:$0xff] %v8210_v24  ;;  %v10611_v37 = vld [vmem:[#allocation61_spill] sm:$0xff] }
 0x27b   : > { %v3939_v15 = vadd.bf16 %v3907_v47, %v3832_v26  ;;  %v4663_v54 = vrot.slane %v4661_v12, 4  ;;  %v1161_v44 = vmin.f32 %v1053_v57, 6.0  ;;  %v1055_v7 = vmax.f32 %v855_v22, 0.0 }
 0x27c   : > { %v4119_v20 = vsel %vm7285_vm9, %v4114_v60, %v4118_v50  ;;  %v4124_v26 = vrot.slane %v4123_v46, 4  ;;  %v1162_v47 = vmin.f32 %v1054_v25, 6.0  ;;  %v1056_v17 = vmax.f32 %v857_v56, 0.0  ;;  %v10613_v60 = vld [vmem:[#allocation63_spill] sm:$0xff]  ;;  %v10614_v56 = vld [vmem:[#allocation65_spill] sm:$0xff] }
 0x27d   : > { %v4478_v59 = vadd.bf16 %v4119_v20, %v3939_v15  ;;  %v4665_v31 = vsel %vm7279_vm8, %v4663_v54, %v7770_v61  ;;  %v1163_v4 = vmin.f32 %v1055_v7, 6.0  ;;  %v861_v12 = vadd.f32 %v10611_v37, %v7187_v10  ;;  %v10615_v20 = vld [vmem:[#allocation49_spill] sm:$0xff] }
 0x27e   : > { %v10612_v35 = vrot.slane %v7768_v58, 5  ;;  %v6169_v50 = vpack.c.bf16 %v1162_v47, %v1161_v44  ;;  %v1164_v22 = vmin.f32 %v1056_v17, 6.0  ;;  %v863_v46 = vadd.f32 %v10613_v60, %v7192_v19 }
 0x27f   : > { %v4793_v15 = vadd.bf16 %v4662_v29, %v4478_v59  ;;  %v1057_v30 = vmax.f32 %v861_v12, 0.0  ;;  %v8225_v61 = vadd.f32 %v10614_v56, %v7187_v10 }
 0x280   : > { %v4129_v57 = vsel %vm7285_vm9, %v4124_v26, %v10612_v35  ;;  %v8229_v54 = vsel %vm7342_vm13, %v6169_v50, 0  ;;  %v6170_v58 = vpack.c.bf16 %v1164_v22, %v1163_v4  ;;  %v1058_v7 = vmax.f32 %v863_v46, 0.0  ;;  %v10616_v26 = vld [vmem:[#allocation50_spill] sm:$0xff] }
 0x281   : > { %v4479_v25 = vadd.bf16 %v4129_v57, %v3940_v23  ;;  %v2218_v44 = vsel %vm7285_vm9, %v10616_v26, %v10615_v20  ;;  %v4869_v23 = vadd.bf16 %v10550_v3, %v4793_v15  ;;  %v2104_v29 = vmul.bf16 %v7212_v45, %v8229_v54 }
 0x282   : > { %v2646_v17 = vmul.bf16 %v7216_v51, %v8229_v54  ;;  %v3068_v59 = vmul.bf16 %v7245_v34, %v8229_v54  ;;  %v3607_v4 = vmul.bf16 %v7247_v38, %v8229_v54  ;;  %v1924_v37 = vsel %vm7369_vm14, %v6170_v58, 0 }
 0x283   : > { %v4794_v47 = vadd.bf16 %v4665_v31, %v4479_v25  ;;  %v2022_v31 = vmul.bf16 %v7203_v33, %v8229_v54  ;;  %v4901_v35 = vmax.bf16 %v10551_v55, %v4869_v23  ;;  %v2105_v57 = vmul.bf16 %v7212_v45, %v1924_v37 }
 0x284   : > { %v2311_v50 = vshll.u32 %v2104_v29, 16  ;;  %v2315_v22 = vshrl.u32 %v2104_v29, 16  ;;  %v2647_v60 = vmul.bf16 %v7216_v51, %v1924_v37  ;;  %v8252_v46 = vrot.slane %v2646_v17, 5 }
 0x285   : > { %v4870_v12 = vadd.bf16 %v10550_v3, %v4794_v47  ;;  %v2955_v25 = vmul.bf16 %v7243_v32, %v8229_v54  ;;  %v4933_v56 = vmin.bf16 %v10589_v0, %v4901_v35  ;;  %v2321_v20 = vshll.u32 %v2105_v57, 16 }
 0x286   : > { %10617 = vst [vmem:[#allocation61_spill] sm:$0xff] %v8252_v46  ;;  %v8258_v58 = vrot.slane %v2311_v50, 5  ;;  %v2317_v26 = vrot.slane %v2315_v22, 4  ;;  %v2776_v47 = vrot.slane %v8252_v46, 4  ;;  %v2777_v23 = vrot.slane %v2647_v60, 5 }
 0x287   : > { %v4902_v15 = vmax.bf16 %v10551_v55, %v4870_v12  ;;  %v10619_v29 = vadd.bf16 %v8099_v53, %v8111_v6  ;;  %v2323_v43 = vrot.slane %v2321_v20, 5  ;;  %v3069_v21 = vmul.bf16 %v7245_v34, %v1924_v37 }
 0x288   : > { %10618 = vst [vmem:[#allocation63_spill] sm:$0xff] %v8258_v58  ;;  %v3251_v40 = vshll.u32 %v3068_v59, 16  ;;  %v2318_v12 = vor.u32 %v2317_v26, %v8258_v58  ;;  %v8269_v35 = vsel %vm7279_vm8, %v2776_v47, %v2777_v23  ;;  %v3255_v57 = vshrl.u32 %v3068_v59, 16 }
 0x289   : > { %v2987_v24 = vadd.bf16 %v2955_v25, %v10619_v29  ;;  %v4934_v17 = vmin.bf16 %v10589_v0, %v4902_v15  ;;  %v3608_v50 = vmul.bf16 %v7247_v38, %v1924_v37  ;;  %v3261_v53 = vshll.u32 %v3069_v21, 16 }
 0x28a   : > { %v8272_v46 = vrot.slane %v3251_v40, 5  ;;  %v2319_v6 = vrot.slane %v2318_v12, 4  ;;  %v3257_v25 = vrot.slane %v3255_v57, 4  ;;  %v8274_v15 = vrot.slane %v3607_v4, 5 }
 0x28b   : > { %v6087_v22 = vcombine.high %v4933_v56, %v4934_v17  ;;  %v6086_v60 = vcombine.low %v4933_v56, %v4934_v17  ;;  %v3731_v20 = vrot.slane %v3608_v50, 5  ;;  %v3263_v26 = vrot.slane %v3261_v53, 5  ;;  %v10622_v53 = vld [vmem:[#allocation48_spill] sm:$0xff] }
 0x28c   : > { %10620 = vst [vmem:[#allocation65_spill] sm:$0xff] %v8272_v46  ;;  %v4027_v29 = vmul.bf16 %v7252_v41, %v1924_v37  ;;  %v4566_v47 = vmul.bf16 %v7254_v42, %v1924_v37  ;;  %v1165_v59 = vmin.f32 %v1057_v30, 6.0  ;;  %v2324_v56 = vsel %vm7285_vm9, %v2319_v6, %v2323_v43  ;;  %v10623_v6 = vld [vmem:[#allocation38_spill] sm:$0xff] }
 0x28d   : > { %6128 = vmatprep.mubr.msk.bf16.mxu1 %vm5208_vm15, %v6087_v22  ;;  %v3258_v40 = vor.u32 %v3257_v25, %v8272_v46  ;;  %v3730_v21 = vrot.slane %v8274_v15, 4  ;;  %v1166_v23 = vmin.f32 %v1058_v7, 6.0  ;;  %v8283_v4 = vadd.bf16 %v2324_v56, %v2022_v31  ;;  %v10632_v31 = vld [vmem:[#allocation59_spill] sm:$0xff] }
 0x28e   : > { %5306 = vmatmul.mubr.bf16.gmra.mrb[8].mxu1 %v6086_v60  ;;  %v8285_v17 = vshll.u32 %v4027_v29, 16  ;;  %v8287_v12 = vrot.slane %v4566_v47, 5  ;;  %v1059_v57 = vmax.f32 %v8225_v61, 0.0  ;;  %v10621_v43 = vmul.bf16 %v7203_v33, %v10566_v9  ;;  %v10626_v29 = vld [vmem:[#allocation62_spill] sm:$0xff] }
 0x28f   : > { %v3259_v50 = vrot.slane %v3258_v40, 4  ;;  %v3732_v30 = vsel %vm7279_vm8, %v3730_v21, %v3731_v20  ;;  %v6171_v37 = vpack.c.bf16 %v1166_v23, %v1165_v59  ;;  %v2747_v61 = vsel %vm7279_vm8, %v10623_v6, %v10622_v53 }
 0x290   : > { %v2555_v22 = vadd.bf16 %v2218_v44, %v10621_v43  ;;  %v8298_v60 = vmin.f32 %v1059_v57, 6.0  ;;  %v10625_v44 = vld [vmem:[#allocation60_spill] sm:$0xff] }
 0x291   : > { %v3264_v25 = vsel %vm7285_vm9, %v3259_v50, %v3263_v26  ;;  %v8308_v20 = vsel %vm7297_vm10, %v6171_v37, 0  ;;  %v3176_v47 = vor.u32 %v10626_v29, %v10625_v44 }
 0x292   : > { %10624 = vst [vmem:[#allocation49_spill] sm:$0xff] %v8308_v20  ;;  %v2873_v9 = vadd.bf16 %v2747_v61, %v2555_v22  ;;  %v3526_v59 = vadd.bf16 %v3264_v25, %v2987_v24  ;;  %v2106_v40 = vmul.bf16 %v7212_v45, %v8308_v20  ;;  %v2648_v21 = vmul.bf16 %v7216_v51, %v8308_v20 }
 0x293   : > { %v3070_v23 = vmul.bf16 %v7245_v34, %v8308_v20  ;;  %v3609_v57 = vmul.bf16 %v7247_v38, %v8308_v20  ;;  %v8326_v24 = vmul.bf16 %v7252_v41, %v8308_v20  ;;  %v10631_v25 = vmul.bf16 %v7243_v32, %v7673_v52 }
 0x294   : > { %v8328_v50 = vadd.bf16 %v3732_v30, %v3526_v59  ;;  %v2326_v37 = vshrl.u32 %v2106_v40, 16  ;;  %v2329_v43 = vshll.u32 %v2106_v40, 16  ;;  %v8330_v22 = vrot.slane %v2648_v21, 9  ;;  %v10635_v21 = vld [vmem:[#allocation69_spill] sm:$0xff] }
 0x295   : > { %10627 = vst [vmem:[#allocation50_spill] sm:$0xff] %v8326_v24  ;;  %v3266_v53 = vshrl.u32 %v3070_v23, 16  ;;  %v3269_v6 = vshll.u32 %v3070_v23, 16  ;;  %v8332_v61 = vrot.slane %v3609_v57, 9  ;;  %v2980_v44 = vadd.bf16 %v10631_v25, %v2873_v9  ;;  %v10636_v57 = vld [vmem:[#allocation35_spill] sm:$0xff]  ;;  %v10641_v25 = vld [vmem:[#allocation70_spill] sm:$0xff] }
 0x296   : > { %10628 = vst [vmem:[#allocation48_spill] sm:$0xff] %v8328_v50  ;;  %10629 = vst [vmem:[#allocation38_spill] sm:$0xff] %v8330_v22  ;;  %v2328_v29 = vrot.slane %v2326_v37, 4  ;;  %v2331_v56 = vrot.slane %v2329_v43, 5  ;;  %v3177_v26 = vrot.slane %v3176_v47, 4  ;;  %v3708_v30 = vsel %vm7279_vm8, %v10632_v31, %v7754_v2  ;;  %v8349_v22 = vpop.f32.mrb[68].mxu0 }
 0x297   : > { %10630 = vst [vmem:[#allocation60_spill] sm:$0xff] %v8332_v61  ;;  %v8341_v59 = vrot.slane %v3266_v53, 4  ;;  %v8343_v40 = vrot.slane %v3269_v6, 5  ;;  %v3909_v23 = vmul.bf16 %v7249_v39, %v10635_v21  ;;  %v3910_v7 = vmul.bf16 %v7249_v39, %v10636_v57  ;;  %10637 = vst [vmem:[#allocation69_spill] sm:$0xff] %v8349_v22  ;;  %v10638_v37 = vld [vmem:[#allocation68_spill] sm:$0xff]  ;;  %v10639_v31 = vld [vmem:[#allocation75_spill] sm:$0xff] }
 0x298   : > { %v2332_v9 = vor.u32 %v2331_v56, %v2328_v29  ;;  %v3182_v47 = vsel %vm7285_vm9, %v3177_v26, %v10638_v37  ;;  %v4020_v2 = vmul.bf16 %v7252_v41, %v10636_v57  ;;  %v4131_v43 = vshrl.u32 %v10639_v31, 16  ;;  %v8357_v53 = vpop.f32.mrb[69].mxu0 }
 0x299   : > { %10633 = vst [vmem:[#allocation62_spill] sm:$0xff] %v8341_v59  ;;  %10634 = vst [vmem:[#allocation59_spill] sm:$0xff] %v8343_v40  ;;  %v3519_v6 = vadd.bf16 %v3182_v47, %v2980_v44  ;;  %v3942_v61 = vadd.bf16 %v3910_v7, %v10641_v25  ;;  %v4134_v40 = vshll.u32 %v10639_v31, 16  ;;  %v4558_v59 = vmul.bf16 %v7254_v42, %v10635_v21  ;;  %v8363_v56 = vpop.f32.mrb[70].mxu0  ;;  %v10645_v25 = vld [vmem:[#allocation73_spill] sm:$0xff] }
 0x29a   : > { %10640 = vst [vmem:[#allocation35_spill] sm:$0xff] %v8357_v53  ;;  %10642 = vst [vmem:[#allocation68_spill] sm:$0xff] %v8363_v56  ;;  %v8365_v29 = vrot.slane %v2332_v9, 4  ;;  %v4133_v26 = vrot.slane %v4131_v43, 4  ;;  %v4140_v37 = vshll.u32 %v4020_v2, 16  ;;  %v4144_v58 = vshrl.u32 %v4020_v2, 16 }
 0x29b   : > { %v8367_v22 = vpop.f32.mrb[71].mxu0  ;;  %v3834_v24 = vadd.bf16 %v3708_v30, %v3519_v6  ;;  %v4136_v50 = vrot.slane %v4134_v40, 5  ;;  %v4559_v44 = vmul.bf16 %v7254_v42, %v10636_v57  ;;  %v6066_v7 = vrot.slane %v4558_v59, 9  ;;  %v10646_v56 = vld [vmem:[#allocation76_spill] sm:$0xff]  ;;  %v10647_v2 = vld [vmem:[#allocation78_spill] sm:$0xff]  ;;  %v10648_v57 = vld [vmem:[#allocation33_spill] sm:$0xff] }
 0x29c   : > { %10643 = vst [vmem:[#allocation75_spill] sm:$0xff] %v8365_v29  ;;  %10644 = vst [vmem:[#allocation70_spill] sm:$0xff] %v8367_v22  ;;  %v4142_v47 = vrot.slane %v4140_v37, 5  ;;  %v4146_v31 = vrot.slane %v4144_v58, 4  ;;  %v867_v53 = vadd.f32 %v10645_v25, %v7192_v19  ;;  %v871_v9 = vadd.f32 %v10646_v56, %v7187_v10  ;;  %v8379_v37 = vpop.f32.mrb[72].mxu0 }
 0x29d   : > { %v3941_v29 = vadd.bf16 %v3909_v23, %v3834_v24  ;;  %v4137_v43 = vor.u32 %v4136_v50, %v4133_v26  ;;  %v4668_v46 = vrot.slane %v4559_v44, 5  ;;  %v873_v22 = vadd.f32 %v10647_v2, %v7192_v19  ;;  %10649 = vst [vmem:[#allocation73_spill] sm:$0xff] %v8379_v37  ;;  %v8383_v24 = vpop.f32.mrb[73].mxu0 }
 0x29e   : > { %v4147_v30 = vor.u32 %v4146_v31, %v4142_v47  ;;  %v1060_v40 = vmax.f32 %v867_v53, 0.0  ;;  %v1061_v6 = vmax.f32 %v871_v9, 0.0  ;;  %v875_v59 = vadd.f32 %v10648_v57, %v7187_v10  ;;  %10650 = vst [vmem:[#allocation76_spill] sm:$0xff] %v8383_v24 }
 0x29f   : > { %v4138_v58 = vrot.slane %v4137_v43, 4  ;;  %v4669_v25 = vsel %vm7279_vm8, %v6066_v7, %v4668_v46  ;;  %v4670_v20 = vrot.slane %v4668_v46, 4  ;;  %v1062_v56 = vmax.f32 %v873_v22, 0.0  ;;  %v10651_v43 = vld [vmem:[#allocation34_spill] sm:$0xff] }
 0x2a0   : > { %v4148_v50 = vrot.slane %v4147_v30, 4  ;;  %v1168_v23 = vmin.f32 %v1060_v40, 6.0  ;;  %v1169_v26 = vmin.f32 %v1061_v6, 6.0  ;;  %v1063_v44 = vmax.f32 %v875_v59, 0.0 }
 0x2a1   : > { %v4143_v53 = vsel %vm7285_vm9, %v4138_v58, %v4142_v47  ;;  %v4672_v31 = vsel %vm7279_vm8, %v4670_v20, %v7947_v63  ;;  %v1170_v9 = vmin.f32 %v1062_v56, 6.0  ;;  %v8392_v2 = vadd.f32 %v10651_v43, %v7192_v19  ;;  %v10653_v63 = vld [vmem:[#allocation67_spill] sm:$0xff]  ;;  %v10654_v20 = vld [vmem:[#allocation64_spill] sm:$0xff]  ;;  %v10656_v56 = vld [vmem:[#allocation66_spill] sm:$0xff] }
 0x2a2   : > { %v10652_v46 = vrot.slane %v7945_v13, 5  ;;  %v4480_v7 = vadd.bf16 %v4143_v53, %v3941_v29  ;;  %v6172_v30 = vpack.c.bf16 %v1168_v23, %v8298_v60  ;;  %v8399_v40 = vmin.f32 %v1063_v44, 6.0  ;;  %v8417_v23 = vpop.f32.mrb[74].mxu0 }
 0x2a3   : > { %v6173_v6 = vpack.c.bf16 %v1170_v9, %v1169_v26  ;;  %v1064_v57 = vmax.f32 %v8392_v2, 0.0  ;;  %v2242_v59 = vsel %vm7285_vm9, %v10654_v20, %v10653_v63  ;;  %v10655_v29 = vmul.bf16 %v7203_v33, %v7673_v52  ;;  %10658 = vst [vmem:[#allocation78_spill] sm:$0xff] %v8417_v23 }
 0x2a4   : > { %v4153_v22 = vsel %vm7285_vm9, %v4148_v50, %v10652_v46  ;;  %v4795_v58 = vadd.bf16 %v4669_v25, %v4480_v7  ;;  %v8408_v13 = vsel %vm7342_vm13, %v6172_v30, 0  ;;  %v10657_v50 = vld [vmem:[#allocation58_spill] sm:$0xff] }
 0x2a5   : > { %v4481_v47 = vadd.bf16 %v4153_v22, %v3942_v61  ;;  %v2557_v60 = vadd.bf16 %v2242_v59, %v10655_v29  ;;  %v2754_v61 = vsel %vm7279_vm8, %v10657_v50, %v10656_v56  ;;  %v2107_v44 = vmul.bf16 %v7212_v45, %v8408_v13 }
 0x2a6   : > { %v2649_v25 = vmul.bf16 %v7216_v51, %v8408_v13  ;;  %v3071_v53 = vmul.bf16 %v7245_v34, %v8408_v13  ;;  %v4871_v52 = vadd.bf16 %v10550_v3, %v4795_v58  ;;  %v3610_v9 = vmul.bf16 %v7247_v38, %v8408_v13 }
 0x2a7   : > { %v4796_v26 = vadd.bf16 %v4672_v31, %v4481_v47  ;;  %v1927_v43 = vsel %vm7369_vm14, %v6173_v6, 0  ;;  %v2024_v31 = vmul.bf16 %v7203_v33, %v8408_v13  ;;  %v2335_v22 = vshll.u32 %v2107_v44, 16 }
 0x2a8   : > { %v2108_v46 = vmul.bf16 %v7212_v45, %v1927_v43  ;;  %v2339_v7 = vshrl.u32 %v2107_v44, 16  ;;  %v4903_v30 = vmax.bf16 %v10551_v55, %v4871_v52  ;;  %v2650_v47 = vmul.bf16 %v7216_v51, %v1927_v43 }
 0x2a9   : > { %v4872_v2 = vadd.bf16 %v10550_v3, %v4796_v26  ;;  %v8436_v63 = vrot.slane %v2649_v25, 5  ;;  %v2957_v20 = vmul.bf16 %v7243_v32, %v8408_v13  ;;  %v8441_v59 = vrot.slane %v2335_v22, 5 }
 0x2aa   : > { %v2341_v58 = vrot.slane %v2339_v7, 4  ;;  %v2345_v29 = vshll.u32 %v2108_v46, 16  ;;  %v4935_v56 = vmin.bf16 %v10589_v0, %v4903_v30  ;;  %v2784_v26 = vrot.slane %v2650_v47, 5 }
 0x2ab   : > { %10659 = vst [vmem:[#allocation33_spill] sm:$0xff] %v8436_v63  ;;  %v4904_v6 = vmax.bf16 %v10551_v55, %v4872_v2  ;;  %10660 = vst [vmem:[#allocation34_spill] sm:$0xff] %v8441_v59  ;;  %v2783_v50 = vrot.slane %v8436_v63, 4  ;;  %v10661_v44 = vadd.bf16 %v8269_v35, %v8283_v4  ;;  %v3072_v2 = vmul.bf16 %v7245_v34, %v1927_v43 }
 0x2ac   : > { %v2342_v23 = vor.u32 %v2341_v58, %v8441_v59  ;;  %v2347_v24 = vrot.slane %v2345_v29, 5  ;;  %v3275_v46 = vshll.u32 %v3071_v53, 16  ;;  %v3279_v7 = vshrl.u32 %v3071_v53, 16 }
 0x2ad   : > { %v2989_v52 = vadd.bf16 %v2957_v20, %v10661_v44  ;;  %v4936_v25 = vmin.bf16 %v10589_v0, %v4904_v6  ;;  %v8453_v22 = vsel %vm7279_vm8, %v2783_v50, %v2784_v26  ;;  %v3611_v30 = vmul.bf16 %v7247_v38, %v1927_v43 }
 0x2ae   : > { %v2343_v37 = vrot.slane %v2342_v23, 4  ;;  %v3285_v35 = vshll.u32 %v3072_v2, 16  ;;  %v8456_v4 = vrot.slane %v3275_v46, 5  ;;  %v3281_v20 = vrot.slane %v3279_v7, 4  ;;  %v10663_v7 = vld [vmem:[#allocation74_spill] sm:$0xff] }
 0x2af   : > { %v6089_v47 = vcombine.high %v4935_v56, %v4936_v25  ;;  %v6088_v63 = vcombine.low %v4935_v56, %v4936_v25  ;;  %v8458_v6 = vrot.slane %v3610_v9, 5  ;;  %v3738_v58 = vrot.slane %v3611_v30, 5 }
 0x2b0   : > { %10662 = vst [vmem:[#allocation67_spill] sm:$0xff] %v8456_v4  ;;  %v2348_v29 = vsel %vm7285_vm9, %v2343_v37, %v2347_v24  ;;  %v3287_v50 = vrot.slane %v3285_v35, 5  ;;  %v4030_v53 = vmul.bf16 %v7252_v41, %v1927_v43  ;;  %v4569_v26 = vmul.bf16 %v7254_v42, %v1927_v43  ;;  %v10664_v37 = vld [vmem:[#allocation77_spill] sm:$0xff] }
 0x2b1   : > { %6129 = vmatprep.mubr.msk.bf16.mxu1 %vm5208_vm15, %v6089_v47  ;;  %v8465_v56 = vadd.bf16 %v2348_v29, %v2024_v31  ;;  %v3282_v23 = vor.u32 %v3281_v20, %v8456_v4  ;;  %v3737_v44 = vrot.slane %v8458_v6, 4  ;;  %v1172_v9 = vmin.f32 %v1064_v57, 6.0  ;;  %v10674_v4 = vld [vmem:[#allocation26_spill] sm:$0xff] }
 0x2b2   : > { %5314 = vmatmul.mubr.bf16.gmra.mrb[12].mxu1 %v6088_v63  ;;  %v8469_v25 = vshll.u32 %v4030_v53, 16  ;;  %v8471_v2 = vrot.slane %v4569_v26, 5  ;;  %v2875_v46 = vadd.bf16 %v2754_v61, %v2557_v60  ;;  %v3200_v24 = vor.u32 %v10664_v37, %v10663_v7  ;;  %v10666_v60 = vld [vmem:[#allocation72_spill] sm:$0xff]  ;;  %v10668_v53 = vld [vmem:[#allocation53_spill] sm:$0xff] }
 0x2b3   : > { %v3283_v43 = vrot.slane %v3282_v23, 4  ;;  %v3739_v31 = vsel %vm7279_vm8, %v3737_v44, %v3738_v58  ;;  %v6174_v63 = vpack.c.bf16 %v1172_v9, %v8399_v40  ;;  %v10665_v57 = vmul.bf16 %v7243_v32, %v10635_v21  ;;  %v10673_v44 = vld [vmem:[#allocation32_spill] sm:$0xff] }
 0x2b4   : > { %v3201_v20 = vrot.slane %v3200_v24, 4  ;;  %v3715_v61 = vsel %vm7279_vm8, %v10666_v60, %v7934_v27  ;;  %v3911_v40 = vmul.bf16 %v7249_v39, %v7951_v49  ;;  %v3912_v26 = vmul.bf16 %v7249_v39, %v10668_v53 }
 0x2b5   : > { %v2982_v35 = vadd.bf16 %v10665_v57, %v2875_v46  ;;  %v3288_v29 = vsel %vm7285_vm9, %v3283_v43, %v3287_v50  ;;  %v8492_v58 = vsel %vm7297_vm10, %v6174_v63, 0 }
 0x2b6   : > { %10667 = vst [vmem:[#allocation64_spill] sm:$0xff] %v8492_v58  ;;  %v3528_v23 = vadd.bf16 %v3288_v29, %v2989_v52  ;;  %v2109_v27 = vmul.bf16 %v7212_v45, %v8492_v58  ;;  %v2651_v50 = vmul.bf16 %v7216_v51, %v8492_v58  ;;  %v3073_v46 = vmul.bf16 %v7245_v34, %v8492_v58 }
 0x2b7   : > { %v3612_v7 = vmul.bf16 %v7247_v38, %v8492_v58  ;;  %v8512_v52 = vmul.bf16 %v7252_v41, %v8492_v58  ;;  %v3206_v9 = vsel %vm7285_vm9, %v3201_v20, %v10673_v44  ;;  %v3944_v58 = vadd.bf16 %v3912_v26, %v10674_v4 }
 0x2b8   : > { %v8514_v37 = vadd.bf16 %v3739_v31, %v3528_v23  ;;  %v2350_v24 = vshrl.u32 %v2109_v27, 16  ;;  %v2353_v43 = vshll.u32 %v2109_v27, 16  ;;  %v8516_v63 = vrot.slane %v2651_v50, 9  ;;  %v10678_v50 = vld [vmem:[#allocation43_spill] sm:$0xff] }
 0x2b9   : > { %10669 = vst [vmem:[#allocation66_spill] sm:$0xff] %v8512_v52  ;;  %v3290_v57 = vshrl.u32 %v3073_v46, 16  ;;  %v3293_v60 = vshll.u32 %v3073_v46, 16  ;;  %v8518_v29 = vrot.slane %v3612_v7, 9  ;;  %v3521_v59 = vadd.bf16 %v3206_v9, %v2982_v35  ;;  %v8524_v52 = vpop.f32.mrb[75].mxu0 }
 0x2ba   : > { %10670 = vst [vmem:[#allocation58_spill] sm:$0xff] %v8514_v37  ;;  %10671 = vst [vmem:[#allocation74_spill] sm:$0xff] %v8516_v63  ;;  %v2352_v47 = vrot.slane %v2350_v24, 4  ;;  %v2355_v30 = vrot.slane %v2353_v43, 5  ;;  %v4023_v27 = vmul.bf16 %v7252_v41, %v10668_v53  ;;  %v4155_v46 = vshrl.u32 %v10678_v50, 16  ;;  %v8533_v7 = vpop.f32.mrb[76].mxu0 }
 0x2bb   : > { %10672 = vst [vmem:[#allocation77_spill] sm:$0xff] %v8518_v29  ;;  %10675 = vst [vmem:[#allocation72_spill] sm:$0xff] %v8524_v52  ;;  %v8526_v31 = vrot.slane %v3290_v57, 4  ;;  %v8528_v23 = vrot.slane %v3293_v60, 5  ;;  %v3836_v20 = vadd.bf16 %v3715_v61, %v3521_v59  ;;  %v4158_v44 = vshll.u32 %v10678_v50, 16  ;;  %v8538_v35 = vpop.f32.mrb[77].mxu0 }
 0x2bc   : > { %10679 = vst [vmem:[#allocation26_spill] sm:$0xff] %v8533_v7  ;;  %v2356_v63 = vor.u32 %v2355_v30, %v2352_v47  ;;  %v4561_v4 = vmul.bf16 %v7254_v42, %v7951_v49  ;;  %10680 = vst [vmem:[#allocation43_spill] sm:$0xff] %v8538_v35  ;;  %v4157_v26 = vrot.slane %v4155_v46, 4  ;;  %v4164_v9 = vshll.u32 %v4023_v27, 16  ;;  %v10682_v61 = vld [vmem:[#allocation29_spill] sm:$0xff] }
 0x2bd   : > { %10676 = vst [vmem:[#allocation53_spill] sm:$0xff] %v8526_v31  ;;  %10677 = vst [vmem:[#allocation32_spill] sm:$0xff] %v8528_v23  ;;  %v4168_v24 = vshrl.u32 %v4023_v27, 16  ;;  %v4562_v43 = vmul.bf16 %v7254_v42, %v10668_v53  ;;  %v3943_v60 = vadd.bf16 %v3911_v40, %v3836_v20  ;;  %v4160_v29 = vrot.slane %v4158_v44, 5  ;;  %v10683_v35 = vld [vmem:[#allocation25_spill] sm:$0xff]  ;;  %v10685_v53 = vld [vmem:[#allocation39_spill] sm:$0xff] }
 0x2be   : > { %v8542_v57 = vrot.slane %v2356_v63, 4  ;;  %v6067_v23 = vrot.slane %v4561_v4, 9  ;;  %v4166_v30 = vrot.slane %v4164_v9, 5  ;;  %v881_v50 = vadd.f32 %v10682_v61, %v7187_v10  ;;  %v10684_v27 = vld [vmem:[#allocation37_spill] sm:$0xff] }
 0x2bf   : > { %v4170_v59 = vrot.slane %v4168_v24, 4  ;;  %v4675_v47 = vrot.slane %v4562_v43, 5  ;;  %v4161_v31 = vor.u32 %v4160_v29, %v4157_v26  ;;  %v883_v46 = vadd.f32 %v10683_v35, %v7192_v19  ;;  %v8554_v29 = vpop.f32.mrb[78].mxu0 }
 0x2c0   : > { %10681 = vst [vmem:[#allocation81_spill] sm:$0xff] %v8542_v57  ;;  %v885_v7 = vadd.f32 %v10684_v27, %v7187_v10  ;;  %v887_v63 = vadd.f32 %v10685_v53, %v7192_v19  ;;  %v1065_v44 = vmax.f32 %v881_v50, 0.0  ;;  %10686 = vst [vmem:[#allocation29_spill] sm:$0xff] %v8554_v29  ;;  %v10687_v27 = vld [vmem:[#allocation36_spill] sm:$0xff]  ;;  %v8561_v53 = vpop.f32.mrb[79].mxu0  ;;  %v10689_v50 = vrot.slane %v8117_v11, 5 }
 0x2c1   : > { %v4171_v57 = vor.u32 %v4170_v59, %v4166_v30  ;;  %v4676_v40 = vsel %vm7279_vm8, %v6067_v23, %v4675_v47  ;;  %v4677_v20 = vrot.slane %v4675_v47, 4  ;;  %v4162_v4 = vrot.slane %v4161_v31, 4  ;;  %10688 = vst [vmem:[#allocation25_spill] sm:$0xff] %v8561_v53  ;;  %v10691_v53 = vld [vmem:[#allocation54_spill] sm:$0xff]  ;;  %v10693_v11 = vld [vmem:[#allocation79_spill] sm:$0xff] }
 0x2c2   : > { %v1066_v9 = vmax.f32 %v883_v46, 0.0  ;;  %v1067_v24 = vmax.f32 %v885_v7, 0.0  ;;  %v1068_v43 = vmax.f32 %v887_v63, 0.0  ;;  %v1173_v61 = vmin.f32 %v1065_v44, 6.0 }
 0x2c3   : > { %v4172_v26 = vrot.slane %v4171_v57, 4  ;;  %v4679_v35 = vsel %vm7279_vm8, %v4677_v20, %v8119_v36  ;;  %v891_v59 = vadd.f32 %v10687_v27, %v7187_v10  ;;  %v4167_v23 = vsel %vm7285_vm9, %v4162_v4, %v4166_v30  ;;  %v10690_v36 = vld [vmem:[#allocation47_spill] sm:$0xff] }
 0x2c4   : > { %v1174_v31 = vmin.f32 %v1066_v9, 6.0  ;;  %v1175_v47 = vmin.f32 %v1067_v24, 6.0  ;;  %v1176_v7 = vmin.f32 %v1068_v43, 6.0  ;;  %v4482_v46 = vadd.bf16 %v4167_v23, %v3943_v60  ;;  %v10692_v24 = vld [vmem:[#allocation42_spill] sm:$0xff] }
 0x2c5   : > { %v4177_v57 = vsel %vm7285_vm9, %v4172_v26, %v10689_v50  ;;  %v1069_v63 = vmax.f32 %v891_v59, 0.0  ;;  %v893_v20 = vadd.f32 %v10690_v36, %v7192_v19  ;;  %v895_v52 = vadd.f32 %v10691_v53, %v7187_v10 }
 0x2c6   : > { %v4483_v44 = vadd.bf16 %v4177_v57, %v3944_v58  ;;  %v6175_v27 = vpack.c.bf16 %v1174_v31, %v1173_v61  ;;  %v6176_v29 = vpack.c.bf16 %v1176_v7, %v1175_v47  ;;  %v4797_v30 = vadd.bf16 %v4676_v40, %v4482_v46 }
 0x2c7   : > { %v8573_v4 = vmin.f32 %v1069_v63, 6.0  ;;  %v1070_v9 = vmax.f32 %v893_v20, 0.0  ;;  %v2266_v43 = vsel %vm7285_vm9, %v10693_v11, %v10692_v24  ;;  %v1071_v61 = vmax.f32 %v895_v52, 0.0 }
 0x2c8   : > { %v4798_v60 = vadd.bf16 %v4679_v35, %v4483_v44  ;;  %v8581_v26 = vsel %vm7342_vm13, %v6175_v27, 0  ;;  %v1930_v58 = vsel %vm7369_vm14, %v6176_v29, 0  ;;  %v4873_v59 = vadd.bf16 %v10550_v3, %v4797_v30 }
 0x2c9   : > { %10694 = vst [vmem:[#allocation37_spill] sm:$0xff] %v8581_v26  ;;  %v2110_v40 = vmul.bf16 %v7212_v45, %v8581_v26  ;;  %v2652_v53 = vmul.bf16 %v7216_v51, %v8581_v26  ;;  %v3074_v23 = vmul.bf16 %v7245_v34, %v8581_v26  ;;  %v3613_v31 = vmul.bf16 %v7247_v38, %v8581_v26 }
 0x2ca   : > { %v4874_v35 = vadd.bf16 %v10550_v3, %v4798_v60  ;;  %v2026_v29 = vmul.bf16 %v7203_v33, %v8581_v26  ;;  %v2111_v52 = vmul.bf16 %v7212_v45, %v1930_v58  ;;  %v4905_v47 = vmax.bf16 %v10551_v55, %v4873_v59 }
 0x2cb   : > { %v2359_v7 = vshll.u32 %v2110_v40, 16  ;;  %v2363_v50 = vshrl.u32 %v2110_v40, 16  ;;  %v2653_v57 = vmul.bf16 %v7216_v51, %v1930_v58  ;;  %v8601_v36 = vrot.slane %v2652_v53, 5 }
 0x2cc   : > { %v4906_v46 = vmax.bf16 %v10551_v55, %v4874_v35  ;;  %v2369_v63 = vshll.u32 %v2111_v52, 16  ;;  %v2959_v20 = vmul.bf16 %v7243_v32, %v8581_v26  ;;  %v4937_v44 = vmin.bf16 %v10589_v0, %v4905_v47 }
 0x2cd   : > { %10695 = vst [vmem:[#allocation39_spill] sm:$0xff] %v8601_v36  ;;  %v8606_v27 = vrot.slane %v2359_v7, 5  ;;  %v2365_v30 = vrot.slane %v2363_v50, 4  ;;  %v2791_v24 = vrot.slane %v2653_v57, 5  ;;  %v2790_v59 = vrot.slane %v8601_v36, 4 }
 0x2ce   : > { %v4938_v11 = vmin.bf16 %v10589_v0, %v4906_v46  ;;  %v2371_v60 = vrot.slane %v2369_v63, 5  ;;  %v10697_v40 = vadd.bf16 %v8453_v22, %v8465_v56  ;;  %v3075_v52 = vmul.bf16 %v7245_v34, %v1930_v58 }
 0x2cf   : > { %10696 = vst [vmem:[#allocation36_spill] sm:$0xff] %v8606_v27  ;;  %v2366_v53 = vor.u32 %v2365_v30, %v8606_v27  ;;  %v3299_v37 = vshll.u32 %v3074_v23, 16  ;;  %v3303_v26 = vshrl.u32 %v3074_v23, 16  ;;  %v8617_v50 = vsel %vm7279_vm8, %v2790_v59, %v2791_v24 }
 0x2d0   : > { %v2991_v35 = vadd.bf16 %v2959_v20, %v10697_v40  ;;  %v6091_v47 = vcombine.high %v4937_v44, %v4938_v11  ;;  %v6090_v7 = vcombine.low %v4937_v44, %v4938_v11  ;;  %v3614_v57 = vmul.bf16 %v7247_v38, %v1930_v58 }
 0x2d1   : > { %v2367_v46 = vrot.slane %v2366_v53, 4  ;;  %v8620_v63 = vrot.slane %v3299_v37, 5  ;;  %v3305_v36 = vrot.slane %v3303_v26, 4  ;;  %v3309_v22 = vshll.u32 %v3075_v52, 16 }
 0x2d2   : > { %6130 = vmatprep.mubr.msk.bf16.mxu1 %vm5208_vm15, %v6091_v47  ;;  %v8623_v56 = vrot.slane %v3613_v31, 5  ;;  %v3745_v20 = vrot.slane %v3614_v57, 5  ;;  %v4033_v23 = vmul.bf16 %v7252_v41, %v1930_v58  ;;  %v4572_v44 = vmul.bf16 %v7254_v42, %v1930_v58  ;;  %v10700_v57 = vld [vmem:[#allocation71_spill] sm:$0xff] }
 0x2d3   : > { %5322 = vmatmul.mubr.bf16.gmra.mrb[16].mxu1 %v6090_v7  ;;  %v2372_v30 = vsel %vm7285_vm9, %v2367_v46, %v2371_v60  ;;  %v3306_v24 = vor.u32 %v3305_v36, %v8620_v63  ;;  %v3311_v11 = vrot.slane %v3309_v22, 5  ;;  %v1178_v37 = vmin.f32 %v1070_v9, 6.0  ;;  %v10699_v7 = vld [vmem:[#allocation40_spill] sm:$0xff]  ;;  %v10702_v22 = vld [vmem:[#allocation31_spill] sm:$0xff] }
 0x2d4   : > { %v8630_v59 = vadd.bf16 %v2372_v30, %v2026_v29  ;;  %v3744_v26 = vrot.slane %v8623_v56, 4  ;;  %v8633_v40 = vshll.u32 %v4033_v23, 16  ;;  %v8635_v31 = vrot.slane %v4572_v44, 5  ;;  %v10706_v36 = vld [vmem:[#allocation24_spill] sm:$0xff] }
 0x2d5   : > { %v3307_v53 = vrot.slane %v3306_v24, 4  ;;  %v6177_v52 = vpack.c.bf16 %v1178_v37, %v8573_v4  ;;  %v8638_v58 = vmin.f32 %v1071_v61, 6.0  ;;  %v10698_v60 = vmul.bf16 %v7203_v33, %v10635_v21  ;;  %v10701_v61 = vld [vmem:[#allocation21_spill] sm:$0xff] }
 0x2d6   : > { %v3746_v29 = vsel %vm7279_vm8, %v3744_v26, %v3745_v20  ;;  %v2761_v46 = vsel %vm7279_vm8, %v10700_v57, %v10699_v7  ;;  %v3224_v23 = vor.u32 %v10702_v22, %v10701_v61  ;;  %v4564_v9 = vmul.bf16 %v7254_v42, %v8133_v16 }
 0x2d7   : > { %v2559_v47 = vadd.bf16 %v2266_v43, %v10698_v60  ;;  %v3312_v4 = vsel %vm7285_vm9, %v3307_v53, %v3311_v11  ;;  %v8656_v21 = vsel %vm7297_vm10, %v6177_v52, 0 }
 0x2d8   : > { %v3530_v44 = vadd.bf16 %v3312_v4, %v2991_v35  ;;  %v2112_v30 = vmul.bf16 %v7212_v45, %v8656_v21  ;;  %v2654_v24 = vmul.bf16 %v7216_v51, %v8656_v21  ;;  %v3076_v37 = vmul.bf16 %v7245_v34, %v8656_v21 }
 0x2d9   : > { %v2877_v43 = vadd.bf16 %v2761_v46, %v2559_v47  ;;  %v3615_v26 = vmul.bf16 %v7247_v38, %v8656_v21  ;;  %v8674_v35 = vmul.bf16 %v7252_v41, %v8656_v21  ;;  %v10705_v4 = vmul.bf16 %v7243_v32, %v7951_v49 }
 0x2da   : > { %v8676_v53 = vadd.bf16 %v3746_v29, %v3530_v44  ;;  %v2374_v52 = vshrl.u32 %v2112_v30, 16  ;;  %v2377_v60 = vshll.u32 %v2112_v30, 16  ;;  %v8678_v47 = vrot.slane %v2654_v24, 9 }
 0x2db   : > { %v3314_v7 = vshrl.u32 %v3076_v37, 16  ;;  %v3317_v57 = vshll.u32 %v3076_v37, 16  ;;  %v8680_v46 = vrot.slane %v3615_v26, 9  ;;  %v2984_v61 = vadd.bf16 %v10705_v4, %v2877_v43  ;;  %v8697_v26 = vpop.f32.mrb[80].mxu0 }
 0x2dc   : > { %10703 = vst [vmem:[#allocation47_spill] sm:$0xff] %v8678_v47  ;;  %v2376_v22 = vrot.slane %v2374_v52, 4  ;;  %v2379_v20 = vrot.slane %v2377_v60, 5  ;;  %v3225_v11 = vrot.slane %v3224_v23, 4  ;;  %v3722_v29 = vsel %vm7279_vm8, %v10706_v36, %v8104_v62  ;;  %10709 = vst [vmem:[#allocation40_spill] sm:$0xff] %v8697_v26  ;;  %v8705_v52 = vpop.f32.mrb[81].mxu0 }
 0x2dd   : > { %10704 = vst [vmem:[#allocation54_spill] sm:$0xff] %v8680_v46  ;;  %v8689_v44 = vrot.slane %v3314_v7, 4  ;;  %v8691_v30 = vrot.slane %v3317_v57, 5  ;;  %v3913_v24 = vmul.bf16 %v7249_v39, %v8133_v16  ;;  %v3914_v37 = vmul.bf16 %v7249_v39, %v8229_v54  ;;  %10710 = vst [vmem:[#allocation71_spill] sm:$0xff] %v8705_v52  ;;  %v10711_v7 = vld [vmem:[#allocation28_spill] sm:$0xff] }
 0x2de   : > { %v2380_v43 = vor.u32 %v2379_v20, %v2376_v22  ;;  %v3230_v23 = vsel %vm7285_vm9, %v3225_v11, %v8102_v1  ;;  %v4026_v62 = vmul.bf16 %v7252_v41, %v8229_v54  ;;  %v4179_v36 = vshrl.u32 %v8156_v5, 16  ;;  %v8711_v20 = vpop.f32.mrb[82].mxu0 }
 0x2df   : > { %10707 = vst [vmem:[#allocation42_spill] sm:$0xff] %v8689_v44  ;;  %10708 = vst [vmem:[#allocation79_spill] sm:$0xff] %v8691_v30  ;;  %v3523_v60 = vadd.bf16 %v3230_v23, %v2984_v61  ;;  %v3946_v57 = vadd.bf16 %v3914_v37, %v10711_v7  ;;  %v4182_v4 = vshll.u32 %v8156_v5, 16  ;;  %v8715_v46 = vpop.f32.mrb[83].mxu0  ;;  %v4565_v61 = vmul.bf16 %v7254_v42, %v8229_v54  ;;  %v10715_v7 = vld [vmem:[#allocation45_spill] sm:$0xff] }
 0x2e0   : > { %10712 = vst [vmem:[#allocation21_spill] sm:$0xff] %v8711_v20  ;;  %v8713_v22 = vrot.slane %v2380_v43, 4  ;;  %v4181_v1 = vrot.slane %v4179_v36, 4  ;;  %v4188_v11 = vshll.u32 %v4026_v62, 16  ;;  %v4192_v47 = vshrl.u32 %v4026_v62, 16  ;;  %10714 = vst [vmem:[#allocation24_spill] sm:$0xff] %v8715_v46 }
 0x2e1   : > { %v3838_v30 = vadd.bf16 %v3722_v29, %v3523_v60  ;;  %v4184_v44 = vrot.slane %v4182_v4, 5  ;;  %v6068_v37 = vrot.slane %v4564_v9, 9  ;;  %v897_v27 = vadd.f32 %v10715_v7, %v7192_v19  ;;  %v10716_v20 = vld [vmem:[#allocation52_spill] sm:$0xff]  ;;  %v10717_v62 = vld [vmem:[#allocation51_spill] sm:$0xff]  ;;  %v10718_v54 = vld [vmem:[#allocation57_spill] sm:$0xff] }
 0x2e2   : > { %10713 = vst [vmem:[#allocation31_spill] sm:$0xff] %v8713_v22  ;;  %v4190_v23 = vrot.slane %v4188_v11, 5  ;;  %v4194_v5 = vrot.slane %v4192_v47, 4  ;;  %v901_v43 = vadd.f32 %v10716_v20, %v7187_v10  ;;  %v4682_v52 = vrot.slane %v4565_v61, 5  ;;  %v8727_v11 = vpop.f32.mrb[84].mxu0 }
 0x2e3   : > { %v3945_v22 = vadd.bf16 %v3913_v24, %v3838_v30  ;;  %v4185_v36 = vor.u32 %v4184_v44, %v4181_v1  ;;  %v903_v46 = vadd.f32 %v10717_v62, %v7192_v19  ;;  %v1072_v60 = vmax.f32 %v897_v27, 0.0  ;;  %10719 = vst [vmem:[#allocation28_spill] sm:$0xff] %v8727_v11  ;;  %v8731_v30 = vpop.f32.mrb[85].mxu0 }
 0x2e4   : > { %v4195_v29 = vor.u32 %v4194_v5, %v4190_v23  ;;  %v1073_v4 = vmax.f32 %v901_v43, 0.0  ;;  %v905_v9 = vadd.f32 %v10718_v54, %v7187_v10  ;;  %v4683_v7 = vsel %vm7279_vm8, %v6068_v37, %v4682_v52  ;;  %10720 = vst [vmem:[#allocation45_spill] sm:$0xff] %v8731_v30 }
 0x2e5   : > { %v4186_v47 = vrot.slane %v4185_v36, 4  ;;  %v4684_v26 = vrot.slane %v4682_v52, 4  ;;  %v1074_v20 = vmax.f32 %v903_v46, 0.0  ;;  %v1180_v24 = vmin.f32 %v1072_v60, 6.0  ;;  %v10721_v36 = vld [vmem:[#allocation80_spill] sm:$0xff] }
 0x2e6   : > { %v4196_v44 = vrot.slane %v4195_v29, 4  ;;  %v1181_v1 = vmin.f32 %v1073_v4, 6.0  ;;  %v1075_v61 = vmax.f32 %v905_v9, 0.0  ;;  %v8740_v62 = vadd.f32 %v10721_v36, %v7192_v19 }
 0x2e7   : > { %v4191_v27 = vsel %vm7285_vm9, %v4186_v47, %v4190_v23  ;;  %v4686_v5 = vsel %vm7279_vm8, %v4684_v26, %v8287_v12  ;;  %v1182_v43 = vmin.f32 %v1074_v20, 6.0  ;;  %v10722_v46 = vrot.slane %v8285_v17, 5  ;;  %v10723_v12 = vld [vmem:[#allocation56_spill] sm:$0xff]  ;;  %v10724_v26 = vld [vmem:[#allocation41_spill] sm:$0xff]  ;;  %v10726_v20 = vld [vmem:[#allocation55_spill] sm:$0xff] }
 0x2e8   : > { %v4484_v37 = vadd.bf16 %v4191_v27, %v3945_v22  ;;  %v6178_v29 = vpack.c.bf16 %v1180_v24, %v8638_v58  ;;  %v8747_v60 = vmin.f32 %v1075_v61, 6.0  ;;  %v1076_v54 = vmax.f32 %v8740_v62, 0.0  ;;  %v8765_v24 = vpop.f32.mrb[86].mxu0 }
 0x2e9   : > { %v4201_v52 = vsel %vm7285_vm9, %v4196_v44, %v10722_v46  ;;  %v6179_v4 = vpack.c.bf16 %v1182_v43, %v1181_v1  ;;  %v2290_v9 = vsel %vm7285_vm9, %v10724_v26, %v10723_v12  ;;  %v10725_v22 = vmul.bf16 %v7203_v33, %v7951_v49  ;;  %v10727_v44 = vld [vmem:[#allocation22_spill] sm:$0xff]  ;;  %10728 = vst [vmem:[#allocation52_spill] sm:$0xff] %v8765_v24 }
 0x2ea   : > { %v4485_v23 = vadd.bf16 %v4201_v52, %v3946_v57  ;;  %v4799_v47 = vadd.bf16 %v4683_v7, %v4484_v37  ;;  %v8756_v17 = vsel %vm7342_vm13, %v6178_v29, 0  ;;  %v2768_v57 = vsel %vm7279_vm8, %v10727_v44, %v10726_v20 }
 0x2eb   : > { %v2561_v58 = vadd.bf16 %v2290_v9, %v10725_v22  ;;  %v2113_v61 = vmul.bf16 %v7212_v45, %v8756_v17  ;;  %v2655_v7 = vmul.bf16 %v7216_v51, %v8756_v17  ;;  %v3077_v27 = vmul.bf16 %v7245_v34, %v8756_v17 }
 0x2ec   : > { %v4800_v1 = vadd.bf16 %v4686_v5, %v4485_v23  ;;  %v4875_v49 = vadd.bf16 %v10550_v3, %v4799_v47  ;;  %v3616_v43 = vmul.bf16 %v7247_v38, %v8756_v17  ;;  %v1933_v36 = vsel %vm7369_vm14, %v6179_v4, 0 }
 0x2ed   : > { %v2028_v5 = vmul.bf16 %v7203_v33, %v8756_v17  ;;  %v2114_v46 = vmul.bf16 %v7212_v45, %v1933_v36  ;;  %v2383_v52 = vshll.u32 %v2113_v61, 16  ;;  %v2387_v37 = vshrl.u32 %v2113_v61, 16 }
 0x2ee   : > { %v4876_v62 = vadd.bf16 %v10550_v3, %v4800_v1  ;;  %v4907_v29 = vmax.bf16 %v10551_v55, %v4875_v49  ;;  %v2656_v23 = vmul.bf16 %v7216_v51, %v1933_v36  ;;  %v8784_v12 = vrot.slane %v2655_v7, 5 }
 0x2ef   : > { %v2961_v26 = vmul.bf16 %v7243_v32, %v8756_v17  ;;  %v8789_v9 = vrot.slane %v2383_v52, 5  ;;  %v2389_v47 = vrot.slane %v2387_v37, 4  ;;  %v2393_v22 = vshll.u32 %v2114_v46, 16 }
 0x2f0   : > { %10729 = vst [vmem:[#allocation51_spill] sm:$0xff] %v8784_v12  ;;  %v4908_v4 = vmax.bf16 %v10551_v55, %v4876_v62  ;;  %v4939_v20 = vmin.bf16 %v10589_v0, %v4907_v29  ;;  %v2797_v44 = vrot.slane %v8784_v12, 4  ;;  %v2798_v1 = vrot.slane %v2656_v23, 5 }
 0x2f1   : > { %10730 = vst [vmem:[#allocation57_spill] sm:$0xff] %v8789_v9  ;;  %v10731_v61 = vadd.bf16 %v8617_v50, %v8630_v59  ;;  %v2390_v24 = vor.u32 %v2389_v47, %v8789_v9  ;;  %v2395_v30 = vrot.slane %v2393_v22, 5  ;;  %v3078_v62 = vmul.bf16 %v7245_v34, %v1933_v36 }
 0x2f2   : > { %v4940_v7 = vmin.bf16 %v10589_v0, %v4908_v4  ;;  %v8801_v52 = vsel %vm7279_vm8, %v2797_v44, %v2798_v1  ;;  %v3323_v46 = vshll.u32 %v3077_v27, 16  ;;  %v3327_v37 = vshrl.u32 %v3077_v27, 16 }
 0x2f3   : > { %v2993_v49 = vadd.bf16 %v2961_v26, %v10731_v61  ;;  %v3617_v29 = vmul.bf16 %v7247_v38, %v1933_v36  ;;  %v2391_v11 = vrot.slane %v2390_v24, 4  ;;  %v3333_v50 = vshll.u32 %v3078_v62, 16 }
 0x2f4   : > { %v6093_v23 = vcombine.high %v4939_v20, %v4940_v7  ;;  %v6092_v12 = vcombine.low %v4939_v20, %v4940_v7  ;;  %v8804_v59 = vrot.slane %v3323_v46, 5  ;;  %v3329_v26 = vrot.slane %v3327_v37, 4  ;;  %v10733_v37 = vld [vmem:[#allocation23_spill] sm:$0xff] }
 0x2f5   : > { %v8806_v4 = vrot.slane %v3616_v43, 5  ;;  %v3752_v47 = vrot.slane %v3617_v29, 5  ;;  %v2396_v22 = vsel %vm7285_vm9, %v2391_v11, %v2395_v30  ;;  %v3335_v44 = vrot.slane %v3333_v50, 5  ;;  %v10734_v11 = vld [vmem:[#allocation44_spill] sm:$0xff] }
 0x2f6   : > { %10732 = vst [vmem:[#allocation80_spill] sm:$0xff] %v8804_v59  ;;  %6131 = vmatprep.mubr.msk.bf16.mxu1 %vm5208_vm15, %v6093_v23  ;;  %v4036_v27 = vmul.bf16 %v7252_v41, %v1933_v36  ;;  %v4575_v1 = vmul.bf16 %v7254_v42, %v1933_v36  ;;  %v8813_v20 = vadd.bf16 %v2396_v22, %v2028_v5  ;;  %v1184_v43 = vmin.f32 %v1076_v54, 6.0 }
 0x2f7   : > { %5330 = vmatmul.mubr.bf16.gmra.mrb[20].mxu1 %v6092_v12  ;;  %v3330_v24 = vor.u32 %v3329_v26, %v8804_v59  ;;  %v3751_v61 = vrot.slane %v8806_v4, 4  ;;  %v2879_v46 = vadd.bf16 %v2768_v57, %v2561_v58  ;;  %v3248_v30 = vor.u32 %v10734_v11, %v10733_v37  ;;  %v10736_v58 = vld [vmem:[#allocation27_spill] sm:$0xff]  ;;  %v10744_v59 = vld [vmem:[#allocation48_spill] sm:$0xff] }
 0x2f8   : > { %v8817_v7 = vshll.u32 %v4036_v27, 16  ;;  %v8819_v62 = vrot.slane %v4575_v1, 5  ;;  %v6180_v12 = vpack.c.bf16 %v1184_v43, %v8747_v60  ;;  %v10735_v54 = vmul.bf16 %v7243_v32, %v8133_v16  ;;  %v10738_v60 = vld [vmem:[#allocation49_spill] sm:$0xff] }
 0x2f9   : > { %v3331_v36 = vrot.slane %v3330_v24, 4  ;;  %v3753_v5 = vsel %vm7279_vm8, %v3751_v61, %v3752_v47  ;;  %v3249_v26 = vrot.slane %v3248_v30, 4  ;;  %v3729_v57 = vsel %vm7279_vm8, %v10736_v58, %v8274_v15  ;;  %v10743_v61 = vld [vmem:[#allocation65_spill] sm:$0xff] }
 0x2fa   : > { %v2986_v50 = vadd.bf16 %v10735_v54, %v2879_v46  ;;  %v8840_v47 = vsel %vm7297_vm10, %v6180_v12, 0  ;;  %v3915_v27 = vmul.bf16 %v7249_v39, %v10738_v60  ;;  %v3916_v1 = vmul.bf16 %v7249_v39, %v8408_v13 }
 0x2fb   : > { %v3336_v22 = vsel %vm7285_vm9, %v3331_v36, %v3335_v44  ;;  %10737 = vst [vmem:[#allocation56_spill] sm:$0xff] %v8840_v47  ;;  %v2115_v15 = vmul.bf16 %v7212_v45, %v8840_v47  ;;  %v2657_v44 = vmul.bf16 %v7216_v51, %v8840_v47  ;;  %v3079_v46 = vmul.bf16 %v7245_v34, %v8840_v47 }
 0x2fc   : > { %v3532_v24 = vadd.bf16 %v3336_v22, %v2993_v49  ;;  %v3618_v37 = vmul.bf16 %v7247_v38, %v8840_v47  ;;  %v8860_v49 = vmul.bf16 %v7252_v41, %v8840_v47  ;;  %v3254_v43 = vsel %vm7285_vm9, %v3249_v26, %v10743_v61 }
 0x2fd   : > { %v2398_v30 = vshrl.u32 %v2115_v15, 16  ;;  %v2401_v36 = vshll.u32 %v2115_v15, 16  ;;  %v8864_v12 = vrot.slane %v2657_v44, 9  ;;  %v3338_v54 = vshrl.u32 %v3079_v46, 16  ;;  %v10748_v44 = vld [vmem:[#allocation50_spill] sm:$0xff] }
 0x2fe   : > { %10739 = vst [vmem:[#allocation41_spill] sm:$0xff] %v8860_v49  ;;  %v8862_v11 = vadd.bf16 %v3753_v5, %v3532_v24  ;;  %v3341_v58 = vshll.u32 %v3079_v46, 16  ;;  %v8866_v22 = vrot.slane %v3618_v37, 9  ;;  %v3525_v9 = vadd.bf16 %v3254_v43, %v2986_v50  ;;  %v8872_v49 = vpop.f32.mrb[87].mxu0 }
 0x2ff   : > { %10741 = vst [vmem:[#allocation22_spill] sm:$0xff] %v8864_v12  ;;  %v2400_v23 = vrot.slane %v2398_v30, 4  ;;  %v2403_v29 = vrot.slane %v2401_v36, 5  ;;  %v3948_v47 = vadd.bf16 %v3916_v1, %v10744_v59  ;;  %10745 = vst [vmem:[#allocation44_spill] sm:$0xff] %v8872_v49  ;;  %v8874_v5 = vrot.slane %v3338_v54, 4  ;;  %v8881_v37 = vpop.f32.mrb[88].mxu0 }
 0x300   : > { %10740 = vst [vmem:[#allocation55_spill] sm:$0xff] %v8862_v11  ;;  %10742 = vst [vmem:[#allocation23_spill] sm:$0xff] %v8866_v22  ;;  %v8876_v24 = vrot.slane %v3341_v58, 5  ;;  %v4029_v15 = vmul.bf16 %v7252_v41, %v8408_v13  ;;  %v4203_v46 = vshrl.u32 %v10748_v44, 16  ;;  %v3840_v26 = vadd.bf16 %v3729_v57, %v3525_v9  ;;  %v8886_v50 = vpop.f32.mrb[89].mxu0  ;;  %v10752_v57 = vld [vmem:[#allocation69_spill] sm:$0xff] }
 0x301   : > { %10746 = vst [vmem:[#allocation27_spill] sm:$0xff] %v8874_v5  ;;  %10749 = vst [vmem:[#allocation65_spill] sm:$0xff] %v8881_v37  ;;  %v2404_v12 = vor.u32 %v2403_v29, %v2400_v23  ;;  %v4206_v61 = vshll.u32 %v10748_v44, 16  ;;  %v4567_v59 = vmul.bf16 %v7254_v42, %v10738_v60  ;;  %v4568_v36 = vmul.bf16 %v7254_v42, %v8408_v13  ;;  %v10755_v13 = vld [vmem:[#allocation70_spill] sm:$0xff] }
 0x302   : > { %10747 = vst [vmem:[#allocation49_spill] sm:$0xff] %v8876_v24  ;;  %10750 = vst [vmem:[#allocation48_spill] sm:$0xff] %v8886_v50  ;;  %v4205_v1 = vrot.slane %v4203_v46, 4  ;;  %v4212_v43 = vshll.u32 %v4029_v15, 16  ;;  %v4216_v30 = vshrl.u32 %v4029_v15, 16  ;;  %v3947_v58 = vadd.bf16 %v3915_v27, %v3840_v26  ;;  %v10753_v50 = vld [vmem:[#allocation35_spill] sm:$0xff] }
 0x303   : > { %v8890_v54 = vrot.slane %v2404_v12, 4  ;;  %v4208_v22 = vrot.slane %v4206_v61, 5  ;;  %v6069_v24 = vrot.slane %v4567_v59, 9  ;;  %v4689_v23 = vrot.slane %v4568_v36, 5  ;;  %v10754_v15 = vld [vmem:[#allocation68_spill] sm:$0xff] }
 0x304   : > { %v4214_v29 = vrot.slane %v4212_v43, 5  ;;  %v4218_v9 = vrot.slane %v4216_v30, 4  ;;  %v911_v44 = vadd.f32 %v10752_v57, %v7187_v10  ;;  %v913_v46 = vadd.f32 %v10753_v50, %v7192_v19 }
 0x305   : > { %10751 = vst [vmem:[#allocation50_spill] sm:$0xff] %v8890_v54  ;;  %v4209_v5 = vor.u32 %v4208_v22, %v4205_v1  ;;  %v915_v37 = vadd.f32 %v10754_v15, %v7187_v10  ;;  %v917_v12 = vadd.f32 %v10755_v13, %v7192_v19  ;;  %v4690_v27 = vsel %vm7279_vm8, %v6069_v24, %v4689_v23  ;;  %v8902_v22 = vpop.f32.mrb[90].mxu0  ;;  %v10757_v15 = vld [vmem:[#allocation73_spill] sm:$0xff] }
 0x306   : > { %v4219_v54 = vor.u32 %v4218_v9, %v4214_v29  ;;  %v4691_v26 = vrot.slane %v4689_v23, 4  ;;  %v1077_v61 = vmax.f32 %v911_v44, 0.0  ;;  %v1078_v43 = vmax.f32 %v913_v46, 0.0  ;;  %10756 = vst [vmem:[#allocation69_spill] sm:$0xff] %v8902_v22  ;;  %v8909_v13 = vpop.f32.mrb[91].mxu0 }
 0x307   : > { %v4210_v59 = vrot.slane %v4209_v5, 4  ;;  %v1079_v30 = vmax.f32 %v915_v37, 0.0  ;;  %v1080_v36 = vmax.f32 %v917_v12, 0.0  ;;  %v921_v9 = vadd.f32 %v10757_v15, %v7187_v10  ;;  %10758 = vst [vmem:[#allocation35_spill] sm:$0xff] %v8909_v13  ;;  %v10761_v13 = vld [vmem:[#allocation78_spill] sm:$0xff] }
 0x308   : > { %v4220_v1 = vrot.slane %v4219_v54, 4  ;;  %v4693_v50 = vsel %vm7279_vm8, %v4691_v26, %v8471_v2  ;;  %v1185_v57 = vmin.f32 %v1077_v61, 6.0  ;;  %v1186_v5 = vmin.f32 %v1078_v43, 6.0  ;;  %v10760_v2 = vld [vmem:[#allocation76_spill] sm:$0xff] }
 0x309   : > { %v4215_v24 = vsel %vm7285_vm9, %v4210_v59, %v4214_v29  ;;  %v1187_v23 = vmin.f32 %v1079_v30, 6.0  ;;  %v1188_v37 = vmin.f32 %v1080_v36, 6.0  ;;  %v10759_v44 = vrot.slane %v8469_v25, 5  ;;  %v10762_v30 = vld [vmem:[#allocation63_spill] sm:$0xff]  ;;  %v10763_v25 = vld [vmem:[#allocation46_spill] sm:$0xff] }
 0x30a   : > { %v4486_v46 = vadd.bf16 %v4215_v24, %v3947_v58  ;;  %v1081_v12 = vmax.f32 %v921_v9, 0.0  ;;  %v923_v26 = vadd.f32 %v10760_v2, %v7192_v19  ;;  %v6181_v15 = vpack.c.bf16 %v1186_v5, %v1185_v57 }
 0x30b   : > { %v4225_v54 = vsel %vm7285_vm9, %v4220_v1, %v10759_v44  ;;  %v6182_v22 = vpack.c.bf16 %v1188_v37, %v1187_v23  ;;  %v925_v49 = vadd.f32 %v10761_v13, %v7187_v10  ;;  %v2314_v36 = vsel %vm7285_vm9, %v10763_v25, %v10762_v30 }
 0x30c   : > { %v4487_v61 = vadd.bf16 %v4225_v54, %v3948_v47  ;;  %v4801_v29 = vadd.bf16 %v4690_v27, %v4486_v46  ;;  %v8921_v59 = vmin.f32 %v1081_v12, 6.0  ;;  %v1082_v43 = vmax.f32 %v923_v26, 0.0 }
 0x30d   : > { %v8929_v1 = vsel %vm7342_vm13, %v6181_v15, 0  ;;  %v1936_v47 = vsel %vm7369_vm14, %v6182_v22, 0  ;;  %v1083_v57 = vmax.f32 %v925_v49, 0.0 }
 0x30e   : > { %v4802_v58 = vadd.bf16 %v4693_v50, %v4487_v61  ;;  %10764 = vst [vmem:[#allocation68_spill] sm:$0xff] %v8929_v1  ;;  %v4877_v9 = vadd.bf16 %v10550_v3, %v4801_v29  ;;  %v2116_v27 = vmul.bf16 %v7212_v45, %v8929_v1  ;;  %v2658_v13 = vmul.bf16 %v7216_v51, %v8929_v1 }
 0x30f   : > { %v3080_v24 = vmul.bf16 %v7245_v34, %v8929_v1  ;;  %v3619_v5 = vmul.bf16 %v7247_v38, %v8929_v1  ;;  %v2030_v22 = vmul.bf16 %v7203_v33, %v8929_v1  ;;  %v2117_v49 = vmul.bf16 %v7212_v45, %v1936_v47 }
 0x310   : > { %v4878_v50 = vadd.bf16 %v10550_v3, %v4802_v58  ;;  %v4909_v23 = vmax.bf16 %v10551_v55, %v4877_v9  ;;  %v2407_v37 = vshll.u32 %v2116_v27, 16  ;;  %v2411_v44 = vshrl.u32 %v2116_v27, 16 }
 0x311   : > { %v2659_v54 = vmul.bf16 %v7216_v51, %v1936_v47  ;;  %v2417_v12 = vshll.u32 %v2117_v49, 16  ;;  %v8949_v2 = vrot.slane %v2658_v13, 5  ;;  %v2963_v26 = vmul.bf16 %v7243_v32, %v8929_v1 }
 0x312   : > { %v4910_v46 = vmax.bf16 %v10551_v55, %v4878_v50  ;;  %v4941_v61 = vmin.bf16 %v10589_v0, %v4909_v23  ;;  %v8954_v15 = vrot.slane %v2407_v37, 5  ;;  %v2413_v29 = vrot.slane %v2411_v44, 4 }
 0x313   : > { %10765 = vst [vmem:[#allocation70_spill] sm:$0xff] %v8949_v2  ;;  %v2805_v30 = vrot.slane %v2659_v54, 5  ;;  %v2419_v58 = vrot.slane %v2417_v12, 5  ;;  %v2804_v9 = vrot.slane %v8949_v2, 4  ;;  %v10767_v27 = vadd.bf16 %v8801_v52, %v8813_v20 }
 0x314   : > { %10766 = vst [vmem:[#allocation73_spill] sm:$0xff] %v8954_v15  ;;  %v4942_v25 = vmin.bf16 %v10589_v0, %v4910_v46  ;;  %v2414_v13 = vor.u32 %v2413_v29, %v8954_v15  ;;  %v3081_v49 = vmul.bf16 %v7245_v34, %v1936_v47  ;;  %v3347_v11 = vshll.u32 %v3080_v24, 16 }
 0x315   : > { %v2995_v50 = vadd.bf16 %v2963_v26, %v10767_v27  ;;  %v3351_v1 = vshrl.u32 %v3080_v24, 16  ;;  %v8965_v44 = vsel %vm7279_vm8, %v2804_v9, %v2805_v30  ;;  %v3620_v54 = vmul.bf16 %v7247_v38, %v1936_v47 }
 0x316   : > { %v6095_v23 = vcombine.high %v4941_v61, %v4942_v25  ;;  %v6094_v37 = vcombine.low %v4941_v61, %v4942_v25  ;;  %v2415_v46 = vrot.slane %v2414_v13, 4  ;;  %v8968_v12 = vrot.slane %v3347_v11, 5 }
 0x317   : > { %v3353_v2 = vrot.slane %v3351_v1, 4  ;;  %v3357_v52 = vshll.u32 %v3081_v49, 16  ;;  %v8971_v20 = vrot.slane %v3619_v5, 5  ;;  %v3759_v26 = vrot.slane %v3620_v54, 5  ;;  %v10772_v54 = vld [vmem:[#allocation30_spill] sm:$0xff] }
 0x318   : > { %10768 = vst [vmem:[#allocation76_spill] sm:$0xff] %v8968_v12  ;;  %6132 = vmatprep.mubr.msk.bf16.mxu1 %vm5208_vm15, %v6095_v23  ;;  %v4039_v24 = vmul.bf16 %v7252_v41, %v1936_v47  ;;  %v4578_v61 = vmul.bf16 %v7254_v42, %v1936_v47  ;;  %v2420_v29 = vsel %vm7285_vm9, %v2415_v46, %v2419_v58  ;;  %v1190_v11 = vmin.f32 %v1082_v43, 6.0 }
 0x319   : > { %10769 = vst [vmem:[#allocation78_spill] sm:$0xff] %v8971_v20  ;;  %5338 = vmatmul.mubr.bf16.gmra.mrb[24].mxu1 %v6094_v37  ;;  %v3354_v30 = vor.u32 %v3353_v2, %v8968_v12  ;;  %v3359_v25 = vrot.slane %v3357_v52, 5  ;;  %v8978_v9 = vadd.bf16 %v2420_v29, %v2030_v22  ;;  %v3758_v1 = vrot.slane %v8971_v20, 4  ;;  %v10771_v37 = vld [vmem:[#allocation61_spill] sm:$0xff]  ;;  %v10775_v52 = vld [vmem:[#allocation59_spill] sm:$0xff] }
 0x31a   : > { %v8981_v27 = vshll.u32 %v4039_v24, 16  ;;  %v8983_v5 = vrot.slane %v4578_v61, 5  ;;  %v6183_v49 = vpack.c.bf16 %v1190_v11, %v8921_v59  ;;  %v8986_v47 = vmin.f32 %v1083_v57, 6.0  ;;  %v10774_v57 = vld [vmem:[#allocation62_spill] sm:$0xff] }
 0x31b   : > { %v3355_v13 = vrot.slane %v3354_v30, 4  ;;  %v10770_v58 = vmul.bf16 %v7203_v33, %v8133_v16  ;;  %v3760_v22 = vsel %vm7279_vm8, %v3758_v1, %v3759_v26  ;;  %v2775_v46 = vsel %vm7279_vm8, %v10772_v54, %v10771_v37  ;;  %v9028_v37 = vpop.f32.mrb[92].mxu0 }
 0x31c   : > { %v9004_v16 = vsel %vm7297_vm10, %v6183_v49, 0  ;;  %v3272_v24 = vor.u32 %v10775_v52, %v10774_v57  ;;  %10779 = vst [vmem:[#allocation62_spill] sm:$0xff] %v9028_v37  ;;  %v10781_v57 = vmul.bf16 %v7243_v32, %v10738_v60  ;;  %v9035_v26 = vpop.f32.mrb[93].mxu0 }
 0x31d   : > { %v2563_v23 = vadd.bf16 %v2314_v36, %v10770_v58  ;;  %v3360_v59 = vsel %vm7285_vm9, %v3355_v13, %v3359_v25  ;;  %10773 = vst [vmem:[#allocation63_spill] sm:$0xff] %v9004_v16  ;;  %v2118_v29 = vmul.bf16 %v7212_v45, %v9004_v16  ;;  %v2660_v30 = vmul.bf16 %v7216_v51, %v9004_v16 }
 0x31e   : > { %v3534_v61 = vadd.bf16 %v3360_v59, %v2995_v50  ;;  %v3082_v11 = vmul.bf16 %v7245_v34, %v9004_v16  ;;  %v3621_v1 = vmul.bf16 %v7247_v38, %v9004_v16  ;;  %v9022_v50 = vmul.bf16 %v7252_v41, %v9004_v16  ;;  %10782 = vst [vmem:[#allocation82_spill] sm:$0xff] %v9035_v26 }
 0x31f   : > { %v2881_v36 = vadd.bf16 %v2775_v46, %v2563_v23  ;;  %v2422_v49 = vshrl.u32 %v2118_v29, 16  ;;  %v2425_v58 = vshll.u32 %v2118_v29, 16  ;;  %v9026_v23 = vrot.slane %v2660_v30, 9  ;;  %v9041_v30 = vpop.f32.mrb[94].mxu0 }
 0x320   : > { %10776 = vst [vmem:[#allocation46_spill] sm:$0xff] %v9022_v50  ;;  %v9024_v13 = vadd.bf16 %v3760_v22, %v3534_v61  ;;  %v3362_v54 = vshrl.u32 %v3082_v11, 16  ;;  %v3365_v46 = vshll.u32 %v3082_v11, 16  ;;  %v9030_v59 = vrot.slane %v3621_v1, 9  ;;  %v10783_v61 = vld [vmem:[#allocation60_spill] sm:$0xff] }
 0x321   : > { %10778 = vst [vmem:[#allocation30_spill] sm:$0xff] %v9026_v23  ;;  %v2988_v52 = vadd.bf16 %v10781_v57, %v2881_v36  ;;  %v2424_v25 = vrot.slane %v2422_v49, 4  ;;  %v2427_v2 = vrot.slane %v2425_v58, 5  ;;  %v3273_v22 = vrot.slane %v3272_v24, 4  ;;  %10784 = vst [vmem:[#allocation60_spill] sm:$0xff] %v9041_v30  ;;  %v10787_v1 = vld [vmem:[#allocation64_spill] sm:$0xff] }
 0x322   : > { %10777 = vst [vmem:[#allocation61_spill] sm:$0xff] %v9024_v13  ;;  %10780 = vst [vmem:[#allocation59_spill] sm:$0xff] %v9030_v59  ;;  %v3736_v29 = vsel %vm7279_vm8, %v10783_v61, %v8458_v6  ;;  %v9043_v43 = vrot.slane %v3362_v54, 4  ;;  %v9045_v11 = vrot.slane %v3365_v46, 5  ;;  %v3917_v23 = vmul.bf16 %v7249_v39, %v10787_v1  ;;  %v10788_v36 = vld [vmem:[#allocation37_spill] sm:$0xff]  ;;  %v9051_v49 = vpop.f32.mrb[95].mxu0 }
 0x323   : > { %v3918_v57 = vmul.bf16 %v7249_v39, %v10788_v36  ;;  %10789 = vst [vmem:[#allocation64_spill] sm:$0xff] %v9051_v49  ;;  %v2428_v24 = vor.u32 %v2427_v2, %v2424_v25  ;;  %v10790_v58 = vld [vmem:[#allocation67_spill] sm:$0xff]  ;;  %v4032_v6 = vmul.bf16 %v7252_v41, %v10788_v36  ;;  %v10791_v54 = vld [vmem:[#allocation66_spill] sm:$0xff]  ;;  %v9059_v46 = vpop.f32.mrb[96].mxu0  ;;  %v4570_v49 = vmul.bf16 %v7254_v42, %v10787_v1 }
 0x324   : > { %10785 = vst [vmem:[#allocation83_spill] sm:$0xff] %v9043_v43  ;;  %10786 = vst [vmem:[#allocation84_spill] sm:$0xff] %v9045_v11  ;;  %v3278_v59 = vsel %vm7285_vm9, %v3273_v22, %v10790_v58  ;;  %v4227_v61 = vshrl.u32 %v10791_v54, 16  ;;  %v10793_v43 = vld [vmem:[#allocation58_spill] sm:$0xff]  ;;  %v4230_v30 = vshll.u32 %v10791_v54, 16  ;;  %v9065_v2 = vpop.f32.mrb[97].mxu0 }
 0x325   : > { %10792 = vst [vmem:[#allocation37_spill] sm:$0xff] %v9059_v46  ;;  %v3527_v11 = vadd.bf16 %v3278_v59, %v2988_v52  ;;  %v3950_v15 = vadd.bf16 %v3918_v57, %v10793_v43  ;;  %10794 = vst [vmem:[#allocation67_spill] sm:$0xff] %v9065_v2  ;;  %v9067_v25 = vrot.slane %v2428_v24, 4  ;;  %v4236_v58 = vshll.u32 %v4032_v6, 16  ;;  %v10796_v57 = vld [vmem:[#allocation72_spill] sm:$0xff]  ;;  %v10797_v13 = vld [vmem:[#allocation26_spill] sm:$0xff] }
 0x326   : > { %v4229_v22 = vrot.slane %v4227_v61, 4  ;;  %v4240_v26 = vshrl.u32 %v4032_v6, 16  ;;  %v4232_v50 = vrot.slane %v4230_v30, 5  ;;  %v4571_v46 = vmul.bf16 %v7254_v42, %v10788_v36  ;;  %v10798_v61 = vld [vmem:[#allocation43_spill] sm:$0xff]  ;;  %v10799_v36 = vld [vmem:[#allocation29_spill] sm:$0xff] }
 0x327   : > { %10795 = vst [vmem:[#allocation66_spill] sm:$0xff] %v9067_v25  ;;  %v3842_v37 = vadd.bf16 %v3736_v29, %v3527_v11  ;;  %v6070_v59 = vrot.slane %v4570_v49, 9  ;;  %v4238_v52 = vrot.slane %v4236_v58, 5  ;;  %v927_v54 = vadd.f32 %v10796_v57, %v7192_v19 }
 0x328   : > { %v4242_v43 = vrot.slane %v4240_v26, 4  ;;  %v931_v12 = vadd.f32 %v10797_v13, %v7187_v10  ;;  %v4233_v24 = vor.u32 %v4232_v50, %v4229_v22  ;;  %v4696_v25 = vrot.slane %v4571_v46, 5  ;;  %v10800_v22 = vld [vmem:[#allocation25_spill] sm:$0xff] }
 0x329   : > { %v3949_v2 = vadd.bf16 %v3917_v23, %v3842_v37  ;;  %v933_v6 = vadd.f32 %v10798_v61, %v7192_v19  ;;  %v1084_v30 = vmax.f32 %v927_v54, 0.0  ;;  %v935_v49 = vadd.f32 %v10799_v36, %v7187_v10  ;;  %v9090_v54 = vpop.f32.mrb[98].mxu0 }
 0x32a   : > { %v4243_v29 = vor.u32 %v4242_v43, %v4238_v52  ;;  %v1085_v11 = vmax.f32 %v931_v12, 0.0  ;;  %v4234_v58 = vrot.slane %v4233_v24, 4  ;;  %v4697_v26 = vsel %vm7279_vm8, %v6070_v59, %v4696_v25 }
 0x32b   : > { %v4698_v57 = vrot.slane %v4696_v25, 4  ;;  %v1086_v16 = vmax.f32 %v933_v6, 0.0  ;;  %v1192_v13 = vmin.f32 %v1084_v30, 6.0  ;;  %v1087_v50 = vmax.f32 %v935_v49, 0.0  ;;  %v10803_v30 = vld [vmem:[#allocation75_spill] sm:$0xff]  ;;  %v10806_v49 = vld [vmem:[#allocation38_spill] sm:$0xff] }
 0x32c   : > { %v4244_v20 = vrot.slane %v4243_v29, 4  ;;  %v1193_v23 = vmin.f32 %v1085_v11, 6.0  ;;  %v4239_v37 = vsel %vm7285_vm9, %v4234_v58, %v4238_v52  ;;  %v9088_v43 = vadd.f32 %v10800_v22, %v7192_v19 }
 0x32d   : > { %v4700_v12 = vsel %vm7279_vm8, %v4698_v57, %v8635_v31  ;;  %v1194_v46 = vmin.f32 %v1086_v16, 6.0  ;;  %v10801_v25 = vrot.slane %v8633_v40, 5  ;;  %v4488_v24 = vadd.bf16 %v4239_v37, %v3949_v2  ;;  %v10802_v16 = vld [vmem:[#allocation34_spill] sm:$0xff]  ;;  %v10805_v2 = vld [vmem:[#allocation33_spill] sm:$0xff] }
 0x32e   : > { %v6184_v61 = vpack.c.bf16 %v1192_v13, %v8986_v47  ;;  %v9097_v52 = vmin.f32 %v1087_v50, 6.0  ;;  %v1088_v31 = vmax.f32 %v9088_v43, 0.0  ;;  %v2338_v11 = vsel %vm7285_vm9, %v10803_v30, %v10802_v16 }
 0x32f   : > { %v4249_v59 = vsel %vm7285_vm9, %v4244_v20, %v10801_v25  ;;  %v6185_v29 = vpack.c.bf16 %v1194_v46, %v1193_v23  ;;  %v4803_v36 = vadd.bf16 %v4697_v26, %v4488_v24  ;;  %v10804_v20 = vmul.bf16 %v7203_v33, %v10738_v60 }
 0x330   : > { %v4489_v6 = vadd.bf16 %v4249_v59, %v3950_v15  ;;  %v9106_v40 = vsel %vm7342_vm13, %v6184_v61, 0  ;;  %v2782_v15 = vsel %vm7279_vm8, %v10806_v49, %v10805_v2  ;;  %v10809_v2 = vadd.bf16 %v8965_v44, %v8978_v9 }
 0x331   : > { %v2565_v47 = vadd.bf16 %v2338_v11, %v10804_v20  ;;  %v2119_v57 = vmul.bf16 %v7212_v45, %v9106_v40  ;;  %v2661_v26 = vmul.bf16 %v7216_v51, %v9106_v40  ;;  %v3083_v13 = vmul.bf16 %v7245_v34, %v9106_v40 }
 0x332   : > { %v4804_v58 = vadd.bf16 %v4700_v12, %v4489_v6  ;;  %v4879_v23 = vadd.bf16 %v10550_v3, %v4803_v36  ;;  %v3622_v60 = vmul.bf16 %v7247_v38, %v9106_v40  ;;  %v1939_v50 = vsel %vm7369_vm14, %v6185_v29, 0 }
 0x333   : > { %v2032_v37 = vmul.bf16 %v7203_v33, %v9106_v40  ;;  %v2120_v46 = vmul.bf16 %v7212_v45, %v1939_v50  ;;  %v2431_v22 = vshll.u32 %v2119_v57, 16  ;;  %v2435_v43 = vshrl.u32 %v2119_v57, 16 }
 0x334   : > { %v4880_v12 = vadd.bf16 %v10550_v3, %v4804_v58  ;;  %v4911_v25 = vmax.bf16 %v10551_v55, %v4879_v23  ;;  %v2662_v59 = vmul.bf16 %v7216_v51, %v1939_v50  ;;  %v9132_v24 = vrot.slane %v2661_v26, 5 }
 0x335   : > { %v2965_v61 = vmul.bf16 %v7243_v32, %v9106_v40  ;;  %v9137_v29 = vrot.slane %v2431_v22, 5  ;;  %v2437_v16 = vrot.slane %v2435_v43, 4  ;;  %v2441_v30 = vshll.u32 %v2120_v46, 16 }
 0x336   : > { %10807 = vst [vmem:[#allocation58_spill] sm:$0xff] %v9132_v24  ;;  %v4912_v6 = vmax.bf16 %v10551_v55, %v4880_v12  ;;  %v4943_v11 = vmin.bf16 %v10589_v0, %v4911_v25  ;;  %v2811_v36 = vrot.slane %v9132_v24, 4  ;;  %v2812_v20 = vrot.slane %v2662_v59, 5 }
 0x337   : > { %10808 = vst [vmem:[#allocation72_spill] sm:$0xff] %v9137_v29  ;;  %v2997_v49 = vadd.bf16 %v2965_v61, %v10809_v2  ;;  %v2438_v57 = vor.u32 %v2437_v16, %v9137_v29  ;;  %v2443_v26 = vrot.slane %v2441_v30, 5  ;;  %v3084_v23 = vmul.bf16 %v7245_v34, %v1939_v50 }
 0x338   : > { %v4944_v58 = vmin.bf16 %v10589_v0, %v4912_v6  ;;  %v9149_v12 = vsel %vm7279_vm8, %v2811_v36, %v2812_v20  ;;  %v3371_v46 = vshll.u32 %v3083_v13, 16  ;;  %v3375_v22 = vshrl.u32 %v3083_v13, 16 }
 0x339   : > { %v3623_v43 = vmul.bf16 %v7247_v38, %v1939_v50  ;;  %v2439_v24 = vrot.slane %v2438_v57, 4  ;;  %v3381_v44 = vshll.u32 %v3084_v23, 16  ;;  %v9154_v6 = vrot.slane %v3622_v60, 5 }
 0x33a   : > { %v6097_v25 = vcombine.high %v4943_v11, %v4944_v58  ;;  %v6096_v59 = vcombine.low %v4943_v11, %v4944_v58  ;;  %v9152_v9 = vrot.slane %v3371_v46, 5  ;;  %v3377_v61 = vrot.slane %v3375_v22, 4  ;;  %v10811_v22 = vld [vmem:[#allocation53_spill] sm:$0xff] }
 0x33b   : > { %v3766_v16 = vrot.slane %v3623_v43, 5  ;;  %v2444_v30 = vsel %vm7285_vm9, %v2439_v24, %v2443_v26  ;;  %v3383_v36 = vrot.slane %v3381_v44, 5  ;;  %v4042_v13 = vmul.bf16 %v7252_v41, %v1939_v50  ;;  %v10812_v24 = vld [vmem:[#allocation32_spill] sm:$0xff] }
 0x33c   : > { %10810 = vst [vmem:[#allocation26_spill] sm:$0xff] %v9152_v9  ;;  %6133 = vmatprep.mubr.msk.bf16.mxu1 %vm5208_vm15, %v6097_v25  ;;  %v4581_v20 = vmul.bf16 %v7254_v42, %v1939_v50  ;;  %v9161_v11 = vadd.bf16 %v2444_v30, %v2032_v37  ;;  %v3378_v2 = vor.u32 %v3377_v61, %v9152_v9  ;;  %v3765_v58 = vrot.slane %v9154_v6, 4 }
 0x33d   : > { %5346 = vmatmul.mubr.bf16.gmra.mrb[28].mxu1 %v6096_v59  ;;  %v1196_v60 = vmin.f32 %v1088_v31, 6.0  ;;  %v9165_v57 = vshll.u32 %v4042_v13, 16  ;;  %v2883_v46 = vadd.bf16 %v2782_v15, %v2565_v47  ;;  %v3296_v26 = vor.u32 %v10812_v24, %v10811_v22  ;;  %v10814_v47 = vld [vmem:[#allocation77_spill] sm:$0xff]  ;;  %v9210_v22 = vpop.f32.mrb[99].mxu0 }
 0x33e   : > { %v9167_v23 = vrot.slane %v4581_v20, 5  ;;  %v3379_v50 = vrot.slane %v3378_v2, 4  ;;  %v3767_v37 = vsel %vm7279_vm8, %v3765_v58, %v3766_v16  ;;  %v10813_v31 = vmul.bf16 %v7243_v32, %v10787_v1  ;;  %10815 = vst [vmem:[#allocation43_spill] sm:$0xff] %v9210_v22 }
 0x33f   : > { %v6186_v25 = vpack.c.bf16 %v1196_v60, %v9097_v52  ;;  %v3297_v61 = vrot.slane %v3296_v26, 4  ;;  %v3743_v15 = vsel %vm7279_vm8, %v10814_v47, %v8623_v56  ;;  %v3919_v52 = vmul.bf16 %v7249_v39, %v8656_v21 }
 0x340   : > { %v2990_v44 = vadd.bf16 %v10813_v31, %v2883_v46  ;;  %v3384_v30 = vsel %vm7285_vm9, %v3379_v50, %v3383_v36  ;;  %v3920_v13 = vmul.bf16 %v7249_v39, %v8756_v17  ;;  %v9216_v31 = vpop.f32.mrb[100].mxu0 }
 0x341   : > { %v9188_v16 = vsel %vm7297_vm10, %v6186_v25, 0  ;;  %v3536_v20 = vadd.bf16 %v3384_v30, %v2997_v49  ;;  %10818 = vst [vmem:[#allocation34_spill] sm:$0xff] %v9216_v31  ;;  %v3302_v58 = vsel %vm7285_vm9, %v3297_v61, %v8620_v63  ;;  %v9223_v59 = vpop.f32.mrb[101].mxu0  ;;  %v4254_v63 = vshll.u32 %v8674_v35, 16 }
 0x342   : > { %v2121_v56 = vmul.bf16 %v7212_v45, %v9188_v16  ;;  %v2663_v36 = vmul.bf16 %v7216_v51, %v9188_v16  ;;  %v3085_v60 = vmul.bf16 %v7245_v34, %v9188_v16  ;;  %v3624_v46 = vmul.bf16 %v7247_v38, %v9188_v16  ;;  %10820 = vst [vmem:[#allocation33_spill] sm:$0xff] %v9223_v59 }
 0x343   : > { %v9208_v49 = vmul.bf16 %v7252_v41, %v9188_v16  ;;  %v9212_v24 = vadd.bf16 %v3767_v37, %v3536_v20  ;;  %v3529_v37 = vadd.bf16 %v3302_v58, %v2990_v44  ;;  %v3952_v20 = vadd.bf16 %v3920_v13, %v8676_v53 }
 0x344   : > { %v2446_v26 = vshrl.u32 %v2121_v56, 16  ;;  %v2449_v50 = vshll.u32 %v2121_v56, 16  ;;  %v9214_v25 = vrot.slane %v2663_v36, 9  ;;  %v3386_v47 = vshrl.u32 %v3085_v60, 16 }
 0x345   : > { %10816 = vst [vmem:[#allocation29_spill] sm:$0xff] %v9212_v24  ;;  %v3389_v30 = vshll.u32 %v3085_v60, 16  ;;  %v9218_v2 = vrot.slane %v3624_v46, 9  ;;  %v4035_v60 = vmul.bf16 %v7252_v41, %v8756_v17  ;;  %v4251_v46 = vshrl.u32 %v8674_v35, 16 }
 0x346   : > { %10817 = vst [vmem:[#allocation25_spill] sm:$0xff] %v9214_v25  ;;  %v2448_v43 = vrot.slane %v2446_v26, 4  ;;  %v2451_v29 = vrot.slane %v2449_v50, 5  ;;  %v9226_v56 = vrot.slane %v3386_v47, 4  ;;  %v4573_v61 = vmul.bf16 %v7254_v42, %v8656_v21 }
 0x347   : > { %10819 = vst [vmem:[#allocation75_spill] sm:$0xff] %v9218_v2  ;;  %v9228_v36 = vrot.slane %v3389_v30, 5  ;;  %v3844_v2 = vadd.bf16 %v3743_v15, %v3529_v37  ;;  %v4253_v26 = vrot.slane %v4251_v46, 4  ;;  %v4260_v44 = vshll.u32 %v4035_v60, 16  ;;  %v10825_v37 = vld [vmem:[#allocation71_spill] sm:$0xff] }
 0x348   : > { %10821 = vst [vmem:[#allocation38_spill] sm:$0xff] %v9226_v56  ;;  %v2452_v25 = vor.u32 %v2451_v29, %v2448_v43  ;;  %v4264_v58 = vshrl.u32 %v4035_v60, 16  ;;  %v4574_v53 = vmul.bf16 %v7254_v42, %v8756_v17  ;;  %v4256_v47 = vrot.slane %v4254_v63, 5  ;;  %v10824_v43 = vld [vmem:[#allocation40_spill] sm:$0xff]  ;;  %v10826_v60 = vld [vmem:[#allocation21_spill] sm:$0xff] }
 0x349   : > { %10822 = vst [vmem:[#allocation53_spill] sm:$0xff] %v9228_v36  ;;  %v3951_v50 = vadd.bf16 %v3919_v52, %v3844_v2  ;;  %v6071_v30 = vrot.slane %v4573_v61, 9  ;;  %v4262_v36 = vrot.slane %v4260_v44, 5  ;;  %v941_v35 = vadd.f32 %v10824_v43, %v7187_v10  ;;  %v10827_v17 = vld [vmem:[#allocation24_spill] sm:$0xff] }
 0x34a   : > { %v9238_v13 = vrot.slane %v2452_v25, 4  ;;  %v4266_v56 = vrot.slane %v4264_v58, 4  ;;  %v4703_v29 = vrot.slane %v4574_v53, 5  ;;  %v4257_v15 = vor.u32 %v4256_v47, %v4253_v26 }
 0x34b   : > { %v943_v46 = vadd.f32 %v10825_v37, %v7192_v19  ;;  %v945_v59 = vadd.f32 %v10826_v60, %v7187_v10  ;;  %v947_v25 = vadd.f32 %v10827_v17, %v7192_v19  ;;  %v1089_v61 = vmax.f32 %v941_v35, 0.0  ;;  %v10830_v17 = vld [vmem:[#allocation28_spill] sm:$0xff] }
 0x34c   : > { %10823 = vst [vmem:[#allocation32_spill] sm:$0xff] %v9238_v13  ;;  %v9248_v13 = vpop.f32.mrb[102].mxu0  ;;  %v4267_v52 = vor.u32 %v4266_v56, %v4262_v36  ;;  %v4704_v2 = vsel %vm7279_vm8, %v6071_v30, %v4703_v29  ;;  %v4705_v63 = vrot.slane %v4703_v29, 4  ;;  %v4258_v26 = vrot.slane %v4257_v15, 4 }
 0x34d   : > { %10828 = vst [vmem:[#allocation77_spill] sm:$0xff] %v9248_v13  ;;  %v9252_v44 = vpop.f32.mrb[103].mxu0  ;;  %v1090_v58 = vmax.f32 %v943_v46, 0.0  ;;  %v1091_v53 = vmax.f32 %v945_v59, 0.0  ;;  %v1092_v47 = vmax.f32 %v947_v25, 0.0  ;;  %v1197_v60 = vmin.f32 %v1089_v61, 6.0 }
 0x34e   : > { %10829 = vst [vmem:[#allocation40_spill] sm:$0xff] %v9252_v44  ;;  %v4268_v43 = vrot.slane %v4267_v52, 4  ;;  %v4707_v37 = vsel %vm7279_vm8, %v4705_v63, %v8819_v62  ;;  %v951_v56 = vadd.f32 %v10830_v17, %v7187_v10  ;;  %v4263_v30 = vsel %vm7285_vm9, %v4258_v26, %v4262_v36  ;;  %v10832_v52 = vld [vmem:[#allocation45_spill] sm:$0xff]  ;;  %v10833_v17 = vld [vmem:[#allocation52_spill] sm:$0xff] }
 0x34f   : > { %v1198_v29 = vmin.f32 %v1090_v58, 6.0  ;;  %v1199_v35 = vmin.f32 %v1091_v53, 6.0  ;;  %v1200_v13 = vmin.f32 %v1092_v47, 6.0  ;;  %v10831_v15 = vrot.slane %v8817_v7, 5  ;;  %v10834_v53 = vld [vmem:[#allocation36_spill] sm:$0xff]  ;;  %v10835_v7 = vld [vmem:[#allocation81_spill] sm:$0xff] }
 0x350   : > { %v4490_v46 = vadd.bf16 %v4263_v30, %v3951_v50  ;;  %v1093_v25 = vmax.f32 %v951_v56, 0.0  ;;  %v953_v62 = vadd.f32 %v10832_v52, %v7192_v19  ;;  %v955_v31 = vadd.f32 %v10833_v17, %v7187_v10 }
 0x351   : > { %v4273_v59 = vsel %vm7285_vm9, %v4268_v43, %v10831_v15  ;;  %v6187_v61 = vpack.c.bf16 %v1198_v29, %v1197_v60  ;;  %v6188_v44 = vpack.c.bf16 %v1200_v13, %v1199_v35  ;;  %v2362_v47 = vsel %vm7285_vm9, %v10835_v7, %v10834_v53 }
 0x352   : > { %v4491_v63 = vadd.bf16 %v4273_v59, %v3952_v20  ;;  %v4805_v36 = vadd.bf16 %v4704_v2, %v4490_v46  ;;  %v9269_v26 = vmin.f32 %v1093_v25, 6.0  ;;  %v1094_v58 = vmax.f32 %v953_v62, 0.0 }
 0x353   : > { %v9277_v43 = vsel %vm7342_vm13, %v6187_v61, 0  ;;  %v1942_v20 = vsel %vm7369_vm14, %v6188_v44, 0  ;;  %v1095_v13 = vmax.f32 %v955_v31, 0.0 }
 0x354   : > { %v4806_v50 = vadd.bf16 %v4707_v37, %v4491_v63  ;;  %v4881_v60 = vadd.bf16 %v10550_v3, %v4805_v36  ;;  %v2122_v2 = vmul.bf16 %v7212_v45, %v9277_v43  ;;  %v2664_v56 = vmul.bf16 %v7216_v51, %v9277_v43 }
 0x355   : > { %v3086_v30 = vmul.bf16 %v7245_v34, %v9277_v43  ;;  %v3625_v29 = vmul.bf16 %v7247_v38, %v9277_v43  ;;  %v2034_v44 = vmul.bf16 %v7203_v33, %v9277_v43  ;;  %v2123_v31 = vmul.bf16 %v7212_v45, %v1942_v20 }
 0x356   : > { %v4882_v37 = vadd.bf16 %v10550_v3, %v4806_v50  ;;  %v4913_v35 = vmax.bf16 %v10551_v55, %v4881_v60  ;;  %v2455_v15 = vshll.u32 %v2122_v2, 16  ;;  %v2459_v59 = vshrl.u32 %v2122_v2, 16 }
 0x357   : > { %v2665_v46 = vmul.bf16 %v7216_v51, %v1942_v20  ;;  %v2465_v52 = vshll.u32 %v2123_v31, 16  ;;  %v9297_v62 = vrot.slane %v2664_v56, 5  ;;  %v2967_v63 = vmul.bf16 %v7243_v32, %v9277_v43 }
 0x358   : > { %v4914_v25 = vmax.bf16 %v10551_v55, %v4882_v37  ;;  %v4945_v61 = vmin.bf16 %v10589_v0, %v4913_v35  ;;  %v9302_v17 = vrot.slane %v2455_v15, 5  ;;  %v2461_v36 = vrot.slane %v2459_v59, 4 }
 0x359   : > { %10836 = vst [vmem:[#allocation71_spill] sm:$0xff] %v9297_v62  ;;  %v2819_v53 = vrot.slane %v2665_v46, 5  ;;  %v2467_v50 = vrot.slane %v2465_v52, 5  ;;  %v2818_v60 = vrot.slane %v9297_v62, 4  ;;  %v10838_v2 = vadd.bf16 %v9149_v12, %v9161_v11 }
 0x35a   : > { %10837 = vst [vmem:[#allocation21_spill] sm:$0xff] %v9302_v17  ;;  %v4946_v7 = vmin.bf16 %v10589_v0, %v4914_v25  ;;  %v2462_v56 = vor.u32 %v2461_v36, %v9302_v17  ;;  %v3087_v31 = vmul.bf16 %v7245_v34, %v1942_v20  ;;  %v3395_v22 = vshll.u32 %v3086_v30, 16 }
 0x35b   : > { %v2999_v37 = vadd.bf16 %v2967_v63, %v10838_v2  ;;  %v3399_v9 = vshrl.u32 %v3086_v30, 16  ;;  %v9313_v59 = vsel %vm7279_vm8, %v2818_v60, %v2819_v53  ;;  %v3626_v46 = vmul.bf16 %v7247_v38, %v1942_v20 }
 0x35c   : > { %v6099_v35 = vcombine.high %v4945_v61, %v4946_v7  ;;  %v6098_v15 = vcombine.low %v4945_v61, %v4946_v7  ;;  %v2463_v25 = vrot.slane %v2462_v56, 4  ;;  %v9316_v52 = vrot.slane %v3395_v22, 5 }
 0x35d   : > { %v3401_v62 = vrot.slane %v3399_v9, 4  ;;  %v3405_v12 = vshll.u32 %v3087_v31, 16  ;;  %v9319_v11 = vrot.slane %v3625_v29, 5  ;;  %v3773_v63 = vrot.slane %v3626_v46, 5  ;;  %v10845_v46 = vld [vmem:[#allocation74_spill] sm:$0xff] }
 0x35e   : > { %10839 = vst [vmem:[#allocation24_spill] sm:$0xff] %v9316_v52  ;;  %6134 = vmatprep.mubr.msk.bf16.mxu1 %vm5208_vm15, %v6099_v35  ;;  %v4045_v30 = vmul.bf16 %v7252_v41, %v1942_v20  ;;  %v4584_v61 = vmul.bf16 %v7254_v42, %v1942_v20  ;;  %v2468_v36 = vsel %vm7285_vm9, %v2463_v25, %v2467_v50  ;;  %v1202_v22 = vmin.f32 %v1094_v58, 6.0  ;;  %v10857_v58 = vld [vmem:[#allocation68_spill] sm:$0xff] }
 0x35f   : > { %10840 = vst [vmem:[#allocation28_spill] sm:$0xff] %v9319_v11  ;;  %5354 = vmatmul.mubr.bf16.gmra.mrb[32].mxu1 %v6098_v15  ;;  %v3402_v53 = vor.u32 %v3401_v62, %v9316_v52  ;;  %v3407_v7 = vrot.slane %v3405_v12, 5  ;;  %v9326_v60 = vadd.bf16 %v2468_v36, %v2034_v44  ;;  %v3772_v9 = vrot.slane %v9319_v11, 4  ;;  %v10844_v15 = vld [vmem:[#allocation39_spill] sm:$0xff] }
 0x360   : > { %v9329_v2 = vshll.u32 %v4045_v30, 16  ;;  %v9331_v29 = vrot.slane %v4584_v61, 5  ;;  %v6189_v31 = vpack.c.bf16 %v1202_v22, %v9269_v26  ;;  %v9334_v20 = vmin.f32 %v1095_v13, 6.0  ;;  %v10846_v13 = vld [vmem:[#allocation42_spill] sm:$0xff]  ;;  %v10847_v12 = vld [vmem:[#allocation79_spill] sm:$0xff] }
 0x361   : > { %v3403_v56 = vrot.slane %v3402_v53, 4  ;;  %v10843_v50 = vmul.bf16 %v7203_v33, %v10787_v1  ;;  %v3774_v44 = vsel %vm7279_vm8, %v3772_v9, %v3773_v63  ;;  %v2789_v25 = vsel %vm7279_vm8, %v10845_v46, %v10844_v15  ;;  %v10852_v63 = vld [vmem:[#allocation54_spill] sm:$0xff] }
 0x362   : > { %10841 = vst [vmem:[#allocation45_spill] sm:$0xff] %v9329_v2  ;;  %10842 = vst [vmem:[#allocation52_spill] sm:$0xff] %v9331_v29  ;;  %v9352_v1 = vsel %vm7297_vm10, %v6189_v31, 0  ;;  %v3320_v30 = vor.u32 %v10847_v12, %v10846_v13 }
 0x363   : > { %v2567_v35 = vadd.bf16 %v2362_v47, %v10843_v50  ;;  %v3408_v26 = vsel %vm7285_vm9, %v3403_v56, %v3407_v7  ;;  %v2124_v36 = vmul.bf16 %v7212_v45, %v9352_v1  ;;  %v2666_v53 = vmul.bf16 %v7216_v51, %v9352_v1 }
 0x364   : > { %v3538_v61 = vadd.bf16 %v3408_v26, %v2999_v37  ;;  %v3088_v22 = vmul.bf16 %v7245_v34, %v9352_v1  ;;  %v3627_v9 = vmul.bf16 %v7247_v38, %v9352_v1  ;;  %v9370_v37 = vmul.bf16 %v7252_v41, %v9352_v1 }
 0x365   : > { %v2885_v47 = vadd.bf16 %v2789_v25, %v2567_v35  ;;  %v2470_v31 = vshrl.u32 %v2124_v36, 16  ;;  %v2473_v50 = vshll.u32 %v2124_v36, 16  ;;  %v9374_v35 = vrot.slane %v2666_v53, 9 }
 0x366   : > { %10848 = vst [vmem:[#allocation36_spill] sm:$0xff] %v9370_v37  ;;  %v9372_v56 = vadd.bf16 %v3774_v44, %v3538_v61  ;;  %v3410_v15 = vshrl.u32 %v3088_v22, 16  ;;  %v3413_v46 = vshll.u32 %v3088_v22, 16  ;;  %v9376_v25 = vrot.slane %v3627_v9, 9  ;;  %v9385_v61 = vpop.f32.mrb[104].mxu0  ;;  %v10856_v22 = vld [vmem:[#allocation56_spill] sm:$0xff] }
 0x367   : > { %v10851_v26 = vmul.bf16 %v7243_v32, %v8656_v21  ;;  %v2472_v12 = vrot.slane %v2470_v31, 4  ;;  %v2475_v7 = vrot.slane %v2473_v50, 5  ;;  %v3321_v62 = vrot.slane %v3320_v30, 4  ;;  %10853 = vst [vmem:[#allocation74_spill] sm:$0xff] %v9385_v61  ;;  %v9395_v31 = vpop.f32.mrb[105].mxu0  ;;  %v10859_v50 = vld [vmem:[#allocation80_spill] sm:$0xff] }
 0x368   : > { %10849 = vst [vmem:[#allocation81_spill] sm:$0xff] %v9372_v56  ;;  %10850 = vst [vmem:[#allocation39_spill] sm:$0xff] %v9376_v25  ;;  %v3750_v44 = vsel %vm7279_vm8, %v10852_v63, %v8806_v4  ;;  %v9387_v36 = vrot.slane %v3410_v15, 4  ;;  %v9389_v53 = vrot.slane %v3413_v46, 5  ;;  %v3921_v9 = vmul.bf16 %v7249_v39, %v10856_v22  ;;  %v10860_v63 = vld [vmem:[#allocation41_spill] sm:$0xff]  ;;  %v9403_v46 = vpop.f32.mrb[106].mxu0 }
 0x369   : > { %v2992_v13 = vadd.bf16 %v10851_v26, %v2885_v47  ;;  %v3922_v47 = vmul.bf16 %v7249_v39, %v10857_v58  ;;  %10858 = vst [vmem:[#allocation54_spill] sm:$0xff] %v9395_v31  ;;  %v2476_v30 = vor.u32 %v2475_v7, %v2472_v12  ;;  %v3326_v26 = vsel %vm7285_vm9, %v3321_v62, %v10859_v50  ;;  %v9409_v7 = vpop.f32.mrb[107].mxu0  ;;  %v10865_v37 = vld [vmem:[#allocation65_spill] sm:$0xff] }
 0x36a   : > { %10854 = vst [vmem:[#allocation42_spill] sm:$0xff] %v9387_v36  ;;  %10855 = vst [vmem:[#allocation79_spill] sm:$0xff] %v9389_v53  ;;  %v4038_v4 = vmul.bf16 %v7252_v41, %v10857_v58  ;;  %v4275_v15 = vshrl.u32 %v10860_v63, 16  ;;  %v10862_v53 = vld [vmem:[#allocation55_spill] sm:$0xff]  ;;  %v4278_v17 = vshll.u32 %v10860_v63, 16  ;;  %v4576_v31 = vmul.bf16 %v7254_v42, %v10856_v22 }
 0x36b   : > { %10861 = vst [vmem:[#allocation56_spill] sm:$0xff] %v9403_v46  ;;  %v3531_v25 = vadd.bf16 %v3326_v26, %v2992_v13  ;;  %v3954_v36 = vadd.bf16 %v3922_v47, %v10862_v53  ;;  %10863 = vst [vmem:[#allocation68_spill] sm:$0xff] %v9409_v7  ;;  %v9411_v12 = vrot.slane %v2476_v30, 4  ;;  %v4577_v46 = vmul.bf16 %v7254_v42, %v10857_v58  ;;  %v10864_v47 = vld [vmem:[#allocation44_spill] sm:$0xff]  ;;  %v10867_v58 = vld [vmem:[#allocation69_spill] sm:$0xff] }
 0x36c   : > { %v4277_v62 = vrot.slane %v4275_v15, 4  ;;  %v4284_v50 = vshll.u32 %v4038_v4, 16  ;;  %v4288_v61 = vshrl.u32 %v4038_v4, 16  ;;  %v4280_v52 = vrot.slane %v4278_v17, 5  ;;  %v10866_v15 = vld [vmem:[#allocation48_spill] sm:$0xff] }
 0x36d   : > { %v3846_v56 = vadd.bf16 %v3750_v44, %v3531_v25  ;;  %v6072_v13 = vrot.slane %v4576_v31, 9  ;;  %v957_v63 = vadd.f32 %v10864_v47, %v7192_v19  ;;  %v961_v11 = vadd.f32 %v10865_v37, %v7187_v10 }
 0x36e   : > { %v4286_v26 = vrot.slane %v4284_v50, 5  ;;  %v4290_v53 = vrot.slane %v4288_v61, 4  ;;  %v4281_v30 = vor.u32 %v4280_v52, %v4277_v62  ;;  %v4710_v29 = vrot.slane %v4577_v46, 5  ;;  %v10868_v62 = vld [vmem:[#allocation35_spill] sm:$0xff] }
 0x36f   : > { %v3953_v7 = vadd.bf16 %v3921_v9, %v3846_v56  ;;  %v963_v4 = vadd.f32 %v10866_v15, %v7192_v19  ;;  %v1096_v17 = vmax.f32 %v957_v63, 0.0  ;;  %v1097_v44 = vmax.f32 %v961_v11, 0.0 }
 0x370   : > { %v4291_v25 = vor.u32 %v4290_v53, %v4286_v26  ;;  %v965_v31 = vadd.f32 %v10867_v58, %v7187_v10  ;;  %v4282_v50 = vrot.slane %v4281_v30, 4  ;;  %v4711_v61 = vsel %vm7279_vm8, %v6072_v13, %v4710_v29  ;;  %v10875_v58 = vld [vmem:[#allocation47_spill] sm:$0xff] }
 0x371   : > { %v4712_v47 = vrot.slane %v4710_v29, 4  ;;  %v1098_v2 = vmax.f32 %v963_v4, 0.0  ;;  %v1204_v37 = vmin.f32 %v1096_v17, 6.0  ;;  %v1205_v56 = vmin.f32 %v1097_v44, 6.0  ;;  %v10870_v17 = vld [vmem:[#allocation57_spill] sm:$0xff]  ;;  %v10871_v44 = vld [vmem:[#allocation31_spill] sm:$0xff] }
 0x372   : > { %v4292_v24 = vrot.slane %v4291_v25, 4  ;;  %v1099_v52 = vmax.f32 %v965_v31, 0.0  ;;  %v4287_v9 = vsel %vm7285_vm9, %v4282_v50, %v4286_v26  ;;  %v967_v53 = vadd.f32 %v10868_v62, %v7192_v19 }
 0x373   : > { %v4714_v11 = vsel %vm7279_vm8, %v4712_v47, %v8983_v5  ;;  %v1206_v46 = vmin.f32 %v1098_v2, 6.0  ;;  %v10869_v63 = vrot.slane %v8981_v27, 5  ;;  %v4492_v13 = vadd.bf16 %v4287_v9, %v3953_v7 }
 0x374   : > { %v6190_v30 = vpack.c.bf16 %v1204_v37, %v9334_v20  ;;  %v9437_v15 = vmin.f32 %v1099_v52, 6.0  ;;  %v1100_v25 = vmax.f32 %v967_v53, 0.0  ;;  %v2386_v5 = vsel %vm7285_vm9, %v10871_v44, %v10870_v17  ;;  %v10874_v20 = vld [vmem:[#allocation51_spill] sm:$0xff] }
 0x375   : > { %v4297_v29 = vsel %vm7285_vm9, %v4292_v24, %v10869_v63  ;;  %v6191_v26 = vpack.c.bf16 %v1206_v46, %v1205_v56  ;;  %v4807_v2 = vadd.bf16 %v4711_v61, %v4492_v13  ;;  %v10873_v24 = vmul.bf16 %v7203_v33, %v8656_v21 }
 0x376   : > { %v4493_v4 = vadd.bf16 %v4297_v29, %v3954_v36  ;;  %v9445_v27 = vsel %vm7342_vm13, %v6190_v30, 0  ;;  %v2796_v36 = vsel %vm7279_vm8, %v10875_v58, %v10874_v20 }
 0x377   : > { %10872 = vst [vmem:[#allocation80_spill] sm:$0xff] %v9445_v27  ;;  %v2569_v7 = vadd.bf16 %v2386_v5, %v10873_v24  ;;  %v2125_v50 = vmul.bf16 %v7212_v45, %v9445_v27  ;;  %v2667_v61 = vmul.bf16 %v7216_v51, %v9445_v27  ;;  %v3089_v47 = vmul.bf16 %v7245_v34, %v9445_v27 }
 0x378   : > { %v4808_v31 = vadd.bf16 %v4714_v11, %v4493_v4  ;;  %v4883_v37 = vadd.bf16 %v10550_v3, %v4807_v2  ;;  %v3628_v21 = vmul.bf16 %v7247_v38, %v9445_v27  ;;  %v1945_v56 = vsel %vm7369_vm14, %v6191_v26, 0 }
 0x379   : > { %v2036_v52 = vmul.bf16 %v7203_v33, %v9445_v27  ;;  %v2126_v11 = vmul.bf16 %v7212_v45, %v1945_v56  ;;  %v2479_v46 = vshll.u32 %v2125_v50, 16  ;;  %v2483_v62 = vshrl.u32 %v2125_v50, 16 }
 0x37a   : > { %v4884_v9 = vadd.bf16 %v10550_v3, %v4808_v31  ;;  %v4915_v53 = vmax.bf16 %v10551_v55, %v4883_v37  ;;  %v2668_v63 = vmul.bf16 %v7216_v51, %v1945_v56  ;;  %v9471_v29 = vrot.slane %v2667_v61, 5 }
 0x37b   : > { %v2969_v13 = vmul.bf16 %v7243_v32, %v9445_v27  ;;  %v9476_v4 = vrot.slane %v2479_v46, 5  ;;  %v2485_v26 = vrot.slane %v2483_v62, 4  ;;  %v2489_v17 = vshll.u32 %v2126_v11, 16 }
 0x37c   : > { %v4916_v30 = vmax.bf16 %v10551_v55, %v4884_v9  ;;  %v4947_v44 = vmin.bf16 %v10589_v0, %v4915_v53  ;;  %v2825_v5 = vrot.slane %v9471_v29, 4  ;;  %v2826_v2 = vrot.slane %v2668_v63, 5 }
 0x37d   : > { %v10876_v24 = vadd.bf16 %v9313_v59, %v9326_v60  ;;  %v2486_v31 = vor.u32 %v2485_v26, %v9476_v4  ;;  %v2491_v50 = vrot.slane %v2489_v17, 5  ;;  %v3090_v61 = vmul.bf16 %v7245_v34, %v1945_v56 }
 0x37e   : > { %v4948_v58 = vmin.bf16 %v10589_v0, %v4916_v30  ;;  %v9488_v37 = vsel %vm7279_vm8, %v2825_v5, %v2826_v2  ;;  %v3419_v9 = vshll.u32 %v3089_v47, 16  ;;  %v3423_v11 = vshrl.u32 %v3089_v47, 16 }
 0x37f   : > { %v3001_v20 = vadd.bf16 %v2969_v13, %v10876_v24  ;;  %v3629_v46 = vmul.bf16 %v7247_v38, %v1945_v56  ;;  %v2487_v63 = vrot.slane %v2486_v31, 4  ;;  %v3429_v59 = vshll.u32 %v3090_v61, 16 }
 0x380   : > { %v6101_v62 = vcombine.high %v4947_v44, %v4948_v58  ;;  %v6100_v53 = vcombine.low %v4947_v44, %v4948_v58  ;;  %v9491_v60 = vrot.slane %v3419_v9, 5  ;;  %v3425_v13 = vrot.slane %v3423_v11, 4  ;;  %v10881_v11 = vld [vmem:[#allocation27_spill] sm:$0xff] }
 0x381   : > { %v9493_v30 = vrot.slane %v3628_v21, 5  ;;  %v3780_v26 = vrot.slane %v3629_v46, 5  ;;  %v2492_v17 = vsel %vm7285_vm9, %v2487_v63, %v2491_v50  ;;  %v3431_v5 = vrot.slane %v3429_v59, 5  ;;  %v10882_v50 = vld [vmem:[#allocation49_spill] sm:$0xff] }
 0x382   : > { %10877 = vst [vmem:[#allocation41_spill] sm:$0xff] %v9491_v60  ;;  %6135 = vmatprep.mubr.msk.bf16.mxu1 %vm5208_vm15, %v6101_v62  ;;  %v4048_v47 = vmul.bf16 %v7252_v41, %v1945_v56  ;;  %v4587_v2 = vmul.bf16 %v7254_v42, %v1945_v56  ;;  %v9500_v44 = vadd.bf16 %v2492_v17, %v2036_v52  ;;  %v1208_v21 = vmin.f32 %v1100_v25, 6.0 }
 0x383   : > { %10878 = vst [vmem:[#allocation55_spill] sm:$0xff] %v9493_v30  ;;  %5362 = vmatmul.mubr.bf16.gmra.mrb[36].mxu1 %v6100_v53  ;;  %v3426_v24 = vor.u32 %v3425_v13, %v9491_v60  ;;  %v3779_v58 = vrot.slane %v9493_v30, 4  ;;  %v2887_v9 = vadd.bf16 %v2796_v36, %v2569_v7  ;;  %v3344_v46 = vor.u32 %v10882_v50, %v10881_v11  ;;  %v10884_v7 = vld [vmem:[#allocation78_spill] sm:$0xff]  ;;  %v10885_v36 = vld [vmem:[#allocation23_spill] sm:$0xff]  ;;  %v10888_v11 = vld [vmem:[#allocation76_spill] sm:$0xff] }
 0x384   : > { %v9504_v31 = vshll.u32 %v4048_v47, 16  ;;  %v9506_v61 = vrot.slane %v4587_v2, 5  ;;  %v6192_v53 = vpack.c.bf16 %v1208_v21, %v9437_v15  ;;  %v10883_v25 = vmul.bf16 %v7243_v32, %v10856_v22  ;;  %v10886_v15 = vld [vmem:[#allocation63_spill] sm:$0xff] }
 0x385   : > { %v3427_v56 = vrot.slane %v3426_v24, 4  ;;  %v3781_v52 = vsel %vm7279_vm8, %v3779_v58, %v3780_v26  ;;  %v3345_v13 = vrot.slane %v3344_v46, 4  ;;  %v3757_v17 = vsel %vm7279_vm8, %v10885_v36, %v10884_v7  ;;  %v10889_v46 = vld [vmem:[#allocation61_spill] sm:$0xff] }
 0x386   : > { %10879 = vst [vmem:[#allocation44_spill] sm:$0xff] %v9504_v31  ;;  %10880 = vst [vmem:[#allocation65_spill] sm:$0xff] %v9506_v61  ;;  %v2994_v59 = vadd.bf16 %v10883_v25, %v2887_v9  ;;  %v9527_v26 = vsel %vm7297_vm10, %v6192_v53, 0  ;;  %v3923_v2 = vmul.bf16 %v7249_v39, %v10886_v15  ;;  %v3924_v24 = vmul.bf16 %v7249_v39, %v9106_v40  ;;  %v10890_v53 = vld [vmem:[#allocation46_spill] sm:$0xff] }
 0x387   : > { %v3432_v47 = vsel %vm7285_vm9, %v3427_v56, %v3431_v5  ;;  %v9535_v21 = vmul.bf16 %v7212_v45, %v9527_v26  ;;  %v3091_v9 = vmul.bf16 %v7245_v34, %v9527_v26  ;;  %v9541_v5 = vmul.bf16 %v7252_v41, %v9527_v26 }
 0x388   : > { %v3540_v58 = vadd.bf16 %v3432_v47, %v3001_v20  ;;  %v3350_v50 = vsel %vm7285_vm9, %v3345_v13, %v10888_v11  ;;  %v3956_v56 = vadd.bf16 %v3924_v24, %v10889_v46  ;;  %v4041_v20 = vmul.bf16 %v7252_v41, %v9106_v40 }
 0x389   : > { %10887 = vst [vmem:[#allocation48_spill] sm:$0xff] %v9541_v5  ;;  %v4299_v25 = vshrl.u32 %v10890_v53, 16  ;;  %v3434_v63 = vshrl.u32 %v3091_v9, 16  ;;  %v3437_v62 = vshll.u32 %v3091_v9, 16  ;;  %v3533_v5 = vadd.bf16 %v3350_v50, %v2994_v59  ;;  %v10892_v50 = vld [vmem:[#allocation62_spill] sm:$0xff] }
 0x38a   : > { %v9550_v7 = vadd.bf16 %v3781_v52, %v3540_v58  ;;  %v4302_v30 = vshll.u32 %v10890_v53, 16  ;;  %v4308_v24 = vshll.u32 %v4041_v20, 16  ;;  %v4312_v11 = vshrl.u32 %v4041_v20, 16  ;;  %v10893_v20 = vld [vmem:[#allocation82_spill] sm:$0xff] }
 0x38b   : > { %v4301_v60 = vrot.slane %v4299_v25, 4  ;;  %v9555_v13 = vrot.slane %v3434_v63, 4  ;;  %v4579_v46 = vmul.bf16 %v7254_v42, %v10886_v15  ;;  %v9559_v31 = vrot.slane %v3437_v62, 5 }
 0x38c   : > { %10891 = vst [vmem:[#allocation69_spill] sm:$0xff] %v9550_v7  ;;  %v3848_v52 = vadd.bf16 %v3757_v17, %v3533_v5  ;;  %v4304_v58 = vrot.slane %v4302_v30, 5  ;;  %v4580_v47 = vmul.bf16 %v7254_v42, %v9106_v40  ;;  %v4310_v36 = vrot.slane %v4308_v24, 5  ;;  %v10894_v17 = vld [vmem:[#allocation60_spill] sm:$0xff] }
 0x38d   : > { %v4314_v9 = vrot.slane %v4312_v11, 4  ;;  %v6073_v59 = vrot.slane %v4579_v46, 9  ;;  %v971_v53 = vadd.f32 %v10892_v50, %v7187_v10  ;;  %v973_v61 = vadd.f32 %v10893_v20, %v7192_v19  ;;  %v10895_v5 = vld [vmem:[#allocation64_spill] sm:$0xff] }
 0x38e   : > { %v3955_v63 = vadd.bf16 %v3923_v2, %v3848_v52  ;;  %v4305_v25 = vor.u32 %v4304_v58, %v4301_v60  ;;  %v4717_v7 = vrot.slane %v4580_v47, 5  ;;  %v975_v30 = vadd.f32 %v10894_v17, %v7187_v10  ;;  %v9573_v58 = vpop.f32.mrb[0].mxu1 }
 0x38f   : > { %v4315_v27 = vor.u32 %v4314_v9, %v4310_v36  ;;  %v1101_v62 = vmax.f32 %v971_v53, 0.0  ;;  %v977_v40 = vadd.f32 %v10895_v5, %v7192_v19  ;;  %v1102_v50 = vmax.f32 %v973_v61, 0.0  ;;  %10896 = vst [vmem:[#allocation35_spill] sm:$0xff] %v9573_v58 }
 0x390   : > { %v4306_v24 = vrot.slane %v4305_v25, 4  ;;  %v4718_v11 = vsel %vm7279_vm8, %v6073_v59, %v4717_v7  ;;  %v4719_v46 = vrot.slane %v4717_v7, 4  ;;  %v1103_v47 = vmax.f32 %v975_v30, 0.0  ;;  %v10897_v25 = vld [vmem:[#allocation37_spill] sm:$0xff]  ;;  %v5293_v59 = vpop.f32.mrb[1].mxu1 }
 0x391   : > { %v4316_v2 = vrot.slane %v4315_v27, 4  ;;  %v1209_v60 = vmin.f32 %v1101_v62, 6.0  ;;  %v1104_v52 = vmax.f32 %v977_v40, 0.0  ;;  %v1210_v20 = vmin.f32 %v1102_v50, 6.0  ;;  %v9586_v5 = vpop.f32.mrb[2].mxu1 }
 0x392   : > { %v4311_v9 = vsel %vm7285_vm9, %v4306_v24, %v4310_v36  ;;  %v4721_v53 = vsel %vm7279_vm8, %v4719_v46, %v9167_v23  ;;  %v981_v17 = vadd.f32 %v10897_v25, %v7187_v10  ;;  %v10898_v61 = vrot.slane %v9165_v57, 5  ;;  %10899 = vst [vmem:[#allocation57_spill] sm:$0xff] %v9586_v5  ;;  %v10900_v23 = vld [vmem:[#allocation67_spill] sm:$0xff]  ;;  %v5296_v50 = vpop.f32.mrb[3].mxu1 }
 0x393   : > { %v4494_v7 = vadd.bf16 %v4311_v9, %v3955_v63  ;;  %v1211_v62 = vmin.f32 %v1103_v47, 6.0  ;;  %v1212_v30 = vmin.f32 %v1104_v52, 6.0  ;;  %v6193_v40 = vpack.c.bf16 %v1210_v20, %v1209_v60 }
 0x394   : > { %v4321_v27 = vsel %vm7285_vm9, %v4316_v2, %v10898_v61  ;;  %v1105_v24 = vmax.f32 %v981_v17, 0.0  ;;  %v983_v46 = vadd.f32 %v10900_v23, %v7192_v19  ;;  %v2482_v57 = vsel %vm7285_vm9, %v9411_v12, %v9476_v4  ;;  %v9598_v2 = vpop.f32.mrb[4].mxu1 }
 0x395   : > { %v4495_v36 = vadd.bf16 %v4321_v27, %v3956_v56  ;;  %v4809_v58 = vadd.bf16 %v4718_v11, %v4494_v7  ;;  %v6194_v25 = vpack.c.bf16 %v1212_v30, %v1211_v62  ;;  %10901 = vst [vmem:[#allocation31_spill] sm:$0xff] %v9598_v2  ;;  %v9602_v60 = vsel %vm7342_vm13, %v6193_v40, 0  ;;  %v5301_v52 = vpop.f32.mrb[5].mxu1 }
 0x396   : > { %v9604_v47 = vmin.f32 %v1105_v24, 6.0  ;;  %v1106_v11 = vmax.f32 %v983_v46, 0.0  ;;  %v2128_v12 = vmul.bf16 %v7212_v45, %v9602_v60  ;;  %v3092_v4 = vmul.bf16 %v7245_v34, %v9602_v60 }
 0x397   : > { %v4810_v56 = vadd.bf16 %v4721_v53, %v4495_v36  ;;  %v4885_v9 = vadd.bf16 %v10550_v3, %v4809_v58  ;;  %v1948_v20 = vsel %vm7369_vm14, %v6194_v25, 0  ;;  %v9613_v53 = vpop.f32.mrb[6].mxu1  ;;  %v3929_v14 = vmul.bf16 %v7249_v39, %v9527_v26 }
 0x398   : > { %10902 = vst [vmem:[#allocation51_spill] sm:$0xff] %v9613_v53  ;;  %v2129_v59 = vmul.bf16 %v7212_v45, %v1948_v20  ;;  %v2671_v61 = vmul.bf16 %v7216_v51, %v1948_v20  ;;  %v3093_v27 = vmul.bf16 %v7245_v34, %v1948_v20  ;;  %v5304_v58 = vpop.f32.mrb[7].mxu1  ;;  %v2503_v62 = vshll.u32 %v2128_v12, 16 }
 0x399   : > { %v4886_v17 = vadd.bf16 %v10550_v3, %v4810_v56  ;;  %v4917_v7 = vmax.bf16 %v10551_v55, %v4885_v9  ;;  %v2507_v30 = vshrl.u32 %v2128_v12, 16  ;;  %v3443_v36 = vshll.u32 %v3092_v4, 16  ;;  %v9620_v40 = vpop.f32.mrb[8].mxu1 }
 0x39a   : > { %10903 = vst [vmem:[#allocation47_spill] sm:$0xff] %v9620_v40  ;;  %v2513_v23 = vshll.u32 %v2129_v59, 16  ;;  %v9623_v46 = vrot.slane %v2671_v61, 5  ;;  %v3447_v50 = vshrl.u32 %v3092_v4, 16  ;;  %v5309_v25 = vpop.f32.mrb[9].mxu1  ;;  %v9626_v56 = vrot.slane %v2503_v62, 5 }
 0x39b   : > { %v4918_v24 = vmax.bf16 %v10551_v55, %v4886_v17  ;;  %v4949_v45 = vmin.bf16 %v10589_v0, %v4917_v7  ;;  %v2509_v52 = vrot.slane %v2507_v30, 4  ;;  %v3445_v58 = vrot.slane %v3443_v36, 5  ;;  %v9628_v63 = vpop.f32.mrb[10].mxu1 }
 0x39c   : > { %10904 = vst [vmem:[#allocation27_spill] sm:$0xff] %v9628_v63  ;;  %v2515_v12 = vrot.slane %v2513_v23, 5  ;;  %v3449_v53 = vrot.slane %v3447_v50, 4  ;;  %v3453_v40 = vshll.u32 %v3093_v27, 16  ;;  %v5312_v2 = vpop.f32.mrb[11].mxu1  ;;  %v3632_v59 = vmul.bf16 %v7247_v38, %v1948_v20 }
 0x39d   : > { %v4950_v9 = vmin.bf16 %v10589_v0, %v4918_v24  ;;  %v2510_v17 = vor.u32 %v2509_v52, %v9626_v56  ;;  %v4051_v4 = vmul.bf16 %v7252_v41, %v1948_v20  ;;  %v4590_v61 = vmul.bf16 %v7254_v42, %v1948_v20  ;;  %v9635_v7 = vpop.f32.mrb[12].mxu1 }
 0x39e   : > { %10905 = vst [vmem:[#allocation49_spill] sm:$0xff] %v9635_v7  ;;  %v3450_v36 = vor.u32 %v3449_v53, %v3445_v58  ;;  %v3455_v25 = vrot.slane %v3453_v40, 5  ;;  %v5317_v63 = vpop.f32.mrb[13].mxu1  ;;  %v9637_v23 = vrot.slane %v3632_v59, 5  ;;  %v1214_v20 = vmin.f32 %v1106_v11, 6.0 }
 0x39f   : > { %v6103_v62 = vcombine.high %v4949_v45, %v4950_v9  ;;  %v6102_v30 = vcombine.low %v4949_v45, %v4950_v9  ;;  %v2511_v24 = vrot.slane %v2510_v17, 4  ;;  %v9639_v27 = vshll.u32 %v4051_v4, 16  ;;  %v9643_v50 = vpop.f32.mrb[14].mxu1  ;;  %v10918_v9 = vld [vmem:[#allocation83_spill] sm:$0xff] }
 0x3a0   : > { %v9641_v2 = vrot.slane %v4590_v61, 5  ;;  %10908 = vst [vmem:[#allocation63_spill] sm:$0xff] %v9643_v50  ;;  %v3451_v52 = vrot.slane %v3450_v36, 4  ;;  %v10909_v7 = vmul.bf16 %v7203_v33, %v9352_v1  ;;  %v2970_v63 = vmul.bf16 %v7243_v32, %v9527_v26  ;;  %v5320_v53 = vpop.f32.mrb[15].mxu1 }
 0x3a1   : > { %10906 = vst [vmem:[#allocation78_spill] sm:$0xff] %v9639_v27  ;;  %6136 = vmatprep.mubr.msk.bf16.mxu1 %vm5208_vm15, %v6103_v62  ;;  %v9653_v40 = vsel %vm7285_vm9, %v2511_v24, %v2515_v12  ;;  %v3440_v17 = vor.u32 %v9559_v31, %v9555_v13  ;;  %v3630_v11 = vmul.bf16 %v7247_v38, %v9527_v26  ;;  %v10911_v62 = vld [vmem:[#allocation73_spill] sm:$0xff] }
 0x3a2   : > { %10907 = vst [vmem:[#allocation23_spill] sm:$0xff] %v9641_v2  ;;  %v2577_v45 = vadd.bf16 %v2482_v57, %v10909_v7  ;;  %5370 = vmatmul.mubr.bf16.gmra.mrb[40].mxu1 %v6102_v30  ;;  %v9662_v57 = vsel %vm7285_vm9, %v3451_v52, %v3455_v25  ;;  %v6195_v59 = vpack.c.bf16 %v1214_v20, %v9604_v47  ;;  %v10912_v30 = vld [vmem:[#allocation50_spill] sm:$0xff] }
 0x3a3   : > { %v10910_v12 = vsel %vm7279_vm8, %v9374_v35, %v9471_v29  ;;  %v3631_v61 = vmul.bf16 %v7247_v38, %v9602_v60  ;;  %v3441_v7 = vrot.slane %v3440_v17, 4  ;;  %v6055_v31 = vrot.slane %v3630_v11, 9 }
 0x3a4   : > { %v2895_v4 = vadd.bf16 %v10910_v12, %v2577_v45  ;;  %v985_v13 = vadd.f32 %v9090_v54, %v7187_v10  ;;  %v2410_v36 = vsel %vm7285_vm9, %v10912_v30, %v10911_v62  ;;  %v9680_v47 = vsel %vm7297_vm10, %v6195_v59, 0 }
 0x3a5   : > { %v9682_v35 = vrot.slane %v3631_v61, 5  ;;  %v10913_v29 = vmul.bf16 %v7203_v33, %v10856_v22  ;;  %v3094_v54 = vmul.bf16 %v7245_v34, %v9680_v47  ;;  %v3446_v20 = vsel %vm7285_vm9, %v3441_v7, %v3445_v58 }
 0x3a6   : > { %v3002_v25 = vadd.bf16 %v2970_v63, %v2895_v4  ;;  %v3633_v28 = vmul.bf16 %v7247_v38, %v9680_v47  ;;  %v3931_v22 = vmul.bf16 %v7249_v39, %v9680_v47  ;;  %v4052_v53 = vmul.bf16 %v7252_v41, %v9680_v47  ;;  %v9706_v62 = vpop.f32.mrb[16].mxu1 }
 0x3a7   : > { %v2571_v24 = vadd.bf16 %v2410_v36, %v10913_v29  ;;  %v3785_v63 = vsel %vm7279_vm8, %v6055_v31, %v9682_v35  ;;  %v3458_v17 = vshrl.u32 %v3094_v54, 16  ;;  %v3461_v11 = vshll.u32 %v3094_v54, 16  ;;  %10914 = vst [vmem:[#allocation76_spill] sm:$0xff] %v9706_v62  ;;  %v10916_v29 = vld [vmem:[#allocation22_spill] sm:$0xff]  ;;  %v10920_v62 = vld [vmem:[#allocation59_spill] sm:$0xff] }
 0x3a8   : > { %v3541_v45 = vadd.bf16 %v3446_v20, %v3002_v25  ;;  %v9702_v59 = vrot.slane %v3633_v28, 9  ;;  %v4591_v58 = vmul.bf16 %v7254_v42, %v9680_v47  ;;  %v4395_v4 = vshrl.u32 %v4052_v53, 16  ;;  %v10915_v25 = vld [vmem:[#allocation70_spill] sm:$0xff]  ;;  %v5325_v20 = vpop.f32.mrb[17].mxu1 }
 0x3a9   : > { %v4398_v61 = vshll.u32 %v4052_v53, 16  ;;  %v1107_v7 = vmax.f32 %v985_v13, 0.0  ;;  %v9708_v31 = vrot.slane %v3458_v17, 4  ;;  %v9710_v30 = vrot.slane %v3461_v11, 5  ;;  %v9720_v13 = vpop.f32.mrb[18].mxu1  ;;  %v10922_v20 = vld [vmem:[#allocation29_spill] sm:$0xff] }
 0x3aa   : > { %v3856_v12 = vadd.bf16 %v3785_v63, %v3541_v45  ;;  %v9712_v36 = vrot.slane %v4591_v58, 9  ;;  %v2803_v54 = vsel %vm7279_vm8, %v10916_v29, %v10915_v25  ;;  %v4397_v45 = vrot.slane %v4395_v4, 4  ;;  %10917 = vst [vmem:[#allocation61_spill] sm:$0xff] %v9720_v13  ;;  %v10919_v58 = vld [vmem:[#allocation84_spill] sm:$0xff]  ;;  %v5328_v29 = vpop.f32.mrb[19].mxu1 }
 0x3ab   : > { %v4400_v63 = vrot.slane %v4398_v61, 5  ;;  %v1215_v53 = vmin.f32 %v1107_v7, 6.0  ;;  %v2889_v11 = vadd.bf16 %v2803_v54, %v2571_v24  ;;  %v3368_v52 = vor.u32 %v10919_v58, %v10918_v9  ;;  %v10923_v29 = vld [vmem:[#allocation26_spill] sm:$0xff] }
 0x3ac   : > { %v9718_v28 = vadd.bf16 %v3931_v22, %v3856_v12  ;;  %v3764_v25 = vsel %vm7279_vm8, %v10920_v62, %v9154_v6  ;;  %v3925_v12 = vmul.bf16 %v7249_v39, %v9188_v16  ;;  %v3926_v4 = vmul.bf16 %v7249_v39, %v9277_v43 }
 0x3ad   : > { %v4401_v22 = vor.u32 %v4400_v63, %v4397_v45  ;;  %v4044_v61 = vmul.bf16 %v7252_v41, %v9277_v43  ;;  %v10921_v24 = vmul.bf16 %v7243_v32, %v10886_v15  ;;  %v3369_v7 = vrot.slane %v3368_v52, 4 }
 0x3ae   : > { %v4323_v54 = vshrl.u32 %v9208_v49, 16  ;;  %v4326_v6 = vshll.u32 %v9208_v49, 16  ;;  %v3958_v45 = vadd.bf16 %v3926_v4, %v10922_v20  ;;  %v4583_v49 = vmul.bf16 %v7254_v42, %v9277_v43  ;;  %v10924_v4 = vld [vmem:[#allocation43_spill] sm:$0xff]  ;;  %v10926_v43 = vld [vmem:[#allocation34_spill] sm:$0xff] }
 0x3af   : > { %v2996_v9 = vadd.bf16 %v10921_v24, %v2889_v11  ;;  %v9741_v62 = vrot.slane %v4401_v22, 4  ;;  %v4332_v63 = vshll.u32 %v4044_v61, 16  ;;  %v4336_v58 = vshrl.u32 %v4044_v61, 16 }
 0x3b0   : > { %v3374_v17 = vsel %vm7285_vm9, %v3369_v7, %v10923_v29  ;;  %v4325_v13 = vrot.slane %v4323_v54, 4  ;;  %v4328_v50 = vrot.slane %v4326_v6, 5  ;;  %v4582_v11 = vmul.bf16 %v7254_v42, %v9188_v16 }
 0x3b1   : > { %v3535_v52 = vadd.bf16 %v3374_v17, %v2996_v9  ;;  %v4334_v24 = vrot.slane %v4332_v63, 5  ;;  %v4338_v5 = vrot.slane %v4336_v58, 4  ;;  %v987_v61 = vadd.f32 %v10924_v4, %v7192_v19 }
 0x3b2   : > { %v4329_v22 = vor.u32 %v4328_v50, %v4325_v13  ;;  %v6074_v27 = vrot.slane %v4582_v11, 9  ;;  %v2971_v20 = vmul.bf16 %v7243_v32, %v9602_v60  ;;  %v4724_v6 = vrot.slane %v4583_v49, 5 }
 0x3b3   : > { %v3850_v7 = vadd.bf16 %v3764_v25, %v3535_v52  ;;  %v4339_v54 = vor.u32 %v4338_v5, %v4334_v24  ;;  %v3786_v29 = vrot.slane %v9682_v35, 4  ;;  %v1108_v17 = vmax.f32 %v987_v61, 0.0 }
 0x3b4   : > { %v4330_v2 = vrot.slane %v4329_v22, 4  ;;  %v10925_v9 = vadd.bf16 %v9488_v37, %v9500_v44  ;;  %v991_v50 = vadd.f32 %v10926_v43, %v7187_v10  ;;  %v4725_v11 = vsel %vm7279_vm8, %v6074_v27, %v4724_v6  ;;  %v10927_v44 = vld [vmem:[#allocation45_spill] sm:$0xff]  ;;  %v10929_v22 = vld [vmem:[#allocation52_spill] sm:$0xff] }
 0x3b5   : > { %v3957_v13 = vadd.bf16 %v3925_v12, %v3850_v7  ;;  %v4340_v58 = vrot.slane %v4339_v54, 4  ;;  %v4726_v4 = vrot.slane %v4724_v6, 4  ;;  %v1216_v25 = vmin.f32 %v1108_v17, 6.0  ;;  %v10932_v17 = vld [vmem:[#allocation40_spill] sm:$0xff] }
 0x3b6   : > { %v3003_v63 = vadd.bf16 %v2971_v20, %v10925_v9  ;;  %v4335_v5 = vsel %vm7285_vm9, %v4330_v2, %v4334_v24  ;;  %v3788_v37 = vsel %vm7279_vm8, %v3786_v29, %v9637_v23  ;;  %v10928_v52 = vrot.slane %v10927_v44, 5  ;;  %v10931_v23 = vld [vmem:[#allocation77_spill] sm:$0xff] }
 0x3b7   : > { %v4496_v49 = vadd.bf16 %v4335_v5, %v3957_v13  ;;  %v4728_v27 = vsel %vm7279_vm8, %v4726_v4, %v10929_v22  ;;  %v1109_v61 = vmax.f32 %v991_v50, 0.0  ;;  %v6196_v2 = vpack.c.bf16 %v1216_v25, %v1215_v53 }
 0x3b8   : > { %v3542_v35 = vadd.bf16 %v9662_v57, %v3003_v63  ;;  %v4345_v12 = vsel %vm7285_vm9, %v4340_v58, %v10928_v52  ;;  %v10930_v57 = vld [vmem:[#allocation33_spill] sm:$0xff]  ;;  %v995_v29 = vadd.f32 %v10931_v23, %v7187_v10  ;;  %v997_v9 = vadd.f32 %v10932_v17, %v7192_v19 }
 0x3b9   : > { %v4497_v20 = vadd.bf16 %v4345_v12, %v3958_v45  ;;  %v993_v7 = vadd.f32 %v10930_v57, %v7192_v19  ;;  %v4811_v54 = vadd.bf16 %v4725_v11, %v4496_v49  ;;  %v1217_v6 = vmin.f32 %v1109_v61, 6.0 }
 0x3ba   : > { %v3857_v24 = vadd.bf16 %v3788_v37, %v3542_v35  ;;  %v9784_v43 = vsel %vm7342_vm13, %v6196_v2, 0  ;;  %v2037_v53 = vmul.bf16 %v7203_v33, %v9527_v26 }
 0x3bb   : > { %v4812_v63 = vadd.bf16 %v4728_v27, %v4497_v20  ;;  %v1110_v50 = vmax.f32 %v993_v7, 0.0  ;;  %v4887_v45 = vadd.bf16 %v10550_v3, %v4811_v54  ;;  %v3095_v58 = vmul.bf16 %v7245_v34, %v9784_v43 }
 0x3bc   : > { %v3634_v11 = vmul.bf16 %v7247_v38, %v9784_v43  ;;  %v3932_v48 = vmul.bf16 %v7249_v39, %v9784_v43  ;;  %v4053_v5 = vmul.bf16 %v7252_v41, %v9784_v43  ;;  %v4592_v25 = vmul.bf16 %v7254_v42, %v9784_v43 }
 0x3bd   : > { %v4888_v4 = vadd.bf16 %v10550_v3, %v4812_v63  ;;  %v4919_v35 = vmax.bf16 %v10551_v55, %v4887_v45  ;;  %v3467_v37 = vshll.u32 %v3095_v58, 16  ;;  %v3471_v44 = vshrl.u32 %v3095_v58, 16 }
 0x3be   : > { %v9803_v52 = vrot.slane %v3634_v11, 5  ;;  %v9806_v49 = vadd.bf16 %v3932_v48, %v3857_v24  ;;  %v4404_v22 = vshll.u32 %v4053_v5, 16  ;;  %v4408_v27 = vshrl.u32 %v4053_v5, 16 }
 0x3bf   : > { %v4920_v12 = vmax.bf16 %v10551_v55, %v4888_v4  ;;  %v4951_v61 = vmin.bf16 %v10589_v0, %v4919_v35  ;;  %v9809_v20 = vrot.slane %v3467_v37, 5  ;;  %v9811_v2 = vrot.slane %v3471_v44, 4 }
 0x3c0   : > { %v9815_v54 = vrot.slane %v4404_v22, 5  ;;  %v4410_v23 = vrot.slane %v4408_v27, 4  ;;  %v9817_v17 = vrot.slane %v4592_v25, 5  ;;  %v1218_v63 = vmin.f32 %v1110_v50, 6.0 }
 0x3c1   : > { %v4952_v7 = vmin.bf16 %v10589_v0, %v4920_v12  ;;  %v1111_v45 = vmax.f32 %v995_v29, 0.0  ;;  %v1112_v58 = vmax.f32 %v997_v9, 0.0  ;;  %v10933_v12 = vshrl.u32 %v9535_v21, 16 }
 0x3c2   : > { %v4411_v4 = vor.u32 %v4410_v23, %v9815_v54  ;;  %v4747_v48 = vrot.slane %v9817_v17, 4  ;;  %v6197_v35 = vpack.c.bf16 %v1218_v63, %v1217_v6  ;;  %v10934_v27 = vshll.u32 %v9535_v21, 16 }
 0x3c3   : > { %v6105_v11 = vcombine.high %v4951_v61, %v4952_v7  ;;  %v6104_v5 = vcombine.low %v4951_v61, %v4952_v7  ;;  %v1219_v37 = vmin.f32 %v1111_v45, 6.0  ;;  %v1220_v44 = vmin.f32 %v1112_v58, 6.0 }
 0x3c4   : > { %v2496_v22 = vrot.slane %v10933_v12, 4  ;;  %v4412_v25 = vrot.slane %v4411_v4, 4  ;;  %v2499_v50 = vrot.slane %v10934_v27, 5  ;;  %v2669_v29 = vmul.bf16 %v7216_v51, %v9527_v26 }
 0x3c5   : > { %6137 = vmatprep.mubr.msk.bf16.mxu1 %vm5208_vm15, %v6105_v11  ;;  %v2670_v9 = vmul.bf16 %v7216_v51, %v9602_v60  ;;  %v1951_v6 = vsel %vm7369_vm14, %v6197_v35, 0  ;;  %v6198_v61 = vpack.c.bf16 %v1220_v44, %v1219_v37  ;;  %v10935_v7 = vor.u32 %v9710_v30, %v9708_v31 }
 0x3c6   : > { %5378 = vmatmul.mubr.bf16.gmra.mrb[44].mxu1 %v6104_v5  ;;  %v3792_v21 = vsel %vm7279_vm8, %v9702_v59, %v9803_v52  ;;  %v3096_v63 = vmul.bf16 %v7245_v34, %v1951_v6  ;;  %v3635_v45 = vmul.bf16 %v7247_v38, %v1951_v6  ;;  %v4054_v51 = vmul.bf16 %v7252_v41, %v1951_v6 }
 0x3c7   : > { %v3465_v23 = vrot.slane %v10935_v7, 4  ;;  %v4593_v58 = vmul.bf16 %v7254_v42, %v1951_v6  ;;  %v9847_v11 = vsel %vm7238_vm6, %v6198_v61, 0  ;;  %v2500_v4 = vor.u32 %v2499_v50, %v2496_v22  ;;  %v10937_v61 = vld [vmem:[#allocation72_spill] sm:$0xff]  ;;  %v10938_v7 = vld [vmem:[#allocation66_spill] sm:$0xff] }
 0x3c8   : > { %v6034_v31 = vrot.slane %v2669_v29, 9  ;;  %v9849_v30 = vrot.slane %v2670_v9, 5  ;;  %v9851_v5 = vshll.u32 %v3096_v63, 16  ;;  %v9853_v35 = vrot.slane %v3635_v45, 5  ;;  %v10939_v63 = vld [vmem:[#allocation58_spill] sm:$0xff] }
 0x3c9   : > { %v4414_v59 = vshll.u32 %v4054_v51, 16  ;;  %v4748_v34 = vrot.slane %v4593_v58, 5  ;;  %v2501_v37 = vrot.slane %v2500_v4, 4  ;;  %v3470_v44 = vsel %vm7285_vm9, %v3465_v23, %v9809_v20  ;;  %v10940_v45 = vld [vmem:[#allocation30_spill] sm:$0xff] }
 0x3ca   : > { %v2831_v38 = vsel %vm7279_vm8, %v6034_v31, %v9849_v30  ;;  %v3933_v12 = vmul.bf16 %v7249_v39, %v9847_v11  ;;  %v4055_v29 = vmul.bf16 %v7252_v41, %v9847_v11  ;;  %v4594_v6 = vmul.bf16 %v7254_v42, %v9847_v11  ;;  %v9890_v4 = vpop.f32.mrb[20].mxu1 }
 0x3cb   : > { %v4416_v27 = vrot.slane %v4414_v59, 5  ;;  %v9866_v50 = vsel %vm7279_vm8, %v4747_v48, %v4748_v34  ;;  %v2506_v9 = vsel %vm7285_vm9, %v2501_v37, %v9626_v56  ;;  %v2434_v23 = vsel %vm7285_vm9, %v10938_v7, %v10937_v61  ;;  %10941 = vst [vmem:[#allocation46_spill] sm:$0xff] %v9890_v4  ;;  %v10943_v61 = vld [vmem:[#allocation38_spill] sm:$0xff]  ;;  %v5333_v7 = vpop.f32.mrb[21].mxu1 }
 0x3cc   : > { %v2810_v48 = vsel %vm7279_vm8, %v10940_v45, %v10939_v63  ;;  %v2579_v56 = vadd.bf16 %v2506_v9, %v2037_v53  ;;  %v4419_v58 = vshrl.u32 %v4055_v29, 16  ;;  %v4422_v11 = vshll.u32 %v4055_v29, 16  ;;  %v10945_v9 = vld [vmem:[#allocation28_spill] sm:$0xff]  ;;  %v10946_v29 = vld [vmem:[#allocation75_spill] sm:$0xff]  ;;  %v9905_v22 = vpop.f32.mrb[22].mxu1 }
 0x3cd   : > { %v9885_v51 = vsel %vm7285_vm9, %v4412_v25, %v4416_v27  ;;  %v9894_v59 = vrot.slane %v4594_v6, 9  ;;  %v10942_v34 = vmul.bf16 %v7203_v33, %v10886_v15  ;;  %v10944_v25 = vld [vmem:[#allocation53_spill] sm:$0xff]  ;;  %v3771_v13 = vsel %vm7279_vm8, %v10946_v29, %v10945_v9  ;;  %10947 = vst [vmem:[#allocation62_spill] sm:$0xff] %v9905_v22 }
 0x3ce   : > { %v3392_v27 = vor.u32 %v10944_v25, %v10943_v61  ;;  %v2897_v63 = vadd.bf16 %v2831_v38, %v2579_v56  ;;  %v4421_v45 = vrot.slane %v4419_v58, 4  ;;  %v4424_v53 = vrot.slane %v4422_v11, 5  ;;  %v5336_v61 = vpop.f32.mrb[23].mxu1  ;;  %v10950_v25 = vld [vmem:[#allocation36_spill] sm:$0xff]  ;;  %v10953_v29 = vld [vmem:[#allocation81_spill] sm:$0xff] }
 0x3cf   : > { %v2573_v37 = vadd.bf16 %v2434_v23, %v10942_v34  ;;  %v3927_v15 = vmul.bf16 %v7249_v39, %v9352_v1  ;;  %v10948_v23 = vld [vmem:[#allocation80_spill] sm:$0xff]  ;;  %v10949_v38 = vmul.bf16 %v7243_v32, %v9680_v47  ;;  %v4347_v7 = vshrl.u32 %v10950_v25, 16 }
 0x3d0   : > { %v3393_v31 = vrot.slane %v3392_v27, 4  ;;  %v3928_v34 = vmul.bf16 %v7249_v39, %v10948_v23  ;;  %v4425_v58 = vor.u32 %v4424_v53, %v4421_v45  ;;  %v4047_v11 = vmul.bf16 %v7252_v41, %v10948_v23  ;;  %v10952_v27 = vld [vmem:[#allocation24_spill] sm:$0xff] }
 0x3d1   : > { %v2891_v6 = vadd.bf16 %v2810_v48, %v2573_v37  ;;  %v3004_v56 = vadd.bf16 %v10949_v38, %v2897_v63  ;;  %v10951_v48 = vmul.bf16 %v7243_v32, %v9188_v16  ;;  %v4350_v57 = vshll.u32 %v10950_v25, 16 }
 0x3d2   : > { %v3398_v9 = vsel %vm7285_vm9, %v3393_v31, %v10952_v27  ;;  %v3960_v61 = vadd.bf16 %v3928_v34, %v10953_v29  ;;  %v9925_v63 = vrot.slane %v4425_v58, 4  ;;  %v4349_v45 = vrot.slane %v4347_v7, 4  ;;  %v10954_v34 = vld [vmem:[#allocation74_spill] sm:$0xff] }
 0x3d3   : > { %v2998_v37 = vadd.bf16 %v10951_v48, %v2891_v6  ;;  %v3543_v47 = vadd.bf16 %v3470_v44, %v3004_v56  ;;  %v4356_v53 = vshll.u32 %v4047_v11, 16  ;;  %v4352_v24 = vrot.slane %v4350_v57, 5 }
 0x3d4   : > { %v4360_v22 = vshrl.u32 %v4047_v11, 16  ;;  %v4585_v4 = vmul.bf16 %v7254_v42, %v9352_v1  ;;  %v4586_v31 = vmul.bf16 %v7254_v42, %v10948_v23  ;;  %v1001_v27 = vadd.f32 %v10954_v34, %v7187_v10  ;;  %v10955_v11 = vld [vmem:[#allocation54_spill] sm:$0xff] }
 0x3d5   : > { %v3537_v38 = vadd.bf16 %v3398_v9, %v2998_v37  ;;  %v3858_v6 = vadd.bf16 %v3792_v21, %v3543_v47  ;;  %v4358_v48 = vrot.slane %v4356_v53, 5  ;;  %v4353_v44 = vor.u32 %v4352_v24, %v4349_v45 }
 0x3d6   : > { %v4362_v56 = vrot.slane %v4360_v22, 4  ;;  %v6075_v58 = vrot.slane %v4585_v4, 9  ;;  %v4731_v37 = vrot.slane %v4586_v31, 5  ;;  %v1113_v57 = vmax.f32 %v1001_v27, 0.0 }
 0x3d7   : > { %v3852_v25 = vadd.bf16 %v3771_v13, %v3537_v38  ;;  %v9933_v7 = vadd.bf16 %v3933_v12, %v3858_v6  ;;  %v1003_v9 = vadd.f32 %v10955_v11, %v7192_v19  ;;  %v4354_v21 = vrot.slane %v4353_v44, 4  ;;  %v10956_v6 = vld [vmem:[#allocation65_spill] sm:$0xff]  ;;  %v10958_v44 = vld [vmem:[#allocation44_spill] sm:$0xff] }
 0x3d8   : > { %v4363_v47 = vor.u32 %v4362_v56, %v4358_v48  ;;  %v2038_v23 = vmul.bf16 %v7203_v33, %v9602_v60  ;;  %v4732_v53 = vsel %vm7279_vm8, %v6075_v58, %v4731_v37  ;;  %v4733_v13 = vrot.slane %v4731_v37, 4  ;;  %v10961_v37 = vld [vmem:[#allocation56_spill] sm:$0xff] }
 0x3d9   : > { %v3959_v29 = vadd.bf16 %v3927_v15, %v3852_v25  ;;  %v1221_v24 = vmin.f32 %v1113_v57, 6.0  ;;  %v1114_v22 = vmax.f32 %v1003_v9, 0.0  ;;  %v4359_v12 = vsel %vm7285_vm9, %v4354_v21, %v4358_v48 }
 0x3da   : > { %v4364_v4 = vrot.slane %v4363_v47, 4  ;;  %v2580_v45 = vadd.bf16 %v9653_v40, %v2038_v23  ;;  %v2832_v38 = vrot.slane %v9849_v30, 4  ;;  %v4735_v31 = vsel %vm7279_vm8, %v4733_v13, %v10956_v6  ;;  %v10965_v13 = vld [vmem:[#allocation32_spill] sm:$0xff] }
 0x3db   : > { %v4498_v15 = vadd.bf16 %v4359_v12, %v3959_v29  ;;  %v1222_v34 = vmin.f32 %v1114_v22, 6.0  ;;  %v10957_v27 = vor.u32 %v9811_v2, %v9809_v20  ;;  %v10959_v56 = vrot.slane %v10958_v44, 5 }
 0x3dc   : > { %v2834_v40 = vsel %vm7279_vm8, %v2832_v38, %v9623_v46  ;;  %v10960_v30 = vrot.slane %v9803_v52, 4  ;;  %v1005_v57 = vadd.f32 %v10961_v37, %v7187_v10  ;;  %v10962_v29 = vrot.slane %v9851_v5, 5  ;;  %v10963_v46 = vld [vmem:[#allocation68_spill] sm:$0xff]  ;;  %v10964_v52 = vld [vmem:[#allocation21_spill] sm:$0xff] }
 0x3dd   : > { %v3475_v25 = vrot.slane %v10957_v27, 4  ;;  %v4369_v48 = vsel %vm7285_vm9, %v4364_v4, %v10959_v56  ;;  %v4813_v2 = vadd.bf16 %v4732_v53, %v4498_v15  ;;  %v6199_v11 = vpack.c.bf16 %v1222_v34, %v1221_v24 }
 0x3de   : > { %v3795_v58 = vsel %vm7279_vm8, %v10960_v30, %v9853_v35  ;;  %v4499_v20 = vadd.bf16 %v4369_v48, %v3960_v61  ;;  %v2898_v9 = vadd.bf16 %v2834_v40, %v2580_v45  ;;  %v1115_v47 = vmax.f32 %v1005_v57, 0.0 }
 0x3df   : > { %v3480_v21 = vsel %vm7285_vm9, %v3475_v25, %v10962_v29  ;;  %v1007_v23 = vadd.f32 %v10963_v46, %v7192_v19  ;;  %v2458_v35 = vsel %vm7285_vm9, %v10965_v13, %v10964_v52  ;;  %v4889_v10 = vadd.bf16 %v10550_v3, %v4813_v2  ;;  %v10968_v29 = vld [vmem:[#allocation71_spill] sm:$0xff]  ;;  %v10970_v46 = vld [vmem:[#allocation42_spill] sm:$0xff] }
 0x3e0   : > { %v4814_v22 = vadd.bf16 %v4735_v31, %v4499_v20  ;;  %v1953_v61 = vsel %vm7238_vm6, %v6199_v11, 0  ;;  %v10966_v5 = vmul.bf16 %v7243_v32, %v9784_v43  ;;  %v1223_v4 = vmin.f32 %v1115_v47, 6.0 }
 0x3e1   : > { %v3934_v24 = vmul.bf16 %v7249_v39, %v1953_v61  ;;  %v4056_v12 = vmul.bf16 %v7252_v41, %v1953_v61  ;;  %v4595_v19 = vmul.bf16 %v7254_v42, %v1953_v61  ;;  %v4921_v38 = vmax.bf16 %v10551_v55, %v4889_v10 }
 0x3e2   : > { %v3005_v53 = vadd.bf16 %v10966_v5, %v2898_v9  ;;  %v4890_v45 = vadd.bf16 %v10550_v3, %v4814_v22  ;;  %v1116_v6 = vmax.f32 %v1007_v23, 0.0  ;;  %v10967_v43 = vmul.bf16 %v7203_v33, %v9188_v16  ;;  %v10969_v33 = vld [vmem:[#allocation25_spill] sm:$0xff]  ;;  %v10971_v23 = vld [vmem:[#allocation79_spill] sm:$0xff] }
 0x3e3   : > { %v4428_v31 = vshll.u32 %v4056_v12, 16  ;;  %v4432_v34 = vshrl.u32 %v4056_v12, 16  ;;  %v4752_v27 = vrot.slane %v4595_v19, 5  ;;  %v4953_v56 = vmin.bf16 %v10589_v0, %v4921_v38  ;;  %v10973_v19 = vld [vmem:[#allocation55_spill] sm:$0xff] }
 0x3e4   : > { %v3544_v15 = vadd.bf16 %v3480_v21, %v3005_v53  ;;  %v2575_v25 = vadd.bf16 %v2458_v35, %v10967_v43  ;;  %v4922_v44 = vmax.bf16 %v10551_v55, %v4890_v45  ;;  %v1224_v40 = vmin.f32 %v1116_v6, 6.0 }
 0x3e5   : > { %v4430_v30 = vrot.slane %v4428_v31, 5  ;;  %v4434_v37 = vrot.slane %v4432_v34, 4  ;;  %v4753_v57 = vsel %vm7279_vm8, %v9894_v59, %v4752_v27  ;;  %v4754_v20 = vrot.slane %v4752_v27, 4  ;;  %v10976_v31 = vld [vmem:[#allocation48_spill] sm:$0xff] }
 0x3e6   : > { %v3859_v48 = vadd.bf16 %v3795_v58, %v3544_v15  ;;  %v4954_v2 = vmin.bf16 %v10589_v0, %v4922_v44  ;;  %v6200_v9 = vpack.c.bf16 %v1224_v40, %v1223_v4  ;;  %v2817_v16 = vsel %vm7279_vm8, %v10969_v33, %v10968_v29  ;;  %v10974_v4 = vld [vmem:[#allocation39_spill] sm:$0xff] }
 0x3e7   : > { %v4431_v58 = vsel %vm7285_vm9, %v9925_v63, %v4430_v30  ;;  %v4435_v21 = vor.u32 %v4434_v37, %v4430_v30  ;;  %v2893_v47 = vadd.bf16 %v2817_v16, %v2575_v25  ;;  %v3416_v52 = vor.u32 %v10971_v23, %v10970_v46 }
 0x3e8   : > { %v3966_v11 = vadd.bf16 %v3934_v24, %v3859_v48  ;;  %v6107_v59 = vcombine.high %v4953_v56, %v4954_v2  ;;  %v6106_v13 = vcombine.low %v4953_v56, %v4954_v2  ;;  %v4504_v35 = vadd.bf16 %v4431_v58, %v9933_v7 }
 0x3e9   : > { %v1954_v22 = vsel %vm7238_vm6, %v6200_v9, 0  ;;  %v4436_v10 = vrot.slane %v4435_v21, 4  ;;  %v10972_v63 = vmul.bf16 %v7243_v32, %v9352_v1  ;;  %v3417_v12 = vrot.slane %v3416_v52, 4  ;;  %v10975_v1 = vld [vmem:[#allocation41_spill] sm:$0xff] }
 0x3ea   : > { %v4057_v61 = vmul.bf16 %v7252_v41, %v1954_v22  ;;  %v4596_v5 = vmul.bf16 %v7254_v42, %v1954_v22  ;;  %6138 = vmatprep.mubr.msk.bf16.mxu1 %vm5208_vm15, %v6107_v59  ;;  %v4819_v24 = vadd.bf16 %v4753_v57, %v4504_v35  ;;  %v3778_v7 = vsel %vm7279_vm8, %v10974_v4, %v10973_v19 }
 0x3eb   : > { %v3000_v53 = vadd.bf16 %v10972_v63, %v2893_v47  ;;  %5386 = vmatmul.mubr.bf16.gmra.mrb[48].mxu1 %v6106_v13  ;;  %v3930_v15 = vmul.bf16 %v7249_v39, %v9602_v60  ;;  %v4050_v32 = vmul.bf16 %v7252_v41, %v9602_v60  ;;  %v3422_v6 = vsel %vm7285_vm9, %v3417_v12, %v10975_v1  ;;  %v10977_v39 = vld [vmem:[#allocation69_spill] sm:$0xff]  ;;  %v10979_v12 = vld [vmem:[#allocation23_spill] sm:$0xff] }
 0x3ec   : > { %v4438_v45 = vshll.u32 %v4057_v61, 16  ;;  %v4755_v38 = vrot.slane %v4596_v5, 5  ;;  %v4371_v34 = vshrl.u32 %v10976_v31, 16  ;;  %v4374_v27 = vshll.u32 %v10976_v31, 16  ;;  %v6411_v31 = vld [vmem:[%s7063_s21 + $0x8] sm:$0xff]  }
 0x3ed   : > { %v4588_v43 = vmul.bf16 %v7254_v42, %v9527_v26  ;;  %v3539_v56 = vadd.bf16 %v3422_v6, %v3000_v53  ;;  %v3962_v48 = vadd.bf16 %v3930_v15, %v10977_v39  ;;  %v4380_v30 = vshll.u32 %v4050_v32, 16 }
 0x3ee   : > { %v4440_v25 = vrot.slane %v4438_v45, 5  ;;  %v4756_v44 = vsel %vm7279_vm8, %v4754_v20, %v4755_v38  ;;  %v4373_v40 = vrot.slane %v4371_v34, 4  ;;  %v4376_v41 = vrot.slane %v4374_v27, 5  ;;  %v10037_v20 = vpop.f32.mrb[24].mxu1  ;;  %v10982_v45 = vld [vmem:[#allocation35_spill] sm:$0xff]  ;;  %v6412_v27 = vld [vmem:[%s7063_s21 + $0x10] sm:$0xff]  }
 0x3ef   : > { %v4384_v37 = vshrl.u32 %v4050_v32, 16  ;;  %v3854_v2 = vadd.bf16 %v3778_v7, %v3539_v56  ;;  %v4589_v9 = vmul.bf16 %v7254_v42, %v9602_v60  ;;  %v6076_v29 = vrot.slane %v4588_v43, 9  ;;  %v5341_v42 = vpop.f32.mrb[25].mxu1 }
 0x3f0   : > { %v4441_v57 = vsel %vm7285_vm9, %v4436_v10, %v4440_v25  ;;  %v4377_v33 = vor.u32 %v4376_v41, %v4373_v40  ;;  %v4382_v16 = vrot.slane %v4380_v30, 5  ;;  %v4407_v46 = vsel %vm7285_vm9, %v9741_v62, %v9815_v54  ;;  %v10048_v13 = vpop.f32.mrb[26].mxu1 }
 0x3f1   : > { %v4505_v26 = vadd.bf16 %v4441_v57, %v3966_v11  ;;  %v4386_v58 = vrot.slane %v4384_v37, 4  ;;  %v3961_v21 = vadd.bf16 %v3929_v14, %v3854_v2  ;;  %v4738_v47 = vrot.slane %v4589_v9, 5  ;;  %v10983_v2 = vld [vmem:[#allocation57_spill] sm:$0xff] }
 0x3f2   : > { %v4746_v23 = vsel %vm7279_vm8, %v9712_v36, %v9817_v17  ;;  %v4378_v11 = vrot.slane %v4377_v33, 4  ;;  %v4502_v59 = vadd.bf16 %v4407_v46, %v9718_v28  ;;  %v10978_v62 = vadd.bf16 %v9885_v51, %v9806_v49  ;;  %v10057_v36 = vld [vmem:[#allocation13] ss:$0 sm:$0xff]  ;;  %v5344_v17 = vpop.f32.mrb[27].mxu1  ;;  %v6413_v46 = vld [vmem:[%s7063_s21 + $0x18] sm:$0xff]  }
 0x3f3   : > { %v4820_v60 = vadd.bf16 %v4756_v44, %v4505_v26  ;;  %v4387_v52 = vor.u32 %v4386_v58, %v4382_v16  ;;  %v4739_v35 = vsel %vm7279_vm8, %v6076_v29, %v4738_v47  ;;  %v4740_v22 = vrot.slane %v4738_v47, 4 }
 0x3f4   : > { %v4818_v54 = vadd.bf16 %v9866_v50, %v10978_v62  ;;  %v4895_v10 = vadd.bf16 %v10550_v3, %v4819_v24  ;;  %v4383_v61 = vsel %vm7285_vm9, %v4378_v11, %v4382_v16  ;;  %v4817_v5 = vadd.bf16 %v4746_v23, %v4502_v59  ;;  %v10980_v24 = vld [vmem:[#allocation78_spill] sm:$0xff]  ;;  %v10984_v16 = vld [vmem:[#allocation31_spill] sm:$0xff] }
 0x3f5   : > { %v4388_v28 = vrot.slane %v4387_v52, 4  ;;  %v4896_v63 = vadd.bf16 %v10550_v3, %v4820_v60  ;;  %v4500_v53 = vadd.bf16 %v4383_v61, %v3961_v21  ;;  %v4742_v49 = vsel %vm7279_vm8, %v4740_v22, %v10979_v12  ;;  %v10985_v52 = vld [vmem:[#allocation51_spill] sm:$0xff] }
 0x3f6   : > { %v4894_v50 = vadd.bf16 %v10550_v3, %v4818_v54  ;;  %v4927_v51 = vmax.bf16 %v10551_v55, %v4895_v10  ;;  %v10981_v19 = vrot.slane %v10980_v24, 5  ;;  %v4893_v7 = vadd.bf16 %v10550_v3, %v4817_v5  ;;  %v6414_v54 = vld [vmem:[%s7063_s21 + $0x20] sm:$0xff]  }
 0x3f7   : > { %v4928_v14 = vmax.bf16 %v10551_v55, %v4896_v63  ;;  %v5292_v38 = vadd.f32 %v10057_v36, %v10982_v45  ;;  %v4815_v8 = vadd.bf16 %v4739_v35, %v4500_v53  ;;  %v5418_v34 = vunpack.c.h.bf16 %v6411_v31  ;;  %v10986_v61 = vld [vmem:[#allocation47_spill] sm:$0xff] }
 0x3f8   : > { %v4393_v4 = vsel %vm7285_vm9, %v4388_v28, %v10981_v19  ;;  %v4926_v32 = vmax.bf16 %v10551_v55, %v4894_v50  ;;  %v10077_v1 = vmin.bf16 %v10589_v0, %v4927_v51  ;;  %v4925_v6 = vmax.bf16 %v10551_v55, %v4893_v7  ;;  %v6415_v51 = vld [vmem:[%s7063_s21 + $0x28] sm:$0xff]  }
 0x3f9   : > { %v4501_v15 = vadd.bf16 %v4393_v4, %v3962_v48  ;;  %v10081_v18 = vmin.bf16 %v10589_v0, %v4928_v14  ;;  %v5419_v43 = vunpack.c.l.bf16 %v6412_v27  ;;  %v4891_v44 = vadd.bf16 %v10550_v3, %v4815_v8  ;;  %v10987_v14 = vld [vmem:[#allocation27_spill] sm:$0xff] }
 0x3fa   : > { %v10087_v56 = vmin.bf16 %v10589_v0, %v4926_v32  ;;  %v10090_v39 = vmin.bf16 %v10589_v0, %v4925_v6  ;;  %v5515_v41 = vrot.slane %v5418_v34, 1  ;;  %v5295_v9 = vadd.f32 %v10057_v36, %v10983_v2  ;;  %v10988_v6 = vld [vmem:[#allocation49_spill] sm:$0xff] }
 0x3fb   : > { %v4816_v25 = vadd.bf16 %v4742_v49, %v4501_v15  ;;  %v6113_v48 = vcombine.high %v10077_v1, %v10081_v18  ;;  %v6112_v40 = vcombine.low %v10077_v1, %v10081_v18  ;;  %v4923_v37 = vmax.bf16 %v10551_v55, %v4891_v44 }
 0x3fc   : > { %v5516_v57 = vrot.slane %v5419_v43, 1  ;;  %v6111_v29 = vcombine.high %v10090_v39, %v10087_v56  ;;  %v6110_v26 = vcombine.low %v10090_v39, %v10087_v56  ;;  %v5420_v33 = vunpack.c.h.bf16 %v6412_v27  ;;  %v6416_v43 = vld [vmem:[%s7063_s21 + $0x30] sm:$0xff]  }
 0x3fd   : > { %v4892_v30 = vadd.bf16 %v10550_v3, %v4816_v25  ;;  %v5300_v58 = vadd.f32 %v10057_v36, %v10984_v16  ;;  %v4955_v21 = vmin.bf16 %v10589_v0, %v4923_v37  ;;  %v5421_v23 = vunpack.c.l.bf16 %v6413_v46 }
 0x3fe   : > { %v5517_v47 = vsel %vm5514_vm1, %v5515_v41, %v5516_v57  ;;  %v5518_v60 = vrot.slane %v5420_v33, 1  ;;  %v5422_v11 = vunpack.c.h.bf16 %v6413_v46  ;;  %v5303_v59 = vadd.f32 %v10057_v36, %v10985_v52 }
 0x3ff   : > { %v4924_v3 = vmax.bf16 %v10551_v55, %v4892_v30  ;;  %v5627_v42 = vsel %vm624_vm0, %v5517_v47, 0.0  ;;  %v5520_v62 = vrot.slane %v5421_v23, 1  ;;  %v5423_v55 = vunpack.c.l.bf16 %v6414_v54  ;;  %v10989_v30 = vld [vmem:[#allocation63_spill] sm:$0xff] }
 0x400   : > { %v5659_v22 = vadd.f32 %v5627_v42, %v5292_v38  ;;  %v5519_v10 = vsel %vm5514_vm1, %v5516_v57, %v5518_v60  ;;  %v5521_v17 = vrot.slane %v5422_v11, 1  ;;  %v5308_v28 = vadd.f32 %v10057_v36, %v10986_v61  ;;  %v6417_v57 = vld [vmem:[%s7063_s21 + $0x38] sm:$0xff]   ;;  %v6418_v11 = vld [vmem:[%s7063_s21 + $0x40] sm:$0xff]  }
 0x401   : > { %v4956_v35 = vmin.bf16 %v10589_v0, %v4924_v3  ;;  %v5424_v5 = vunpack.c.h.bf16 %v6414_v54  ;;  %v5628_v0 = vsel %vm624_vm0, %v5519_v10, 0.0  ;;  %v5523_v12 = vrot.slane %v5423_v55, 1 }
 0x402   : > { %5691 = vst [vmem:[%s10119_s9] sm:$0xff] %v5659_v22  ;;  %v5660_v49 = vadd.f32 %v5628_v0, %v5295_v9  ;;  %v5522_v50 = vsel %vm5514_vm1, %v5520_v62, %v5521_v17  ;;  %v5425_v24 = vunpack.c.l.bf16 %v6415_v51  ;;  %v5311_v45 = vadd.f32 %v10057_v36, %v10987_v14  ;;  %v10990_v9 = vld [vmem:[#allocation76_spill] sm:$0xff] }
 0x403   : > { %v6109_v63 = vcombine.high %v4955_v21, %v4956_v35  ;;  %v6108_v53 = vcombine.low %v4955_v21, %v4956_v35  ;;  %v5525_v19 = vrot.slane %v5424_v5, 1  ;;  %v5629_v4 = vsel %vm624_vm0, %v5522_v50, 0.0  ;;  %v6419_v0 = vld [vmem:[%s7063_s21 + $0x48] sm:$0xff]  }
 0x404   : > { %v5524_v7 = vsel %vm5514_vm1, %v5521_v17, %v5523_v12  ;;  %v5426_v38 = vunpack.c.h.bf16 %v6415_v51  ;;  %5692 = vst [vmem:[%s10119_s9 + $0x8] sm:$0xff] %v5660_v49  ;;  %v5661_v15 = vadd.f32 %v5629_v4, %v5300_v58  ;;  %v5526_v32 = vrot.slane %v5425_v24, 1  ;;  %v10993_v51 = vld [vmem:[#allocation62_spill] sm:$0xff] }
 0x405   : > { %6139 = vmatprep.mubr.msk.bf16.mxu1 %vm5208_vm15, %v6109_v63  ;;  %v5630_v8 = vsel %vm624_vm0, %v5524_v7, 0.0  ;;  %v5316_v31 = vadd.f32 %v10057_v36, %v10988_v6  ;;  %v5427_v25 = vunpack.c.l.bf16 %v6416_v43  ;;  %v5428_v44 = vunpack.c.h.bf16 %v6416_v43  ;;  %v6421_v6 = vld [vmem:[%s7063_s21 + $0x58] sm:$0xff]  }
 0x406   : > { %5394 = vmatmul.mubr.bf16.gmra.mrb[52].mxu1 %v6108_v53  ;;  %v5662_v34 = vadd.f32 %v5630_v8, %v5303_v59  ;;  %v5528_v27 = vrot.slane %v5426_v38, 1  ;;  %5693 = vst [vmem:[%s10119_s9 + $0x10] sm:$0xff] %v5661_v15  ;;  %v5527_v41 = vsel %vm5514_vm1, %v5525_v19, %v5526_v32  ;;  %v5319_v37 = vadd.f32 %v10057_v36, %v10989_v30  ;;  %v10991_v59 = vld [vmem:[#allocation61_spill] sm:$0xff] }
 0x407   : > { %6140 = vmatprep.mubr.msk.bf16.mxu1 %vm5208_vm15, %v6111_v29  ;;  %v5429_v2 = vunpack.c.l.bf16 %v6417_v57  ;;  %v5324_v33 = vadd.f32 %v10057_v36, %v10990_v9  ;;  %v5631_v29 = vsel %vm624_vm0, %v5527_v41, 0.0  ;;  %v5530_v58 = vrot.slane %v5427_v25, 1  ;;  %v6420_v19 = vld [vmem:[%s7063_s21 + $0x50] sm:$0xff]  }
 0x408   : > { %5694 = vst [vmem:[%s10119_s9 + $0x18] sm:$0xff] %v5662_v34  ;;  %v5529_v16 = vsel %vm5514_vm1, %v5526_v32, %v5528_v27  ;;  %v5531_v3 = vrot.slane %v5428_v44, 1  ;;  %v5663_v21 = vadd.f32 %v5631_v29, %v5308_v28  ;;  %v5430_v23 = vunpack.c.h.bf16 %v6417_v57  ;;  %v10992_v28 = vld [vmem:[#allocation46_spill] sm:$0xff]  ;;  %v6423_v29 = vld [vmem:[%s7063_s21 + $0x68] sm:$0xff]  }
 0x409   : > { %v5632_v47 = vsel %vm624_vm0, %v5529_v16, 0.0  ;;  %v5533_v46 = vrot.slane %v5429_v2, 1  ;;  %v5431_v52 = vunpack.c.l.bf16 %v6418_v11  ;;  %v5327_v35 = vadd.f32 %v10057_v36, %v10991_v59 }
 0x40a   : > { %v5664_v42 = vadd.f32 %v5632_v47, %v5311_v45  ;;  %v5532_v60 = vsel %vm5514_vm1, %v5530_v58, %v5531_v3  ;;  %5695 = vst [vmem:[%s10119_s9 + $0x20] sm:$0xff] %v5663_v21  ;;  %v5535_v54 = vrot.slane %v5430_v23, 1  ;;  %v5432_v55 = vunpack.c.h.bf16 %v6418_v11 }
 0x40b   : > { %v5633_v22 = vsel %vm624_vm0, %v5532_v60, 0.0  ;;  %v5534_v62 = vsel %vm5514_vm1, %v5531_v3, %v5533_v46  ;;  %v5536_v61 = vrot.slane %v5431_v52, 1  ;;  %v5332_v5 = vadd.f32 %v10057_v36, %v10992_v28 }
 0x40c   : > { %5696 = vst [vmem:[%s10119_s9 + $0x28] sm:$0xff] %v5664_v42  ;;  %v5665_v10 = vadd.f32 %v5633_v22, %v5316_v31  ;;  %v5634_v17 = vsel %vm624_vm0, %v5534_v62, 0.0  ;;  %v5538_v53 = vrot.slane %v5432_v55, 1  ;;  %v5433_v12 = vunpack.c.l.bf16 %v6419_v0 }
 0x40d   : > { %v5666_v63 = vadd.f32 %v5634_v17, %v5319_v37  ;;  %v5434_v49 = vunpack.c.h.bf16 %v6419_v0  ;;  %v5537_v50 = vsel %vm5514_vm1, %v5535_v54, %v5536_v61  ;;  %v5335_v24 = vadd.f32 %v10057_v36, %v10993_v51  ;;  %v6422_v37 = vld [vmem:[%s7063_s21 + $0x60] sm:$0xff]  }
 0x40e   : > { %5402 = vmatmul.mubr.bf16.gmra.mrb[56].mxu1 %v6110_v26  ;;  %5697 = vst [vmem:[%s10119_s9 + $0x30] sm:$0xff] %v5665_v10  ;;  %v5435_v56 = vunpack.c.l.bf16 %v6420_v19  ;;  %v5340_v39 = vadd.f32 %v10057_v36, %v10037_v20  ;;  %v5635_v26 = vsel %vm624_vm0, %v5537_v50, 0.0  ;;  %v5539_v4 = vsel %vm5514_vm1, %v5536_v61, %v5538_v53  ;;  %v6424_v61 = vld [vmem:[%s7063_s21 + $0x70] sm:$0xff]  }
 0x40f   : > { %6141 = vmatprep.mubr.msk.bf16.mxu1 %vm5208_vm15, %v6113_v48  ;;  %5698 = vst [vmem:[%s10119_s9 + $0x38] sm:$0xff] %v5666_v63  ;;  %v5540_v7 = vrot.slane %v5433_v12, 1  ;;  %v5541_v48 = vrot.slane %v5434_v49, 1  ;;  %v5667_v14 = vadd.f32 %v5635_v26, %v5324_v33  ;;  %v5636_v45 = vsel %vm624_vm0, %v5539_v4, 0.0 }
 0x410   : > { %v5543_v38 = vrot.slane %v5435_v56, 1  ;;  %v5436_v15 = vunpack.c.h.bf16 %v6420_v19  ;;  %v5668_v8 = vadd.f32 %v5636_v45, %v5327_v35  ;;  %v5437_v31 = vunpack.c.l.bf16 %v6421_v6 }
 0x411   : > { %v5542_v32 = vsel %vm5514_vm1, %v5540_v7, %v5541_v48  ;;  %v5343_v20 = vadd.f32 %v10057_v36, %v10048_v13  ;;  %5699 = vst [vmem:[%s10119_s9 + $0x40] sm:$0xff] %v5667_v14  ;;  %v5438_v25 = vunpack.c.h.bf16 %v6421_v6  ;;  %v5439_v57 = vunpack.c.l.bf16 %v6422_v37  ;;  %v5347_v13 = vpop.f32.mrb[28].mxu1  ;;  %v6425_v14 = vld [vmem:[%s7063_s21 + $0x78] sm:$0xff]  }
 0x412   : > { %v5637_v34 = vsel %vm624_vm0, %v5542_v32, 0.0  ;;  %v5544_v27 = vsel %vm5514_vm1, %v5541_v48, %v5543_v38  ;;  %v5545_v43 = vrot.slane %v5436_v15, 1  ;;  %5700 = vst [vmem:[%s10119_s9 + $0x48] sm:$0xff] %v5668_v8  ;;  %v5546_v30 = vrot.slane %v5437_v31, 1  ;;  %v5349_v47 = vpop.f32.mrb[29].mxu1  ;;  %v6426_v15 = vld [vmem:[%s7063_s21 + $0x80] sm:$0xff]  }
 0x413   : > { %v5669_v44 = vadd.f32 %v5637_v34, %v5332_v5  ;;  %v5638_v41 = vsel %vm624_vm0, %v5544_v27, 0.0  ;;  %v5548_v9 = vrot.slane %v5438_v25, 1  ;;  %v5440_v33 = vunpack.c.h.bf16 %v6422_v37  ;;  %v5350_v60 = vpop.f32.mrb[30].mxu1 }
 0x414   : > { %v5670_v2 = vadd.f32 %v5638_v41, %v5335_v24  ;;  %v5441_v16 = vunpack.c.l.bf16 %v6423_v29  ;;  %v5547_v58 = vsel %vm5514_vm1, %v5545_v43, %v5546_v30  ;;  %v5348_v3 = vadd.f32 %v10057_v36, %v5347_v13  ;;  %v5352_v52 = vpop.f32.mrb[31].mxu1 }
 0x415   : > { %5701 = vst [vmem:[%s10119_s9 + $0x50] sm:$0xff] %v5669_v44  ;;  %v5550_v21 = vrot.slane %v5439_v57, 1  ;;  %v5639_v46 = vsel %vm624_vm0, %v5547_v58, 0.0  ;;  %v5549_v23 = vsel %vm5514_vm1, %v5546_v30, %v5548_v9  ;;  %v5551_v42 = vrot.slane %v5440_v33, 1  ;;  %v6427_v33 = vld [vmem:[%s7063_s21 + $0x88] sm:$0xff]  }
 0x416   : > { %5410 = vmatmul.mubr.bf16.gmra.mrb[60].mxu1 %v6112_v40  ;;  %5702 = vst [vmem:[%s10119_s9 + $0x58] sm:$0xff] %v5670_v2  ;;  %v5553_v1 = vrot.slane %v5441_v16, 1  ;;  %v5671_v18 = vadd.f32 %v5639_v46, %v5340_v39  ;;  %v5640_v40 = vsel %vm624_vm0, %v5549_v23, 0.0  ;;  %v5351_v11 = vadd.f32 %v10057_v36, %v5350_v60 }
 0x417   : > { %v5672_v59 = vadd.f32 %v5640_v40, %v5343_v20  ;;  %v5552_v35 = vsel %vm5514_vm1, %v5550_v21, %v5551_v42  ;;  %v5442_v17 = vunpack.c.h.bf16 %v6423_v29  ;;  %v5443_v28 = vunpack.c.l.bf16 %v6424_v61 }
 0x418   : > { %v5554_v22 = vsel %vm5514_vm1, %v5551_v42, %v5553_v1  ;;  %5703 = vst [vmem:[%s10119_s9 + $0x60] sm:$0xff] %v5671_v18  ;;  %v5641_v62 = vsel %vm624_vm0, %v5552_v35, 0.0  ;;  %v5444_v5 = vunpack.c.h.bf16 %v6424_v61  ;;  %v5445_v45 = vunpack.c.l.bf16 %v6425_v14 }
 0x419   : > { %v5642_v54 = vsel %vm624_vm0, %v5554_v22, 0.0  ;;  %5704 = vst [vmem:[%s10119_s9 + $0x68] sm:$0xff] %v5672_v59  ;;  %v5673_v55 = vadd.f32 %v5641_v62, %v5348_v3  ;;  %v5555_v63 = vrot.slane %v5442_v17, 1  ;;  %v5556_v53 = vrot.slane %v5443_v28, 1  ;;  %v6428_v22 = vld [vmem:[%s7063_s21 + $0x90] sm:$0xff]  }
 0x41a   : > { %v5674_v10 = vadd.f32 %v5642_v54, %v5351_v11  ;;  %v5558_v0 = vrot.slane %v5444_v5, 1  ;;  %v5446_v38 = vunpack.c.h.bf16 %v6425_v14  ;;  %v5447_v8 = vunpack.c.l.bf16 %v6426_v15 }
 0x41b   : > { %5705 = vst [vmem:[%s10119_s9 + $0x70] sm:$0xff] %v5673_v55  ;;  %v5557_v12 = vsel %vm5514_vm1, %v5555_v63, %v5556_v53  ;;  %v5560_v32 = vrot.slane %v5445_v45, 1  ;;  %v5448_v13 = vunpack.c.h.bf16 %v6426_v15  ;;  %v5449_v29 = vunpack.c.l.bf16 %v6427_v33  ;;  %v6429_v55 = vld [vmem:[%s7063_s21 + $0x98] sm:$0xff]  }
 0x41c   : > { %5706 = vst [vmem:[%s10119_s9 + $0x78] sm:$0xff] %v5674_v10  ;;  %v5559_v49 = vsel %vm5514_vm1, %v5556_v53, %v5558_v0  ;;  %v5643_v51 = vsel %vm624_vm0, %v5557_v12, 0.0  ;;  %v5561_v6 = vrot.slane %v5446_v38, 1  ;;  %v5563_v31 = vrot.slane %v5447_v8, 1 }
 0x41d   : > { %v5644_v39 = vsel %vm624_vm0, %v5559_v49, 0.0  ;;  %v5450_v16 = vunpack.c.h.bf16 %v6427_v33  ;;  %v5565_v58 = vrot.slane %v5448_v13, 1  ;;  %v5566_v3 = vrot.slane %v5449_v29, 1 }
 0x41e   : > { %v5562_v20 = vsel %vm5514_vm1, %v5560_v32, %v5561_v6  ;;  %v5564_v34 = vsel %vm5514_vm1, %v5561_v6, %v5563_v31  ;;  %v5451_v62 = vunpack.c.l.bf16 %v6428_v22  ;;  %v5452_v54 = vunpack.c.h.bf16 %v6428_v22 }
 0x41f   : > { %v5645_v43 = vsel %vm624_vm0, %v5562_v20, 0.0  ;;  %v5646_v30 = vsel %vm624_vm0, %v5564_v34, 0.0  ;;  %v5568_v21 = vrot.slane %v5450_v16, 1  ;;  %v5567_v47 = vsel %vm5514_vm1, %v5565_v58, %v5566_v3 }
 0x420   : > { %v5647_v42 = vsel %vm624_vm0, %v5567_v47, 0.0  ;;  %v5453_v10 = vunpack.c.l.bf16 %v6429_v55  ;;  %v5570_v17 = vrot.slane %v5451_v62, 1  ;;  %v5571_v61 = vrot.slane %v5452_v54, 1 }
 0x421   : > { %v5569_v46 = vsel %vm5514_vm1, %v5566_v3, %v5568_v21  ;;  %v6433_v3 = vld [vmem:[%s7063_s21 + $0xb8] sm:$0xff]  }
 0x422   : > { %v5648_v40 = vsel %vm624_vm0, %v5569_v46, 0.0  ;;  %v5573_v28 = vrot.slane %v5453_v10, 1  ;;  %v5572_v5 = vsel %vm5514_vm1, %v5570_v17, %v5571_v61  ;;  %v5461_v21 = vunpack.c.l.bf16 %v6433_v3  ;;  %v6434_v10 = vld [vmem:[%s7063_s21 + $0xc0] sm:$0xff]  }
 0x423   : > { %v5649_v0 = vsel %vm624_vm0, %v5572_v5, 0.0  ;;  %v5462_v46 = vunpack.c.h.bf16 %v6433_v3  ;;  %v5463_v17 = vunpack.c.l.bf16 %v6434_v10  ;;  %v6435_v5 = vld [vmem:[%s7063_s21 + $0xc8] sm:$0xff]  }
 0x424   : > { %v5574_v63 = vsel %vm5514_vm1, %v5571_v61, %v5573_v28  ;;  %v5464_v61 = vunpack.c.h.bf16 %v6434_v10 }
 0x425   : > { %v5588_v62 = vrot.slane %v5462_v46, 1 }
 0x432   : > { %v5355_v50 = vpop.f32.mrb[32].mxu1 }
 0x433   : > { %v5356_v24 = vadd.f32 %v10057_v36, %v5355_v50  ;;  %v5357_v19 = vpop.f32.mrb[33].mxu1 }
 0x434   : > { %v5358_v56 = vpop.f32.mrb[34].mxu1 }
 0x435   : > { %v5675_v26 = vadd.f32 %v5643_v51, %v5356_v24  ;;  %v5359_v4 = vadd.f32 %v10057_v36, %v5358_v56  ;;  %v5360_v7 = vpop.f32.mrb[35].mxu1  ;;  %v5650_v51 = vsel %vm624_vm0, %v5574_v63, 0.0  ;;  %v5465_v63 = vunpack.c.l.bf16 %v6435_v5 }
 0x437   : > { %5707 = vst [vmem:[%s10119_s9 + $0x80] sm:$0xff] %v5675_v26  ;;  %v5676_v48 = vadd.f32 %v5644_v39, %v5359_v4  ;;  %v5454_v26 = vunpack.c.h.bf16 %v6429_v55  ;;  %v6430_v4 = vld [vmem:[%s7063_s21 + $0xa0] sm:$0xff]  }
 0x438   : > { %v5455_v7 = vunpack.c.l.bf16 %v6430_v4 }
 0x439   : > { %5708 = vst [vmem:[%s10119_s9 + $0x88] sm:$0xff] %v5676_v48  ;;  %v5456_v48 = vunpack.c.h.bf16 %v6430_v4  ;;  %v5575_v14 = vrot.slane %v5454_v26, 1  ;;  %v5593_v4 = vrot.slane %v5465_v63, 1 }
 0x43a   : > { %v5576_v45 = vrot.slane %v5455_v7, 1 }
 0x43b   : > { %v5578_v38 = vrot.slane %v5456_v48, 1 }
 0x43c   : > { %v5577_v15 = vsel %vm5514_vm1, %v5575_v14, %v5576_v45 }
 0x43d   : > { %v5579_v8 = vsel %vm5514_vm1, %v5576_v45, %v5578_v38  ;;  %v5651_v6 = vsel %vm624_vm0, %v5577_v15, 0.0 }
 0x456   : > { %v5363_v27 = vpop.f32.mrb[36].mxu1 }
 0x457   : > { %v5364_v25 = vadd.f32 %v10057_v36, %v5363_v27  ;;  %v5365_v44 = vpop.f32.mrb[37].mxu1  ;;  %v5652_v27 = vsel %vm624_vm0, %v5579_v8, 0.0 }
 0x458   : > { %v5366_v41 = vpop.f32.mrb[38].mxu1 }
 0x459   : > { %v5677_v37 = vadd.f32 %v5645_v43, %v5364_v25  ;;  %v5367_v57 = vadd.f32 %v10057_v36, %v5366_v41  ;;  %v5368_v2 = vpop.f32.mrb[39].mxu1 }
 0x45a   : > { %v6432_v2 = vld [vmem:[%s7063_s21 + $0xb0] sm:$0xff]  }
 0x45b   : > { %5709 = vst [vmem:[%s10119_s9 + $0x90] sm:$0xff] %v5677_v37  ;;  %v5678_v9 = vadd.f32 %v5646_v30, %v5367_v57  ;;  %v6431_v30 = vld [vmem:[%s7063_s21 + $0xa8] sm:$0xff]   ;;  %v5460_v58 = vunpack.c.h.bf16 %v6432_v2 }
 0x45c   : > { %v5457_v37 = vunpack.c.l.bf16 %v6431_v30  ;;  %v5458_v57 = vunpack.c.h.bf16 %v6431_v30 }
 0x45d   : > { %5710 = vst [vmem:[%s10119_s9 + $0x98] sm:$0xff] %v5678_v9  ;;  %v5459_v9 = vunpack.c.l.bf16 %v6432_v2 }
 0x45e   : > { %v5580_v13 = vrot.slane %v5457_v37, 1  ;;  %v5581_v33 = vrot.slane %v5458_v57, 1 }
 0x45f   : > { %v5583_v29 = vrot.slane %v5459_v9, 1 }
 0x460   : > { %v5582_v16 = vsel %vm5514_vm1, %v5580_v13, %v5581_v33 }
 0x461   : > { %v5584_v47 = vsel %vm5514_vm1, %v5581_v33, %v5583_v29 }
 0x475   : > { %v5371_v23 = vpop.f32.mrb[40].mxu1 }
 0x476   : > { %v5372_v60 = vadd.f32 %v10057_v36, %v5371_v23  ;;  %v5373_v1 = vpop.f32.mrb[41].mxu1 }
 0x477   : > { %v5374_v18 = vpop.f32.mrb[42].mxu1 }
 0x478   : > { %v5679_v11 = vadd.f32 %v5647_v42, %v5372_v60  ;;  %v5375_v52 = vadd.f32 %v10057_v36, %v5374_v18  ;;  %v5376_v59 = vpop.f32.mrb[43].mxu1  ;;  %v5653_v42 = vsel %vm624_vm0, %v5582_v16, 0.0  ;;  %v5585_v18 = vrot.slane %v5460_v58, 1 }
 0x47a   : > { %5711 = vst [vmem:[%s10119_s9 + $0xa0] sm:$0xff] %v5679_v11  ;;  %v5680_v35 = vadd.f32 %v5648_v40, %v5375_v52  ;;  %v5586_v40 = vrot.slane %v5461_v21, 1  ;;  %v5654_v52 = vsel %vm624_vm0, %v5584_v47, 0.0 }
 0x47c   : > { %5712 = vst [vmem:[%s10119_s9 + $0xa8] sm:$0xff] %v5680_v35  ;;  %v5587_v55 = vsel %vm5514_vm1, %v5585_v18, %v5586_v40  ;;  %v5589_v28 = vsel %vm5514_vm1, %v5586_v40, %v5588_v62 }
 0x499   : > { %v5379_v53 = vpop.f32.mrb[44].mxu1 }
 0x49a   : > { %v5380_v12 = vadd.f32 %v10057_v36, %v5379_v53  ;;  %v5381_v49 = vpop.f32.mrb[45].mxu1 }
 0x49b   : > { %v5382_v50 = vpop.f32.mrb[46].mxu1 }
 0x49c   : > { %v5681_v24 = vadd.f32 %v5649_v0, %v5380_v12  ;;  %v5383_v19 = vadd.f32 %v10057_v36, %v5382_v50  ;;  %v5384_v56 = vpop.f32.mrb[47].mxu1  ;;  %v5655_v0 = vsel %vm624_vm0, %v5587_v55, 0.0  ;;  %v5590_v50 = vrot.slane %v5463_v17, 1 }
 0x49e   : > { %5713 = vst [vmem:[%s10119_s9 + $0xb0] sm:$0xff] %v5681_v24  ;;  %v5682_v39 = vadd.f32 %v5650_v51, %v5383_v19  ;;  %v5591_v51 = vrot.slane %v5464_v61, 1  ;;  %v5656_v19 = vsel %vm624_vm0, %v5589_v28, 0.0 }
 0x4a0   : > { %5714 = vst [vmem:[%s10119_s9 + $0xb8] sm:$0xff] %v5682_v39  ;;  %v5592_v48 = vsel %vm5514_vm1, %v5590_v50, %v5591_v51  ;;  %v5594_v14 = vsel %vm5514_vm1, %v5591_v51, %v5593_v4 }
 0x4a1   : > { %v5657_v38 = vsel %vm624_vm0, %v5592_v48, 0.0 }
 0x4be   : > { %v5387_v32 = vpop.f32.mrb[48].mxu1 }
 0x4bf   : > { %v5388_v31 = vadd.f32 %v10057_v36, %v5387_v32  ;;  %v5389_v20 = vpop.f32.mrb[49].mxu1 }
 0x4c0   : > { %v5390_v34 = vpop.f32.mrb[50].mxu1 }
 0x4c1   : > { %v5683_v43 = vadd.f32 %v5651_v6, %v5388_v31  ;;  %v5391_v25 = vadd.f32 %v10057_v36, %v5390_v34  ;;  %v5392_v44 = vpop.f32.mrb[51].mxu1  ;;  %v5658_v6 = vsel %vm624_vm0, %v5594_v14, 0.0 }
 0x4c3   : > { %5715 = vst [vmem:[%s10119_s9 + $0xc0] sm:$0xff] %v5683_v43  ;;  %v5684_v41 = vadd.f32 %v5652_v27, %v5391_v25 }
 0x4c5   : > { %5716 = vst [vmem:[%s10119_s9 + $0xc8] sm:$0xff] %v5684_v41 }
 0x4d9   : > { %v5395_v23 = vpop.f32.mrb[52].mxu1 }
 0x4da   : > { %v5396_v60 = vadd.f32 %v10057_v36, %v5395_v23  ;;  %v5397_v1 = vpop.f32.mrb[53].mxu1 }
 0x4db   : > { %v5398_v11 = vpop.f32.mrb[54].mxu1 }
 0x4dc   : > { %v5685_v59 = vadd.f32 %v5653_v42, %v5396_v60  ;;  %v5399_v35 = vadd.f32 %v10057_v36, %v5398_v11  ;;  %v5400_v22 = vpop.f32.mrb[55].mxu1 }
 0x4de   : > { %5717 = vst [vmem:[%s10119_s9 + $0xd0] sm:$0xff] %v5685_v59  ;;  %v5686_v54 = vadd.f32 %v5654_v52, %v5399_v35 }
 0x4e0   : > { %5718 = vst [vmem:[%s10119_s9 + $0xd8] sm:$0xff] %v5686_v54 }
 0x4e1   : > { %v5403_v53 = vpop.f32.mrb[56].mxu1 }
 0x4e2   : > { %v5404_v12 = vadd.f32 %v10057_v36, %v5403_v53  ;;  %v5405_v49 = vpop.f32.mrb[57].mxu1 }
 0x4e3   : > { %v5406_v24 = vpop.f32.mrb[58].mxu1 }
 0x4e4   : > { %v5687_v56 = vadd.f32 %v5655_v0, %v5404_v12  ;;  %v5407_v39 = vadd.f32 %v10057_v36, %v5406_v24  ;;  %v5408_v26 = vpop.f32.mrb[59].mxu1 }
 0x4e6   : > { %5719 = vst [vmem:[%s10119_s9 + $0xe0] sm:$0xff] %v5687_v56  ;;  %v5688_v7 = vadd.f32 %v5656_v19, %v5407_v39 }
 0x4e8   : > { %5720 = vst [vmem:[%s10119_s9 + $0xe8] sm:$0xff] %v5688_v7 }
 0x4e9   : > { %v5411_v45 = vpop.f32.mrb[60].mxu1 }
 0x4ea   : > { %v5412_v15 = vadd.f32 %v10057_v36, %v5411_v45  ;;  %v5413_v8 = vpop.f32.mrb[61].mxu1 }
 0x4eb   : > { %v5414_v32 = vpop.f32.mrb[62].mxu1 }
 0x4ec   : > { %v5689_v31 = vadd.f32 %v5657_v38, %v5412_v15  ;;  %v5415_v20 = vadd.f32 %v10057_v36, %v5414_v32  ;;  %v5416_v34 = vpop.f32.mrb[63].mxu1 }
 0x4ee   : > { %5721 = vst [vmem:[%s10119_s9 + $0xf0] sm:$0xff] %v5689_v31  ;;  %v5690_v27 = vadd.f32 %v5658_v6, %v5415_v20 }
 0x4f0   : > { %5722 = vst [vmem:[%s10119_s9 + $0xf8] sm:$0xff] %v5690_v27 }
 0x4f1   : > { %6647 = shalt.err (!%p6644_p8)
}
 0x4f2   : > { %s6648_s11 = scalar_lea.hbm %s10286_s19, 4096  ;;  %s6652_s8 = scalar_lea.hbm %s10994_s17, 8192 }
 0x4f3   : > { %p6649_p3 = scmp.ne.s32.totalorder %s10286_s19, %s6648_s11  ;;  %p6653_p13 = scmp.lt.u32.totalorder %s10286_s19, %s10994_s17 }
 0x4f4   : > { %p6654_p1 = scmp.lt.u32.totalorder %s6652_s8, %s6648_s11  ;;  %p6656_p2 = scmp.lt.u32.totalorder %s6648_s11, %s10286_s19 }
 0x4f5   : > { %p6650_p12 = pnand %p6649_p3, %p10995_p9 }
 0x4f6   : > { %p6655_p4 = por %p6654_p1, %p6653_p13 }
 0x4f7   : > { %p6651_p6 = pneg %p6650_p12 }
 0x4f8   : > { %p6657_p10 = por %p6656_p2, %p6655_p4 }
 0x4fa   : > { %p6658_p11 = pnand %p6657_p10, %p6651_p6 }
 0x4fc   : > { %6661 = shalt.err (!%p6658_p11)
}
 0x4fd   : > { %s6749_s20 = smov 128   ;;  %s6750_s1 = smov 8  }
 0x4fe   : > { %6231 = dma.vmem_to_hbm [thread:$0]  (%p10995_p9), %s10288_s23, 4096, %s10286_s19, %s5724_s27, %s6749_s20, %s6749_s20, %s6750_s1  }
 0x4ff PF: > { %s5754_s12 = sand.u32 1, %s6708_s24   ;;  %p10996_p0 = scmp.ne.s32.totalorder %s10453_s18, 0 }
 0x500   : > { %p10997_p7 = scmp.ge.s32.totalorder %s6728_s29, 2  ;;  %s5755_s10 = scalar_lea.sflag [#allocation4], %s5754_s12 }
 0x502   : > { %p6257_p5 = pnand %p10997_p7, %p10996_p0 }
 0x504   : > { %6703 = dma.done.wait (!%p6257_p5), %s5755_s10, 4096  }
 0x505   : > { %6705 = vsyncadd (!%p6257_p5), %s5755_s10, 4294963200  ;;  %s26_s29 = sadd.s32 1, %s6728_s29   ;;  %s10998_s24 = smov %s6712_s25 }
 0x506   : > { %p23_p8 = scmp.ge.s32.totalorder %s26_s29, 4   ;;  %s10999_s25 = smov %s6716_s26 }
 0x507   : > { %s11000_s26 = smov %s7003_s15  ;;  %s11001_s27 = smov %s6724_s28 }
 0x508   : > { %s11002_s28 = smov %s11004_s14  ;;  %25 = sbr.rel (!%p23_p8) target bundleno = 13 (0xd), region = 118 }
 0x50f   :  { %5760 = vsyncpa [#allocation3], 1 }
 0x510   :  { %5762 = vsyncpa [#allocation3 + $0x1], 1 }
 0x511   :  { %5763 = vsyncpa [#allocation6], 1 }
 0x512   :  { %5764 = vsyncpa [#allocation9], 1 }
 0x513   :  { %5765 = vsyncpa [#allocation12], 1 }
 0x514   :  { %5766 = vsyncpa [#allocation4], 1 }
 0x515   :  { %5768 = vsyncpa [#allocation4 + $0x1], 1 }

</bundles_post_ra>
